<compile_context>
chip_gen: v7x
topology: tpu7x:2x2x1
jax: 0.10.0
libtpu: 0.0.40
codegen_flags: <defaults>
</compile_context>

<pallas_src>
import jax
import jax.numpy as jnp
from jax import lax
from jax.experimental import pallas as pl
from jax.experimental.pallas import tpu as pltpu


def bottleneck_kernel(
    x_ref,        # (Nb, H, W, Cin)   Cin == 4*P
    w1_ref,       # (Cin, P)          1x1 conv, BN1 scale folded in
    b1_ref,       # (1, P)            folded BN1 bias (f32)
    w2_ref,       # (9*P, P)          3x3 conv reshaped for im2col, BN2 folded
    b2_ref,       # (1, P)
    w3_ref,       # (P, Cout)         1x1 conv, BN3 folded
    b3_ref,       # (1, Cout)
    out_ref,      # (Nb, H, W, Cout)
    pad_ref,      # scratch VMEM (Nb, H+2, W+2, P), compute dtype
):
    Nb, Hp2, Wp2, P = pad_ref.shape
    H, W = Hp2 - 2, Wp2 - 2
    M = Nb * H * W
    Cin = x_ref.shape[-1]
    Cout = out_ref.shape[-1]
    cdt = w1_ref.dtype                       # MXU input dtype (f32 or bf16)

    # ---- conv1 (1x1) + bias + ReLU -------------------------------------
    x1 = x_ref[...].reshape(M, Cin).astype(cdt)
    h1 = jnp.dot(x1, w1_ref[...], preferred_element_type=jnp.float32)
    h1 = jnp.maximum(h1 + b1_ref[...], 0.0)                       # (M, P) f32

    # ---- zero ONLY the 1-px border of the pad scratch, write interior ---
    # (re-zeroed every step so each core's private scratch is always valid
    #  under "parallel" megacore splitting; it is only a handful of vstores)
    pad_ref[:, 0:1, :, :] = jnp.zeros((Nb, 1, Wp2, P), cdt)
    pad_ref[:, H + 1:H + 2, :, :] = jnp.zeros((Nb, 1, Wp2, P), cdt)
    pad_ref[:, :, 0:1, :] = jnp.zeros((Nb, Hp2, 1, P), cdt)
    pad_ref[:, :, W + 1:W + 2, :] = jnp.zeros((Nb, Hp2, 1, P), cdt)
    pad_ref[:, 1:H + 1, 1:W + 1, :] = h1.astype(cdt).reshape(Nb, H, W, P)

    # ---- conv2 (3x3, pad=1, stride=1): im2col -> ONE matmul, K = 9*P ----
    cols = [
        pad_ref[:, ky:ky + H, kx:kx + W, :].reshape(M, P)
        for ky in range(3) for kx in range(3)
    ]
    im2col = jnp.concatenate(cols, axis=-1)                       # (M, 9P)
    h2 = jnp.dot(im2col, w2_ref[...], preferred_element_type=jnp.float32)
    h2 = jnp.maximum(h2 + b2_ref[...], 0.0)                       # (M, P) f32

    # ---- conv3 (1x1) + bias + residual + ReLU ---------------------------
    h3 = jnp.dot(h2.astype(cdt), w3_ref[...],
                 preferred_element_type=jnp.float32)
    h3 = h3 + b3_ref[...]
    # Residual: re-read the (already VMEM-resident) x tile right here so the
    # full-size f32 copy is not kept live across the whole kernel.
    h3 = h3 + x_ref[...].reshape(M, Cin).astype(jnp.float32)
    h3 = jnp.maximum(h3, 0.0)

    out_ref[...] = h3.reshape(Nb, H, W, Cout).astype(out_ref.dtype)


def _pick_batch_block(N, H, W, Cin, P, Cout, cdt, budget_bytes=20 << 20):
    """Largest divisor of N whose per-step VMEM footprint fits the budget."""
    csz = jnp.dtype(cdt).itemsize

    def footprint(nb):
        act = nb * H * W * (Cin + Cout) * 4 * 2          # in/out slabs, 2x-buffered
        pad = nb * (H + 2) * (W + 2) * P * csz           # padded scratch
        im2col = nb * H * W * 9 * P * csz                # transient im2col value
        tmps = nb * H * W * (2 * P + Cout + Cin) * 4     # f32 temporaries
        wts = (Cin * P + 9 * P * P + P * Cout) * csz * 2
        return act + pad + im2col + tmps + wts

    best = 1
    for nb in range(1, N + 1):
        if N % nb == 0 and footprint(nb) <= budget_bytes:
            best = nb
    return best


def bottleneck_forward(x, folded, *, compute_dtype=jnp.float32, batch_block=None):
    """x: (N, H, W, Cin) f32, Cin == 4*planes. Returns (N, H, W, 4*planes)."""
    N, H, W, Cin = x.shape
    P = folded["w1"].shape[1]
    Cout = folded["w3"].shape[1]
    assert Cin == Cout, "stride=1 / no-downsample variant needs inplanes == 4*planes"
    assert folded["w2"].shape == (9 * P, P)

    cdt = compute_dtype
    w1 = folded["w1"].astype(cdt)
    w2 = folded["w2"].astype(cdt)
    w3 = folded["w3"].astype(cdt)
    b1 = folded["b1"].astype(jnp.float32)
    b2 = folded["b2"].astype(jnp.float32)
    b3 = folded["b3"].astype(jnp.float32)

    if batch_block is None:
        batch_block = _pick_batch_block(N, H, W, Cin, P, Cout, cdt)
    Nb = batch_block
    assert N % Nb == 0

    grid_spec = pltpu.PrefetchScalarGridSpec(
        num_scalar_prefetch=0,
        grid=(N // Nb,),
        in_specs=[
            # Activations: one batch-block slab per grid step (double-buffered).
            pl.BlockSpec((Nb, H, W, Cin), lambda n: (n, 0, 0, 0)),
            # Weights / biases: constant block index -> stay resident in VMEM.
            pl.BlockSpec((Cin, P),       lambda n: (0, 0)),
            pl.BlockSpec((1, P),         lambda n: (0, 0)),
            pl.BlockSpec((9 * P, P),     lambda n: (0, 0)),
            pl.BlockSpec((1, P),         lambda n: (0, 0)),
            pl.BlockSpec((P, Cout),      lambda n: (0, 0)),
            pl.BlockSpec((1, Cout),      lambda n: (0, 0)),
        ],
        out_specs=pl.BlockSpec((Nb, H, W, Cout), lambda n: (n, 0, 0, 0)),
        scratch_shapes=[pltpu.VMEM((Nb, H + 2, W + 2, P), cdt)],
    )

    return pl.pallas_call(
        bottleneck_kernel,
        out_shape=jax.ShapeDtypeStruct((N, H, W, Cout), x.dtype),
        grid_spec=grid_spec,
        compiler_params=pltpu.CompilerParams(
            dimension_semantics=("parallel",),          # megacore on v7x
            vmem_limit_bytes=48 * 1024 * 1024,
        ),
    )(x, w1, b1, w2, b2, w3, b3)


def make_params(key, inplanes, planes, eps=1e-5):
    """Raw conv weights + eval-mode BN stats, and the BN-folded kernel params."""
    expansion = 4
    ks = jax.random.split(key, 6)

    def bn_params(k, c):
        k1, k2, k3, k4 = jax.random.split(k, 4)
        gamma = 1.0 + 0.1 * jax.random.normal(k1, (c,), jnp.float32)
        beta = 0.1 * jax.random.normal(k2, (c,), jnp.float32)
        mean = 0.1 * jax.random.normal(k3, (c,), jnp.float32)
        var = jax.random.uniform(k4, (c,), jnp.float32, minval=0.5, maxval=1.5)
        return gamma, beta, mean, var

    w1 = jax.random.normal(ks[0], (inplanes, planes), jnp.float32) * 0.1
    w2 = jax.random.normal(ks[1], (3, 3, planes, planes), jnp.float32) * 0.1
    w3 = jax.random.normal(ks[2], (planes, planes * expansion), jnp.float32) * 0.1
    bn1 = bn_params(ks[3], planes)
    bn2 = bn_params(ks[4], planes)
    bn3 = bn_params(ks[5], planes * expansion)
    raw = dict(w1=w1, w2=w2, w3=w3, bn1=bn1, bn2=bn2, bn3=bn3)

    def fold(w, bn):
        g, b, m, v = bn
        scale = g / jnp.sqrt(v + eps)        # per output channel
        bias = b - m * scale
        return w * scale, bias[None, :]      # scale broadcasts over last (Cout) axis

    w1f, b1 = fold(w1, bn1)                               # (Cin, P)
    w2f, b2 = fold(w2, bn2)                               # (3, 3, P, P)
    w2f = w2f.reshape(9 * planes, planes)                 # im2col layout (ky,kx,ci)
    w3f, b3 = fold(w3, bn3)                               # (P, 4P)
    folded = dict(w1=w1f, b1=b1, w2=w2f, b2=b2, w3=w3f, b3=b3)
    return raw, folded


def bottleneck_reference(x, raw, eps=1e-5):
    """Pure-JAX reference (lax.conv + explicit BN), NHWC/HWIO semantics."""
    dn = ("NHWC", "HWIO", "NHWC")

    def conv(x, w, pad):
        return lax.conv_general_dilated(x, w, window_strides=(1, 1),
                                        padding=pad, dimension_numbers=dn)

    def bn(x, p):
        g, b, m, v = p
        return (x - m) * (g / jnp.sqrt(v + eps)) + b

    out = jnp.maximum(bn(conv(x, raw["w1"][None, None], "VALID"), raw["bn1"]), 0.0)
    out = jnp.maximum(bn(conv(out, raw["w2"], "SAME"), raw["bn2"]), 0.0)
    out = bn(conv(out, raw["w3"][None, None], "VALID"), raw["bn3"])
    return jnp.maximum(out + x, 0.0)


if __name__ == "__main__":
    key = jax.random.PRNGKey(0)
    k_x, k_p = jax.random.split(key)

    # Small but lane-friendly shapes: batch=2, planes=32 -> inplanes = 128,
    # spatial 16x16 (output channel dim = 128 -> lane-dense stores).
    N, H, W = 2, 16, 16
    planes = 32
    inplanes = planes * 4

    x = jax.random.normal(k_x, (N, H, W, inplanes), jnp.float32)
    raw, folded = make_params(k_p, inplanes, planes)

    ref = bottleneck_reference(x, raw)

    # f32 MXU path (matches PyTorch eval-mode semantics closely).
    out_f32 = jax.block_until_ready(
        bottleneck_forward(x, folded, compute_dtype=jnp.float32))
    assert out_f32.shape == (N, H, W, inplanes)
    assert jnp.allclose(out_f32, ref, atol=5e-3, rtol=5e-3), \
        "f32 kernel mismatch vs JAX reference"

    # bf16 MXU path (v6e/v7x fast path; f32 accumulation) — looser tolerance.
    out_bf16 = jax.block_until_ready(
        bottleneck_forward(x, folded, compute_dtype=jnp.bfloat16))
    assert out_bf16.shape == (N, H, W, inplanes)
    assert jnp.allclose(out_bf16, ref, atol=1.5e-1, rtol=1.5e-1), \
        "bf16 kernel mismatch vs JAX reference"

    # Explicit per-image tiling path (batch_block=1) must match too.
    out_bb1 = jax.block_until_ready(
        bottleneck_forward(x, folded, compute_dtype=jnp.float32, batch_block=1))
    assert jnp.allclose(out_bb1, ref, atol=5e-3, rtol=5e-3), \
        "batch_block=1 kernel mismatch vs JAX reference"

    print("KERNEL_OK")
</pallas_src>

<mosaic_0001>
module attributes {stable_mosaic.version = 11 : i64} {
  func.func @bottleneck_kernel(%arg0: i32, %arg1: memref<2x16x16x128xf32, #tpu.memory_space<vmem>>, %arg2: memref<128x32xf32, #tpu.memory_space<vmem>>, %arg3: memref<1x32xf32, #tpu.memory_space<vmem>>, %arg4: memref<288x32xf32, #tpu.memory_space<vmem>>, %arg5: memref<1x32xf32, #tpu.memory_space<vmem>>, %arg6: memref<32x128xf32, #tpu.memory_space<vmem>>, %arg7: memref<1x128xf32, #tpu.memory_space<vmem>>, %arg8: memref<2x16x16x128xf32, #tpu.memory_space<vmem>>, %arg9: memref<2x18x18x32xf32, #tpu.memory_space<vmem>>) attributes {dimension_semantics = [#tpu.dimension_semantics<parallel>], iteration_bounds = array<i64: 1>, scalar_prefetch = 0 : i64, scratch_operands = 1 : i64, tpu.core_type = #tpu.core_type<tc>, window_params = [{transform_indices = @transform_0, window_bounds = array<i64: 2, 16, 16, 128>}, {pipeline_mode = #tpu.pipeline_mode<synchronous>, transform_indices = @transform_1, window_bounds = array<i64: 128, 32>}, {pipeline_mode = #tpu.pipeline_mode<synchronous>, transform_indices = @transform_2, window_bounds = array<i64: 1, 32>}, {pipeline_mode = #tpu.pipeline_mode<synchronous>, transform_indices = @transform_3, window_bounds = array<i64: 288, 32>}, {pipeline_mode = #tpu.pipeline_mode<synchronous>, transform_indices = @transform_4, window_bounds = array<i64: 1, 32>}, {pipeline_mode = #tpu.pipeline_mode<synchronous>, transform_indices = @transform_5, window_bounds = array<i64: 32, 128>}, {pipeline_mode = #tpu.pipeline_mode<synchronous>, transform_indices = @transform_6, window_bounds = array<i64: 1, 128>}, {transform_indices = @transform_7, window_bounds = array<i64: 2, 16, 16, 128>}]} {
    %c0 = arith.constant 0 : index
    %c0_0 = arith.constant 0 : index
    %c0_1 = arith.constant 0 : index
    %c0_2 = arith.constant 0 : index
    %0 = vector.load %arg1[%c0, %c0_0, %c0_1, %c0_2] : memref<2x16x16x128xf32, #tpu.memory_space<vmem>>, vector<2x16x16x128xf32>
    %1 = vector.shape_cast %0 : vector<2x16x16x128xf32> to vector<512x128xf32>
    %c0_3 = arith.constant 0 : index
    %c0_4 = arith.constant 0 : index
    %2 = vector.load %arg2[%c0_3, %c0_4] : memref<128x32xf32, #tpu.memory_space<vmem>>, vector<128x32xf32>
    %cst = arith.constant dense<0.000000e+00> : vector<512x32xf32>
    %3 = tpu.matmul %1, %2, %cst {dimension_numbers = #tpu.dot_dimension_numbers<[1], [0], [0], [1], [0, 0, 1, 1], [], []>} : vector<512x128xf32>, vector<128x32xf32>, vector<512x32xf32> -> vector<512x32xf32>
    %c0_5 = arith.constant 0 : index
    %c0_6 = arith.constant 0 : index
    %4 = vector.load %arg3[%c0_5, %c0_6] : memref<1x32xf32, #tpu.memory_space<vmem>>, vector<1x32xf32>
    %5 = vector.broadcast %4 : vector<1x32xf32> to vector<512x32xf32>
    %6 = arith.addf %3, %5 : vector<512x32xf32>
    %cst_7 = arith.constant 0.000000e+00 : f32
    %7 = vector.broadcast %cst_7 : f32 to vector<512x32xf32>
    %8 = arith.maximumf %6, %7 : vector<512x32xf32>
    %cst_8 = arith.constant 0.000000e+00 : f32
    %9 = vector.broadcast %cst_8 : f32 to vector<2x1x18x32xf32>
    %c0_9 = arith.constant 0 : index
    %c0_10 = arith.constant 0 : index
    %c0_11 = arith.constant 0 : index
    %c0_12 = arith.constant 0 : index
    %10 = vector.load %arg9[%c0_9, %c0_10, %c0_11, %c0_12] : memref<2x18x18x32xf32, #tpu.memory_space<vmem>>, vector<2x1x18x32xf32>
    tpu.vector_store %arg9[%c0_9, %c0_10, %c0_11, %c0_12], %9 {strides = array<i32>} : memref<2x18x18x32xf32, #tpu.memory_space<vmem>>, vector<2x1x18x32xf32>,
    %cst_13 = arith.constant 0.000000e+00 : f32
    %11 = vector.broadcast %cst_13 : f32 to vector<2x1x18x32xf32>
    %c0_14 = arith.constant 0 : index
    %c17 = arith.constant 17 : index
    %c0_15 = arith.constant 0 : index
    %c0_16 = arith.constant 0 : index
    %12 = vector.load %arg9[%c0_14, %c17, %c0_15, %c0_16] : memref<2x18x18x32xf32, #tpu.memory_space<vmem>>, vector<2x1x18x32xf32>
    tpu.vector_store %arg9[%c0_14, %c17, %c0_15, %c0_16], %11 {strides = array<i32>} : memref<2x18x18x32xf32, #tpu.memory_space<vmem>>, vector<2x1x18x32xf32>,
    %cst_17 = arith.constant 0.000000e+00 : f32
    %13 = vector.broadcast %cst_17 : f32 to vector<2x18x1x32xf32>
    %c0_18 = arith.constant 0 : index
    %c0_19 = arith.constant 0 : index
    %c0_20 = arith.constant 0 : index
    %c0_21 = arith.constant 0 : index
    %14 = vector.load %arg9[%c0_18, %c0_19, %c0_20, %c0_21] : memref<2x18x18x32xf32, #tpu.memory_space<vmem>>, vector<2x18x1x32xf32>
    tpu.vector_store %arg9[%c0_18, %c0_19, %c0_20, %c0_21], %13 {strides = array<i32>} : memref<2x18x18x32xf32, #tpu.memory_space<vmem>>, vector<2x18x1x32xf32>,
    %cst_22 = arith.constant 0.000000e+00 : f32
    %15 = vector.broadcast %cst_22 : f32 to vector<2x18x1x32xf32>
    %c0_23 = arith.constant 0 : index
    %c0_24 = arith.constant 0 : index
    %c17_25 = arith.constant 17 : index
    %c0_26 = arith.constant 0 : index
    %16 = vector.load %arg9[%c0_23, %c0_24, %c17_25, %c0_26] : memref<2x18x18x32xf32, #tpu.memory_space<vmem>>, vector<2x18x1x32xf32>
    tpu.vector_store %arg9[%c0_23, %c0_24, %c17_25, %c0_26], %15 {strides = array<i32>} : memref<2x18x18x32xf32, #tpu.memory_space<vmem>>, vector<2x18x1x32xf32>,
    %17 = vector.shape_cast %8 : vector<512x32xf32> to vector<2x16x16x32xf32>
    %c0_27 = arith.constant 0 : index
    %c1 = arith.constant 1 : index
    %c1_28 = arith.constant 1 : index
    %c0_29 = arith.constant 0 : index
    %18 = vector.load %arg9[%c0_27, %c1, %c1_28, %c0_29] : memref<2x18x18x32xf32, #tpu.memory_space<vmem>>, vector<2x16x16x32xf32>
    tpu.vector_store %arg9[%c0_27, %c1, %c1_28, %c0_29], %17 {strides = array<i32>} : memref<2x18x18x32xf32, #tpu.memory_space<vmem>>, vector<2x16x16x32xf32>,
    %c0_30 = arith.constant 0 : index
    %c0_31 = arith.constant 0 : index
    %c0_32 = arith.constant 0 : index
    %c0_33 = arith.constant 0 : index
    %19 = vector.load %arg9[%c0_30, %c0_31, %c0_32, %c0_33] : memref<2x18x18x32xf32, #tpu.memory_space<vmem>>, vector<2x16x16x32xf32>
    %20 = vector.shape_cast %19 : vector<2x16x16x32xf32> to vector<512x32xf32>
    %c0_34 = arith.constant 0 : index
    %c0_35 = arith.constant 0 : index
    %c1_36 = arith.constant 1 : index
    %c0_37 = arith.constant 0 : index
    %21 = vector.load %arg9[%c0_34, %c0_35, %c1_36, %c0_37] : memref<2x18x18x32xf32, #tpu.memory_space<vmem>>, vector<2x16x16x32xf32>
    %22 = vector.shape_cast %21 : vector<2x16x16x32xf32> to vector<512x32xf32>
    %c0_38 = arith.constant 0 : index
    %c0_39 = arith.constant 0 : index
    %c2 = arith.constant 2 : index
    %c0_40 = arith.constant 0 : index
    %23 = vector.load %arg9[%c0_38, %c0_39, %c2, %c0_40] : memref<2x18x18x32xf32, #tpu.memory_space<vmem>>, vector<2x16x16x32xf32>
    %24 = vector.shape_cast %23 : vector<2x16x16x32xf32> to vector<512x32xf32>
    %c0_41 = arith.constant 0 : index
    %c1_42 = arith.constant 1 : index
    %c0_43 = arith.constant 0 : index
    %c0_44 = arith.constant 0 : index
    %25 = vector.load %arg9[%c0_41, %c1_42, %c0_43, %c0_44] : memref<2x18x18x32xf32, #tpu.memory_space<vmem>>, vector<2x16x16x32xf32>
    %26 = vector.shape_cast %25 : vector<2x16x16x32xf32> to vector<512x32xf32>
    %c0_45 = arith.constant 0 : index
    %c1_46 = arith.constant 1 : index
    %c1_47 = arith.constant 1 : index
    %c0_48 = arith.constant 0 : index
    %27 = vector.load %arg9[%c0_45, %c1_46, %c1_47, %c0_48] : memref<2x18x18x32xf32, #tpu.memory_space<vmem>>, vector<2x16x16x32xf32>
    %28 = vector.shape_cast %27 : vector<2x16x16x32xf32> to vector<512x32xf32>
    %c0_49 = arith.constant 0 : index
    %c1_50 = arith.constant 1 : index
    %c2_51 = arith.constant 2 : index
    %c0_52 = arith.constant 0 : index
    %29 = vector.load %arg9[%c0_49, %c1_50, %c2_51, %c0_52] : memref<2x18x18x32xf32, #tpu.memory_space<vmem>>, vector<2x16x16x32xf32>
    %30 = vector.shape_cast %29 : vector<2x16x16x32xf32> to vector<512x32xf32>
    %c0_53 = arith.constant 0 : index
    %c2_54 = arith.constant 2 : index
    %c0_55 = arith.constant 0 : index
    %c0_56 = arith.constant 0 : index
    %31 = vector.load %arg9[%c0_53, %c2_54, %c0_55, %c0_56] : memref<2x18x18x32xf32, #tpu.memory_space<vmem>>, vector<2x16x16x32xf32>
    %32 = vector.shape_cast %31 : vector<2x16x16x32xf32> to vector<512x32xf32>
    %c0_57 = arith.constant 0 : index
    %c2_58 = arith.constant 2 : index
    %c1_59 = arith.constant 1 : index
    %c0_60 = arith.constant 0 : index
    %33 = vector.load %arg9[%c0_57, %c2_58, %c1_59, %c0_60] : memref<2x18x18x32xf32, #tpu.memory_space<vmem>>, vector<2x16x16x32xf32>
    %34 = vector.shape_cast %33 : vector<2x16x16x32xf32> to vector<512x32xf32>
    %c0_61 = arith.constant 0 : index
    %c2_62 = arith.constant 2 : index
    %c2_63 = arith.constant 2 : index
    %c0_64 = arith.constant 0 : index
    %35 = vector.load %arg9[%c0_61, %c2_62, %c2_63, %c0_64] : memref<2x18x18x32xf32, #tpu.memory_space<vmem>>, vector<2x16x16x32xf32>
    %36 = vector.shape_cast %35 : vector<2x16x16x32xf32> to vector<512x32xf32>
    %37 = tpu.concatenate %20, %22, %24, %26, %28, %30, %32, %34, %36 in 1 : vector<512x32xf32>, vector<512x32xf32>, vector<512x32xf32>, vector<512x32xf32>, vector<512x32xf32>, vector<512x32xf32>, vector<512x32xf32>, vector<512x32xf32>, vector<512x32xf32> -> vector<512x288xf32>
    %c0_65 = arith.constant 0 : index
    %c0_66 = arith.constant 0 : index
    %38 = vector.load %arg4[%c0_65, %c0_66] : memref<288x32xf32, #tpu.memory_space<vmem>>, vector<288x32xf32>
    %cst_67 = arith.constant dense<0.000000e+00> : vector<512x32xf32>
    %39 = tpu.matmul %37, %38, %cst_67 {dimension_numbers = #tpu.dot_dimension_numbers<[1], [0], [0], [1], [0, 0, 1, 1], [], []>} : vector<512x288xf32>, vector<288x32xf32>, vector<512x32xf32> -> vector<512x32xf32>
    %c0_68 = arith.constant 0 : index
    %c0_69 = arith.constant 0 : index
    %40 = vector.load %arg5[%c0_68, %c0_69] : memref<1x32xf32, #tpu.memory_space<vmem>>, vector<1x32xf32>
    %41 = vector.broadcast %40 : vector<1x32xf32> to vector<512x32xf32>
    %42 = arith.addf %39, %41 : vector<512x32xf32>
    %cst_70 = arith.constant 0.000000e+00 : f32
    %43 = vector.broadcast %cst_70 : f32 to vector<512x32xf32>
    %44 = arith.maximumf %42, %43 : vector<512x32xf32>
    %c0_71 = arith.constant 0 : index
    %c0_72 = arith.constant 0 : index
    %45 = vector.load %arg6[%c0_71, %c0_72] : memref<32x128xf32, #tpu.memory_space<vmem>>, vector<32x128xf32>
    %cst_73 = arith.constant dense<0.000000e+00> : vector<512x128xf32>
    %46 = tpu.matmul %44, %45, %cst_73 {dimension_numbers = #tpu.dot_dimension_numbers<[1], [0], [0], [1], [0, 0, 1, 1], [], []>} : vector<512x32xf32>, vector<32x128xf32>, vector<512x128xf32> -> vector<512x128xf32>
    %c0_74 = arith.constant 0 : index
    %c0_75 = arith.constant 0 : index
    %47 = vector.load %arg7[%c0_74, %c0_75] : memref<1x128xf32, #tpu.memory_space<vmem>>, vector<1x128xf32>
    %48 = vector.broadcast %47 : vector<1x128xf32> to vector<512x128xf32>
    %49 = arith.addf %46, %48 : vector<512x128xf32>
    %c0_76 = arith.constant 0 : index
    %c0_77 = arith.constant 0 : index
    %c0_78 = arith.constant 0 : index
    %c0_79 = arith.constant 0 : index
    %50 = vector.load %arg1[%c0_76, %c0_77, %c0_78, %c0_79] : memref<2x16x16x128xf32, #tpu.memory_space<vmem>>, vector<2x16x16x128xf32>
    %51 = vector.shape_cast %50 : vector<2x16x16x128xf32> to vector<512x128xf32>
    %52 = arith.addf %49, %51 : vector<512x128xf32>
    %cst_80 = arith.constant 0.000000e+00 : f32
    %53 = vector.broadcast %cst_80 : f32 to vector<512x128xf32>
    %54 = arith.maximumf %52, %53 : vector<512x128xf32>
    %55 = vector.shape_cast %54 : vector<512x128xf32> to vector<2x16x16x128xf32>
    %c0_81 = arith.constant 0 : index
    %c0_82 = arith.constant 0 : index
    %c0_83 = arith.constant 0 : index
    %c0_84 = arith.constant 0 : index
    %56 = vector.load %arg8[%c0_81, %c0_82, %c0_83, %c0_84] : memref<2x16x16x128xf32, #tpu.memory_space<vmem>>, vector<2x16x16x128xf32>
    tpu.vector_store %arg8[%c0_81, %c0_82, %c0_83, %c0_84], %55 {strides = array<i32>} : memref<2x16x16x128xf32, #tpu.memory_space<vmem>>, vector<2x16x16x128xf32>,
    return
  }
  func.func @transform_0(%arg0: i32) -> (i32, i32, i32, i32) {
    %c0_i32 = arith.constant 0 : i32
    %c0_i32_0 = arith.constant 0 : i32
    %c0_i32_1 = arith.constant 0 : i32
    %c0_i32_2 = arith.constant 0 : i32
    return %arg0, %c0_i32, %c0_i32_0, %c0_i32_1 : i32, i32, i32, i32
  }
  func.func @transform_1(%arg0: i32) -> (i32, i32) {
    %c0_i32 = arith.constant 0 : i32
    %c0_i32_0 = arith.constant 0 : i32
    %c0_i32_1 = arith.constant 0 : i32
    return %c0_i32, %c0_i32_0 : i32, i32
  }
  func.func @transform_2(%arg0: i32) -> (i32, i32) {
    %c0_i32 = arith.constant 0 : i32
    %c0_i32_0 = arith.constant 0 : i32
    %c0_i32_1 = arith.constant 0 : i32
    return %c0_i32, %c0_i32_0 : i32, i32
  }
  func.func @transform_3(%arg0: i32) -> (i32, i32) {
    %c0_i32 = arith.constant 0 : i32
    %c0_i32_0 = arith.constant 0 : i32
    %c0_i32_1 = arith.constant 0 : i32
    return %c0_i32, %c0_i32_0 : i32, i32
  }
  func.func @transform_4(%arg0: i32) -> (i32, i32) {
    %c0_i32 = arith.constant 0 : i32
    %c0_i32_0 = arith.constant 0 : i32
    %c0_i32_1 = arith.constant 0 : i32
    return %c0_i32, %c0_i32_0 : i32, i32
  }
  func.func @transform_5(%arg0: i32) -> (i32, i32) {
    %c0_i32 = arith.constant 0 : i32
    %c0_i32_0 = arith.constant 0 : i32
    %c0_i32_1 = arith.constant 0 : i32
    return %c0_i32, %c0_i32_0 : i32, i32
  }
  func.func @transform_6(%arg0: i32) -> (i32, i32) {
    %c0_i32 = arith.constant 0 : i32
    %c0_i32_0 = arith.constant 0 : i32
    %c0_i32_1 = arith.constant 0 : i32
    return %c0_i32, %c0_i32_0 : i32, i32
  }
  func.func @transform_7(%arg0: i32) -> (i32, i32, i32, i32) {
    %c0_i32 = arith.constant 0 : i32
    %c0_i32_0 = arith.constant 0 : i32
    %c0_i32_1 = arith.constant 0 : i32
    %c0_i32_2 = arith.constant 0 : i32
    return %arg0, %c0_i32, %c0_i32_0, %c0_i32_1 : i32, i32, i32, i32
  }
}

</mosaic_0001>

<bundles_post_ra>
// kernel: tpu_custom_call.1
= control target key start
LH: loop header
LB: loop body
LE: loop exit
PB: predicated region body
PF: predicated region fallthrough
CT: control target
= control target key end

     0   :  { %s10039_s0 = inlined_call_operand.vmem [shape: f32[2,16,16,128], index: 0, kind: input, shape index: {}]   ;;  %s10040_s1 = inlined_call_operand.vmem [shape: f32[128,32], index: 1, kind: input, shape index: {}]   ;;  %s10041_s2 = inlined_call_operand.vmem [shape: f32[1,32], index: 2, kind: input, shape index: {}]   ;;  %s10042_s3 = inlined_call_operand.vmem [shape: f32[288,32], index: 3, kind: input, shape index: {}]   ;;  %s10043_s4 = inlined_call_operand.vmem [shape: f32[1,32], index: 4, kind: input, shape index: {}]   ;;  %s10044_s5 = inlined_call_operand.vmem [shape: f32[32,128], index: 5, kind: input, shape index: {}]   ;;  %s10045_s6 = inlined_call_operand.vmem [shape: f32[1,128], index: 6, kind: input, shape index: {}]   ;;  %s10046_s7 = inlined_call_operand.hbm [shape: f32[2,16,16,128], index: 7, kind: output, shape index: {}]  }
   0x1   :  { %v91_v0 = vld [vmem:[%s10040_s1] sm:$0xff]  ;;  %v92_v1 = vld [vmem:[%s10040_s1 + $0x8] sm:$0xff]  ;;  %v93_v2 = vld [vmem:[%s10040_s1 + $0x10] sm:$0xff] }
   0x2   :  { %v5827_v3 = vpack.c.bf16 %v92_v1, %v91_v0  ;;  %v94_v4 = vld [vmem:[%s10040_s1 + $0x18] sm:$0xff]  ;;  %v95_v6 = vld [vmem:[%s10040_s1 + $0x20] sm:$0xff]  ;;  %v96_v7 = vld [vmem:[%s10040_s1 + $0x28] sm:$0xff] }
   0x3   :  { %v5831_v5 = vpack.c.bf16 %v94_v4, %v93_v2  ;;  %v5835_v8 = vpack.c.bf16 %v96_v7, %v95_v6  ;;  %v27_v9 = vld [vmem:[%s10039_s0] sm:$0xff]  ;;  %v97_v11 = vld [vmem:[%s10040_s1 + $0x30] sm:$0xff]  ;;  %v98_v12 = vld [vmem:[%s10040_s1 + $0x38] sm:$0xff] }
   0x4   :  { %5828 = vmatprep.subr.bf16.mxu0 %v5827_v3  ;;  %5923 = vmatprep.subr.bf16.mxu1 %v5827_v3  ;;  %v59_v10 = vld [vmem:[%s10039_s0 + $0x100] sm:$0xff]  ;;  %v5839_v13 = vpack.c.bf16 %v98_v12, %v97_v11  ;;  %v100_v15 = vld [vmem:[%s10040_s1 + $0x48] sm:$0xff]  ;;  %v101_v17 = vld [vmem:[%s10040_s1 + $0x50] sm:$0xff] }
   0x5   :  { %5830 = vmatpush3.bf16.msra.mxu0 %v5827_v3  ;;  %5931 = vmatpush3.bf16.msra.mxu1 %v5827_v3  ;;  %v99_v14 = vld [vmem:[%s10040_s1 + $0x40] sm:$0xff]  ;;  %v102_v18 = vld [vmem:[%s10040_s1 + $0x58] sm:$0xff]  ;;  %v104_v21 = vld [vmem:[%s10040_s1 + $0x68] sm:$0xff] }
   0x6   :  { %5832 = vmatprep.subr.bf16.mxu0 %v5831_v5  ;;  %5924 = vmatprep.subr.bf16.mxu1 %v5831_v5  ;;  %v5843_v16 = vpack.c.bf16 %v100_v15, %v99_v14  ;;  %v5847_v19 = vpack.c.bf16 %v102_v18, %v101_v17  ;;  %v103_v20 = vld [vmem:[%s10040_s1 + $0x60] sm:$0xff] }
   0x7   :  { %5523 = vmatprep.mubr.f32.mxu0 %v27_v9  ;;  %5571 = vmatprep.mubr.f32.mxu1 %v59_v10  ;;  %v5851_v22 = vpack.c.bf16 %v104_v21, %v103_v20 }
   0x9   :  { %5834 = vmatpush3.bf16.msra.mxu0 %v5831_v5  ;;  %5932 = vmatpush3.bf16.msra.mxu1 %v5831_v5 }
   0xa   :  { %5836 = vmatprep.subr.bf16.mxu0 %v5835_v8  ;;  %5925 = vmatprep.subr.bf16.mxu1 %v5835_v8 }
   0xd   :  { %5838 = vmatpush3.bf16.msra.mxu0 %v5835_v8  ;;  %5933 = vmatpush3.bf16.msra.mxu1 %v5835_v8 }
   0xe   :  { %5840 = vmatprep.subr.bf16.mxu0 %v5839_v13  ;;  %5926 = vmatprep.subr.bf16.mxu1 %v5839_v13 }
  0x11   :  { %5842 = vmatpush3.bf16.msra.mxu0 %v5839_v13  ;;  %5934 = vmatpush3.bf16.msra.mxu1 %v5839_v13 }
  0x12   :  { %5844 = vmatprep.subr.bf16.mxu0 %v5843_v16  ;;  %5927 = vmatprep.subr.bf16.mxu1 %v5843_v16 }
  0x15   :  { %5846 = vmatpush3.bf16.msra.mxu0 %v5843_v16  ;;  %5935 = vmatpush3.bf16.msra.mxu1 %v5843_v16 }
  0x16   :  { %5848 = vmatprep.subr.bf16.mxu0 %v5847_v19  ;;  %5928 = vmatprep.subr.bf16.mxu1 %v5847_v19 }
  0x17   :  { %12 = vsyncpa [#allocation4], 0  ;;  %v105_v23 = vld [vmem:[%s10040_s1 + $0x70] sm:$0xff]  ;;  %v106_v24 = vld [vmem:[%s10040_s1 + $0x78] sm:$0xff]  ;;  %vm563_vm0 = vcmask 261120   ;;  %vm566_vm1 = vcmask 254976  }
  0x18   :  { %v5855_v25 = vpack.c.bf16 %v106_v24, %v105_v23  ;;  %v28_v26 = vld [vmem:[%s10039_s0 + $0x8] sm:$0xff]  ;;  %v29_v28 = vld [vmem:[%s10039_s0 + $0x10] sm:$0xff]  ;;  %v30_v30 = vld [vmem:[%s10039_s0 + $0x18] sm:$0xff]  ;;  %v6955_v8 = vmov 0.0   ;;  %vm578_vm2 = vcmask 253952   ;;  %s6956_s14 = smov 32  }
  0x19   :  { %5850 = vmatpush3.bf16.msra.mxu0 %v5847_v19  ;;  %5936 = vmatpush3.bf16.msra.mxu1 %v5847_v19  ;;  %v60_v27 = vld [vmem:[%s10039_s0 + $0x108] sm:$0xff]  ;;  %v61_v29 = vld [vmem:[%s10039_s0 + $0x110] sm:$0xff]  ;;  %v62_v31 = vld [vmem:[%s10039_s0 + $0x118] sm:$0xff]  ;;  %564 = vst.msk [vmem:[#allocation2] sm:$0xff] %vm563_vm0, %v6955_v8  ;;  %s6958_s17 = smov 96   ;;  %s6959_s1 = smov 64  }
  0x1a   :  { %5852 = vmatprep.subr.bf16.mxu0 %v5851_v22  ;;  %5929 = vmatprep.subr.bf16.mxu1 %v5851_v22  ;;  %v31_v32 = vld [vmem:[%s10039_s0 + $0x20] sm:$0xff]  ;;  %v32_v34 = vld [vmem:[%s10039_s0 + $0x28] sm:$0xff]  ;;  %v33_v36 = vld [vmem:[%s10039_s0 + $0x30] sm:$0xff]  ;;  %565 = vst.msk [vmem:[#allocation2 + $0x8] sm:$0xff] %vm563_vm0, %v6955_v8  ;;  %vm2893_vm3 = vcmask 523264   ;;  %vm2958_vm4 = vcmask 785408  }
  0x1b   :  { %v63_v33 = vld [vmem:[%s10039_s0 + $0x120] sm:$0xff]  ;;  %v64_v35 = vld [vmem:[%s10039_s0 + $0x128] sm:$0xff]  ;;  %v65_v37 = vld [vmem:[%s10039_s0 + $0x130] sm:$0xff]  ;;  %567 = vst.msk [vmem:[#allocation2 + $0x10] sm:$0x3] %vm566_vm1, %v6955_v8  ;;  %s6960_s8 = smov [#allocation3]  }
  0x1c   :  { %v34_v38 = vld [vmem:[%s10039_s0 + $0x38] sm:$0xff]  ;;  %v35_v40 = vld [vmem:[%s10039_s0 + $0x40] sm:$0xff]  ;;  %v36_v42 = vld [vmem:[%s10039_s0 + $0x48] sm:$0xff]  ;;  %568 = vst.msk [vmem:[#allocation2 + $0x1b0] sm:$0xff] %vm563_vm0, %v6955_v8  ;;  %s5133_s9 = sshll.u32 %s6960_s8, 4  ;;  %s5134_s9 = int_to_ptr.vmem [resolvable:$true] %s5133_s9 }
  0x1d   :  { %5854 = vmatpush3.bf16.msra.mxu0 %v5851_v22  ;;  %5937 = vmatpush3.bf16.msra.mxu1 %v5851_v22  ;;  %v66_v39 = vld [vmem:[%s10039_s0 + $0x138] sm:$0xff]  ;;  %v67_v41 = vld [vmem:[%s10039_s0 + $0x140] sm:$0xff]  ;;  %v68_v43 = vld [vmem:[%s10039_s0 + $0x148] sm:$0xff]  ;;  %569 = vst.msk [vmem:[#allocation2 + $0x1b8] sm:$0xff] %vm563_vm0, %v6955_v8  ;;  %s6931_s10 = scalar_lea.vmem %s5134_s9, 8192  ;;  %p6936_p1 = scmp.lt.s32.totalorder %s5134_s9, %s5134_s9 }
  0x1e   :  { %5856 = vmatprep.subr.bf16.mxu0 %v5855_v25  ;;  %5930 = vmatprep.subr.bf16.mxu1 %v5855_v25  ;;  %v37_v44 = vld [vmem:[%s10039_s0 + $0x50] sm:$0xff]  ;;  %v38_v46 = vld [vmem:[%s10039_s0 + $0x58] sm:$0xff]  ;;  %v39_v48 = vld [vmem:[%s10039_s0 + $0x60] sm:$0xff]  ;;  %570 = vst.msk [vmem:[#allocation2 + $0x1c0] sm:$0x3] %vm566_vm1, %v6955_v8  ;;  %p6932_p0 = scmp.ne.s32.totalorder %s5134_s9, %s6931_s10  ;;  %p6937_p2 = scmp.lt.s32.totalorder %s6931_s10, %s6931_s10 }
  0x1f   :  { %v69_v45 = vld [vmem:[%s10039_s0 + $0x150] sm:$0xff]  ;;  %v70_v47 = vld [vmem:[%s10039_s0 + $0x158] sm:$0xff]  ;;  %v71_v49 = vld [vmem:[%s10039_s0 + $0x160] sm:$0xff]  ;;  %572 = vst.msk [vmem:[#allocation2 + $0x198] sm:$0xff] %vm563_vm0, %v6955_v8 }
  0x20   :  { %v40_v50 = vld [vmem:[%s10039_s0 + $0x68] sm:$0xff]  ;;  %v41_v52 = vld [vmem:[%s10039_s0 + $0x70] sm:$0xff]  ;;  %v42_v54 = vld [vmem:[%s10039_s0 + $0x78] sm:$0xff]  ;;  %573 = vst.msk [vmem:[#allocation2 + $0x1a0] sm:$0xff] %vm563_vm0, %v6955_v8  ;;  %p6938_p3 = por %p6937_p2, %p6936_p1 }
  0x21   :  { %5858 = vmatpush3.bf16.msra.mxu0 %v5855_v25  ;;  %5938 = vmatpush3.bf16.msra.mxu1 %v5855_v25  ;;  %v72_v51 = vld [vmem:[%s10039_s0 + $0x168] sm:$0xff]  ;;  %v73_v53 = vld [vmem:[%s10039_s0 + $0x170] sm:$0xff]  ;;  %v74_v55 = vld [vmem:[%s10039_s0 + $0x178] sm:$0xff]  ;;  %574 = vst.msk [vmem:[#allocation2 + $0x1a8] sm:$0x3] %vm566_vm1, %v6955_v8 }
  0x22   :  { %v43_v56 = vld [vmem:[%s10039_s0 + $0x80] sm:$0xff]  ;;  %v44_v57 = vld [vmem:[%s10039_s0 + $0x88] sm:$0xff]  ;;  %v45_v58 = vld [vmem:[%s10039_s0 + $0x90] sm:$0xff]  ;;  %575 = vst.msk [vmem:[#allocation2 + $0x348] sm:$0xff] %vm563_vm0, %v6955_v8  ;;  %p6939_p4 = pnand %p6938_p3, %p6932_p0 }
  0x23   :  { %v46_v59 = vld [vmem:[%s10039_s0 + $0x98] sm:$0xff]  ;;  %v47_v60 = vld [vmem:[%s10039_s0 + $0xa0] sm:$0xff]  ;;  %v48_v61 = vld [vmem:[%s10039_s0 + $0xa8] sm:$0xff]  ;;  %576 = vst.msk [vmem:[#allocation2 + $0x350] sm:$0xff] %vm563_vm0, %v6955_v8 }
  0x24   :  { %5524 = vmatmul.mubr.f32.vlgmr.msra.gmra.mrb[0].mxu0 %v28_v26  ;;  %5572 = vmatmul.mubr.f32.vlgmr.msra.gmra.mrb[0].mxu1 %v60_v27  ;;  %v49_v62 = vld [vmem:[%s10039_s0 + $0xb0] sm:$0xff]  ;;  %v50_v63 = vld [vmem:[%s10039_s0 + $0xb8] sm:$0xff]  ;;  %v51_v0 = vld [vmem:[%s10039_s0 + $0xc0] sm:$0xff]  ;;  %577 = vst.msk [vmem:[#allocation2 + $0x358] sm:$0x3] %vm566_vm1, %v6955_v8 }
  0x25   :  { %5526 = vmatprep.mubr.f32.mxu0 %v29_v28  ;;  %5574 = vmatprep.mubr.f32.mxu1 %v61_v29  ;;  %v52_v1 = vld [vmem:[%s10039_s0 + $0xc8] sm:$0xff]  ;;  %v53_v2 = vld [vmem:[%s10039_s0 + $0xd0] sm:$0xff]  ;;  %v54_v3 = vld [vmem:[%s10039_s0 + $0xd8] sm:$0xff]  ;;  %615 = vst.msk [vmem:[#allocation2 + $0x11] sm:$0x1] %vm578_vm2, %v6955_v8  ;;  %v6957_v28 = vmov 0.0|0.0  }
  0x26   :  { %v55_v4 = vld [vmem:[%s10039_s0 + $0xe0] sm:$0xff]  ;;  %v56_v5 = vld [vmem:[%s10039_s0 + $0xe8] sm:$0xff]  ;;  %v57_v6 = vld [vmem:[%s10039_s0 + $0xf0] sm:$0xff]  ;;  %579 = vst.msk [vmem:[#allocation2] sm:$0x1] %vm578_vm2, %v6955_v8  ;;  %5859 = vmatprep.subr.bf16.mxu1 %v6957_v28 }
  0x27   :  { %v58_v7 = vld [vmem:[%s10039_s0 + $0xf8] sm:$0xff]  ;;  %580 = vst.msk [vmem:[#allocation2 + $0x18] sm:$0x1] %vm578_vm2, %v6955_v8  ;;  %581 = vst.msk [vmem:[#allocation2 + $0x30] sm:$0x1] %vm578_vm2, %v6955_v8  ;;  %v3247_v9 = vld [vmem:[%s10042_s3 + $0x100] sm:$0xff] }
  0x28   :  { %5527 = vmatmul.mubr.f32.gmra.mrb[2].mxu0 %v30_v30  ;;  %5575 = vmatmul.mubr.f32.gmra.mrb[2].mxu1 %v62_v31  ;;  %582 = vst.msk [vmem:[#allocation2 + $0x48] sm:$0x1] %vm578_vm2, %v6955_v8  ;;  %583 = vst.msk [vmem:[#allocation2 + $0x60] sm:$0x1] %vm578_vm2, %v6955_v8  ;;  %v3248_v10 = vld [vmem:[%s10042_s3 + $0x108] sm:$0xff]  ;;  %v3249_v15 = vld [vmem:[%s10042_s3 + $0x110] sm:$0xff] }
  0x29   :  { %5529 = vmatprep.mubr.f32.mxu0 %v31_v32  ;;  %5577 = vmatprep.mubr.f32.mxu1 %v63_v33  ;;  %584 = vst.msk [vmem:[#allocation2 + $0x78] sm:$0x1] %vm578_vm2, %v6955_v8  ;;  %585 = vst.msk [vmem:[#allocation2 + $0x90] sm:$0x1] %vm578_vm2, %v6955_v8  ;;  %v5907_v11 = vpack.c.bf16 %v3248_v10, %v3247_v9  ;;  %v780_v12 = vld [vmem:[#allocation2 + $0x1] sm:$0xff]  ;;  %v781_v13 = vld [vmem:[#allocation2 + $0x9] sm:$0xff] }
  0x2a   :  { %586 = vst.msk [vmem:[#allocation2 + $0xa8] sm:$0x1] %vm578_vm2, %v6955_v8  ;;  %587 = vst.msk [vmem:[#allocation2 + $0xc0] sm:$0x1] %vm578_vm2, %v6955_v8  ;;  %v5947_v14 = vpack.i.bf16 %v781_v13, %v780_v12  ;;  %v3250_v16 = vld [vmem:[%s10042_s3 + $0x118] sm:$0xff]  ;;  %v75_v18 = vld [vmem:[%s10039_s0 + $0x180] sm:$0xff] }
  0x2b   :  { %588 = vst.msk [vmem:[#allocation2 + $0xd8] sm:$0x1] %vm578_vm2, %v6955_v8  ;;  %589 = vst.msk [vmem:[#allocation2 + $0xf0] sm:$0x1] %vm578_vm2, %v6955_v8  ;;  %5908 = vmatprep.subr.bf16.mxu0 %v5907_v11  ;;  %v5911_v17 = vpack.c.bf16 %v3250_v16, %v3249_v15  ;;  %v76_v19 = vld [vmem:[%s10039_s0 + $0x188] sm:$0xff]  ;;  %v77_v20 = vld [vmem:[%s10039_s0 + $0x190] sm:$0xff] }
  0x2c   :  { %5530 = vmatmul.mubr.f32.gmra.mrb[4].mxu0 %v32_v34  ;;  %5578 = vmatmul.mubr.f32.gmra.mrb[4].mxu1 %v64_v35  ;;  %590 = vst.msk [vmem:[#allocation2 + $0x108] sm:$0x1] %vm578_vm2, %v6955_v8  ;;  %591 = vst.msk [vmem:[#allocation2 + $0x120] sm:$0x1] %vm578_vm2, %v6955_v8  ;;  %v78_v21 = vld [vmem:[%s10039_s0 + $0x198] sm:$0xff]  ;;  %v79_v22 = vld [vmem:[%s10039_s0 + $0x1a0] sm:$0xff] }
  0x2d   :  { %5532 = vmatprep.mubr.f32.mxu0 %v33_v36  ;;  %5580 = vmatprep.mubr.f32.mxu1 %v65_v37  ;;  %592 = vst.msk [vmem:[#allocation2 + $0x138] sm:$0x1] %vm578_vm2, %v6955_v8  ;;  %593 = vst.msk [vmem:[#allocation2 + $0x150] sm:$0x1] %vm578_vm2, %v6955_v8  ;;  %v80_v23 = vld [vmem:[%s10039_s0 + $0x1a8] sm:$0xff]  ;;  %v81_v24 = vld [vmem:[%s10039_s0 + $0x1b0] sm:$0xff] }
  0x2e   :  { %594 = vst.msk [vmem:[#allocation2 + $0x168] sm:$0x1] %vm578_vm2, %v6955_v8  ;;  %595 = vst.msk [vmem:[#allocation2 + $0x180] sm:$0x1] %vm578_vm2, %v6955_v8  ;;  %5948 = vrot.lane.b32.xlu0 %v5947_v14, %s6956_s14  ;;  %5910 = vmatpush3.bf16.msra.mxu0 %v5907_v11  ;;  %v82_v25 = vld [vmem:[%s10039_s0 + $0x1b8] sm:$0xff]  ;;  %v83_v26 = vld [vmem:[%s10039_s0 + $0x1c0] sm:$0xff] }
  0x2f   :  { %598 = vst.msk [vmem:[#allocation2 + $0x1c8] sm:$0x1] %vm578_vm2, %v6955_v8  ;;  %599 = vst.msk [vmem:[#allocation2 + $0x1e0] sm:$0x1] %vm578_vm2, %v6955_v8  ;;  %5912 = vmatprep.subr.bf16.mxu0 %v5911_v17  ;;  %v84_v27 = vld [vmem:[%s10039_s0 + $0x1c8] sm:$0xff]  ;;  %v3215_v29 = vld [vmem:[%s10042_s3] sm:$0xff] }
  0x30   :  { %5533 = vmatmul.mubr.f32.gmra.mrb[6].mxu0 %v34_v38  ;;  %5581 = vmatmul.mubr.f32.gmra.mrb[6].mxu1 %v66_v39  ;;  %600 = vst.msk [vmem:[#allocation2 + $0x1f8] sm:$0x1] %vm578_vm2, %v6955_v8  ;;  %601 = vst.msk [vmem:[#allocation2 + $0x210] sm:$0x1] %vm578_vm2, %v6955_v8  ;;  %v3216_v30 = vld [vmem:[%s10042_s3 + $0x8] sm:$0xff]  ;;  %v3217_v32 = vld [vmem:[%s10042_s3 + $0x10] sm:$0xff] }
  0x31   :  { %5535 = vmatprep.mubr.f32.mxu0 %v35_v40  ;;  %5583 = vmatprep.mubr.f32.mxu1 %v67_v41  ;;  %602 = vst.msk [vmem:[#allocation2 + $0x228] sm:$0x1] %vm578_vm2, %v6955_v8  ;;  %603 = vst.msk [vmem:[#allocation2 + $0x240] sm:$0x1] %vm578_vm2, %v6955_v8  ;;  %v5860_v31 = vpack.c.bf16 %v3216_v30, %v3215_v29  ;;  %v3218_v33 = vld [vmem:[%s10042_s3 + $0x18] sm:$0xff]  ;;  %v3219_v35 = vld [vmem:[%s10042_s3 + $0x20] sm:$0xff] }
  0x32   :  { %604 = vst.msk [vmem:[#allocation2 + $0x258] sm:$0x1] %vm578_vm2, %v6955_v8  ;;  %605 = vst.msk [vmem:[#allocation2 + $0x270] sm:$0x1] %vm578_vm2, %v6955_v8  ;;  %5914 = vmatpush3.bf16.msra.mxu0 %v5911_v17  ;;  %v5863_v34 = vpack.c.bf16 %v3218_v33, %v3217_v32  ;;  %v3220_v36 = vld [vmem:[%s10042_s3 + $0x28] sm:$0xff]  ;;  %v85_v38 = vld [vmem:[%s10039_s0 + $0x1d0] sm:$0xff] }
  0x33   :  { %606 = vst.msk [vmem:[#allocation2 + $0x288] sm:$0x1] %vm578_vm2, %v6955_v8  ;;  %607 = vst.msk [vmem:[#allocation2 + $0x2a0] sm:$0x1] %vm578_vm2, %v6955_v8  ;;  %5861 = vmatpush1.bf16.msra.mxu1 %v5860_v31  ;;  %v5866_v37 = vpack.c.bf16 %v3220_v36, %v3219_v35  ;;  %v86_v39 = vld [vmem:[%s10039_s0 + $0x1d8] sm:$0xff]  ;;  %v3221_v40 = vld [vmem:[%s10042_s3 + $0x30] sm:$0xff] }
  0x34   :  { %5536 = vmatmul.mubr.f32.gmra.mrb[8].mxu0 %v36_v42  ;;  %5584 = vmatmul.mubr.f32.gmra.mrb[8].mxu1 %v68_v43  ;;  %608 = vst.msk [vmem:[#allocation2 + $0x2b8] sm:$0x1] %vm578_vm2, %v6955_v8  ;;  %609 = vst.msk [vmem:[#allocation2 + $0x2d0] sm:$0x1] %vm578_vm2, %v6955_v8  ;;  %v3222_v41 = vld [vmem:[%s10042_s3 + $0x38] sm:$0xff]  ;;  %v3223_v43 = vld [vmem:[%s10042_s3 + $0x40] sm:$0xff] }
  0x35   :  { %5538 = vmatprep.mubr.f32.mxu0 %v37_v44  ;;  %5586 = vmatprep.mubr.f32.mxu1 %v69_v45  ;;  %610 = vst.msk [vmem:[#allocation2 + $0x2e8] sm:$0x1] %vm578_vm2, %v6955_v8  ;;  %611 = vst.msk [vmem:[#allocation2 + $0x300] sm:$0x1] %vm578_vm2, %v6955_v8  ;;  %v5869_v42 = vpack.c.bf16 %v3222_v41, %v3221_v40  ;;  %v3224_v44 = vld [vmem:[%s10042_s3 + $0x48] sm:$0xff]  ;;  %v3237_v15 = vld [vmem:[%s10042_s3 + $0xb0] sm:$0xff] }
  0x36   :  { %612 = vst.msk [vmem:[#allocation2 + $0x318] sm:$0x1] %vm578_vm2, %v6955_v8  ;;  %613 = vst.msk [vmem:[#allocation2 + $0x330] sm:$0x1] %vm578_vm2, %v6955_v8  ;;  %5862 = vmatprep.subr.bf16.mxu1 %v6957_v28  ;;  %v5872_v45 = vpack.c.bf16 %v3224_v44, %v3223_v43  ;;  %v3238_v16 = vld [vmem:[%s10042_s3 + $0xb8] sm:$0xff]  ;;  %v3239_v31 = vld [vmem:[%s10042_s3 + $0xc0] sm:$0xff] }
  0x37   :  { %616 = vst.msk [vmem:[#allocation2 + $0x29] sm:$0x1] %vm578_vm2, %v6955_v8  ;;  %617 = vst.msk [vmem:[#allocation2 + $0x41] sm:$0x1] %vm578_vm2, %v6955_v8  ;;  %5864 = vmatpush1.bf16.msra.mxu1 %v5863_v34  ;;  %v3240_v32 = vld [vmem:[%s10042_s3 + $0xc8] sm:$0xff]  ;;  %v813_v44 = vld [vmem:[#allocation2 + $0x1b9] sm:$0xff] }
  0x38   :  { %5539 = vmatmul.mubr.f32.gmra.mrb[10].mxu0 %v38_v46  ;;  %5587 = vmatmul.mubr.f32.gmra.mrb[10].mxu1 %v70_v47  ;;  %618 = vst.msk [vmem:[#allocation2 + $0x59] sm:$0x1] %vm578_vm2, %v6955_v8  ;;  %619 = vst.msk [vmem:[#allocation2 + $0x71] sm:$0x1] %vm578_vm2, %v6955_v8  ;;  %v3225_v46 = vld [vmem:[%s10042_s3 + $0x50] sm:$0xff]  ;;  %v3226_v47 = vld [vmem:[%s10042_s3 + $0x58] sm:$0xff] }
  0x39   :  { %5541 = vmatprep.mubr.f32.mxu0 %v39_v48  ;;  %5589 = vmatprep.mubr.f32.mxu1 %v71_v49  ;;  %620 = vst.msk [vmem:[#allocation2 + $0x89] sm:$0x1] %vm578_vm2, %v6955_v8  ;;  %621 = vst.msk [vmem:[#allocation2 + $0xa1] sm:$0x1] %vm578_vm2, %v6955_v8  ;;  %v5875_v48 = vpack.c.bf16 %v3226_v47, %v3225_v46  ;;  %v87_v49 = vld [vmem:[%s10039_s0 + $0x1e0] sm:$0xff]  ;;  %v3241_v47 = vld [vmem:[%s10042_s3 + $0xd0] sm:$0xff] }
  0x3a   :  { %622 = vst.msk [vmem:[#allocation2 + $0xb9] sm:$0x1] %vm578_vm2, %v6955_v8  ;;  %623 = vst.msk [vmem:[#allocation2 + $0xd1] sm:$0x1] %vm578_vm2, %v6955_v8  ;;  %5865 = vmatprep.subr.bf16.mxu1 %v6957_v28 }
  0x3b   :  { %624 = vst.msk [vmem:[#allocation2 + $0xe9] sm:$0x1] %vm578_vm2, %v6955_v8  ;;  %625 = vst.msk [vmem:[#allocation2 + $0x101] sm:$0x1] %vm578_vm2, %v6955_v8  ;;  %5867 = vmatpush1.bf16.msra.mxu1 %v5866_v37  ;;  %v5896_v37 = vpack.c.bf16 %v3240_v32, %v3239_v31 }
  0x3c   :  { %5542 = vmatmul.mubr.f32.gmra.mrb[12].mxu0 %v40_v50  ;;  %5590 = vmatmul.mubr.f32.gmra.mrb[12].mxu1 %v72_v51  ;;  %626 = vst.msk [vmem:[#allocation2 + $0x119] sm:$0x1] %vm578_vm2, %v6955_v8  ;;  %627 = vst.msk [vmem:[#allocation2 + $0x131] sm:$0x1] %vm578_vm2, %v6955_v8  ;;  %v88_v50 = vld [vmem:[%s10039_s0 + $0x1e8] sm:$0xff]  ;;  %v3227_v51 = vld [vmem:[%s10042_s3 + $0x60] sm:$0xff] }
  0x3d   :  { %5544 = vmatprep.mubr.f32.mxu0 %v41_v52  ;;  %5592 = vmatprep.mubr.f32.mxu1 %v73_v53  ;;  %628 = vst.msk [vmem:[#allocation2 + $0x149] sm:$0x1] %vm578_vm2, %v6955_v8  ;;  %629 = vst.msk [vmem:[#allocation2 + $0x161] sm:$0x1] %vm578_vm2, %v6955_v8  ;;  %v3228_v52 = vld [vmem:[%s10042_s3 + $0x68] sm:$0xff] }
  0x3e   :  { %630 = vst.msk [vmem:[#allocation2 + $0x179] sm:$0x1] %vm578_vm2, %v6955_v8  ;;  %631 = vst.msk [vmem:[#allocation2 + $0x191] sm:$0x1] %vm578_vm2, %v6955_v8  ;;  %5868 = vmatprep.subr.bf16.mxu1 %v6957_v28  ;;  %v5878_v53 = vpack.c.bf16 %v3228_v52, %v3227_v51 }
  0x3f   :  { %634 = vst.msk [vmem:[#allocation2 + $0x1d9] sm:$0x1] %vm578_vm2, %v6955_v8  ;;  %635 = vst.msk [vmem:[#allocation2 + $0x1f1] sm:$0x1] %vm578_vm2, %v6955_v8  ;;  %5870 = vmatpush1.bf16.msra.mxu1 %v5869_v42 }
  0x40   :  { %5545 = vmatmul.mubr.f32.gmra.mrb[14].mxu0 %v42_v54  ;;  %5593 = vmatmul.mubr.f32.gmra.mrb[14].mxu1 %v74_v55  ;;  %636 = vst.msk [vmem:[#allocation2 + $0x209] sm:$0x1] %vm578_vm2, %v6955_v8  ;;  %637 = vst.msk [vmem:[#allocation2 + $0x221] sm:$0x1] %vm578_vm2, %v6955_v8  ;;  %v3229_v54 = vld [vmem:[%s10042_s3 + $0x70] sm:$0xff]  ;;  %v3230_v55 = vld [vmem:[%s10042_s3 + $0x78] sm:$0xff] }
  0x41   :  { %5547 = vmatprep.mubr.f32.mxu0 %v43_v56  ;;  %638 = vst.msk [vmem:[#allocation2 + $0x239] sm:$0x1] %vm578_vm2, %v6955_v8  ;;  %639 = vst.msk [vmem:[#allocation2 + $0x251] sm:$0x1] %vm578_vm2, %v6955_v8  ;;  %5595 = vmatprep.mubr.f32.mxu1 %v75_v18  ;;  %v5881_v56 = vpack.c.bf16 %v3230_v55, %v3229_v54 }
  0x42   :  { %640 = vst.msk [vmem:[#allocation2 + $0x269] sm:$0x1] %vm578_vm2, %v6955_v8  ;;  %641 = vst.msk [vmem:[#allocation2 + $0x281] sm:$0x1] %vm578_vm2, %v6955_v8  ;;  %5871 = vmatprep.subr.bf16.mxu1 %v6957_v28 }
  0x43   :  { %642 = vst.msk [vmem:[#allocation2 + $0x299] sm:$0x1] %vm578_vm2, %v6955_v8  ;;  %643 = vst.msk [vmem:[#allocation2 + $0x2b1] sm:$0x1] %vm578_vm2, %v6955_v8  ;;  %5873 = vmatpush1.bf16.msra.mxu1 %v5872_v45 }
  0x44   :  { %5548 = vmatmul.mubr.f32.gmra.mrb[16].mxu0 %v44_v57  ;;  %644 = vst.msk [vmem:[#allocation2 + $0x2c9] sm:$0x1] %vm578_vm2, %v6955_v8  ;;  %645 = vst.msk [vmem:[#allocation2 + $0x2e1] sm:$0x1] %vm578_vm2, %v6955_v8  ;;  %5596 = vmatmul.mubr.f32.gmra.mrb[16].mxu1 %v76_v19  ;;  %v3231_v57 = vld [vmem:[%s10042_s3 + $0x80] sm:$0xff] }
  0x45   :  { %5550 = vmatprep.mubr.f32.mxu0 %v45_v58  ;;  %646 = vst.msk [vmem:[#allocation2 + $0x2f9] sm:$0x1] %vm578_vm2, %v6955_v8  ;;  %647 = vst.msk [vmem:[#allocation2 + $0x311] sm:$0x1] %vm578_vm2, %v6955_v8  ;;  %5598 = vmatprep.mubr.f32.mxu1 %v77_v20  ;;  %v3232_v58 = vld [vmem:[%s10042_s3 + $0x88] sm:$0xff] }
  0x46   :  { %648 = vst.msk [vmem:[#allocation2 + $0x329] sm:$0x1] %vm578_vm2, %v6955_v8  ;;  %649 = vst.msk [vmem:[#allocation2 + $0x341] sm:$0x1] %vm578_vm2, %v6955_v8  ;;  %5874 = vmatprep.subr.bf16.mxu1 %v6957_v28 }
  0x47   :  { %596 = vst.msk [vmem:[#allocation2 + $0x198] sm:$0x1] %vm578_vm2, %v6955_v8  ;;  %597 = vst.msk [vmem:[#allocation2 + $0x1b0] sm:$0x1] %vm578_vm2, %v6955_v8  ;;  %5876 = vmatpush1.bf16.msra.mxu1 %v5875_v48  ;;  %v3242_v48 = vld [vmem:[%s10042_s3 + $0xd8] sm:$0xff] }
  0x48   :  { %5551 = vmatmul.mubr.f32.gmra.mrb[18].mxu0 %v46_v59  ;;  %614 = vst.msk [vmem:[#allocation2 + $0x348] sm:$0x1] %vm578_vm2, %v6955_v8  ;;  %632 = vst.msk [vmem:[#allocation2 + $0x1a9] sm:$0x1] %vm578_vm2, %v6955_v8  ;;  %5599 = vmatmul.mubr.f32.gmra.mrb[18].mxu1 %v78_v21  ;;  %v5884_v59 = vpack.c.bf16 %v3232_v58, %v3231_v57  ;;  %v5893_v21 = vpack.c.bf16 %v3238_v16, %v3237_v15 }
  0x49   :  { %5553 = vmatprep.mubr.f32.mxu0 %v47_v60  ;;  %633 = vst.msk [vmem:[#allocation2 + $0x1c1] sm:$0x1] %vm578_vm2, %v6955_v8  ;;  %650 = vst.msk [vmem:[#allocation2 + $0x359] sm:$0x1] %vm578_vm2, %v6955_v8  ;;  %5601 = vmatprep.mubr.f32.mxu1 %v79_v22  ;;  %v89_v60 = vld [vmem:[%s10039_s0 + $0x1f0] sm:$0xff]  ;;  %v5899_v55 = vpack.c.bf16 %v3242_v48, %v3241_v47 }
  0x4a   :  { %5877 = vmatprep.subr.bf16.mxu1 %v6957_v28 }
  0x4b   :  { %5879 = vmatpush1.bf16.msra.mxu1 %v5878_v53 }
  0x4c   :  { %5554 = vmatmul.mubr.f32.gmra.mrb[20].mxu0 %v48_v61  ;;  %5602 = vmatmul.mubr.f32.gmra.mrb[20].mxu1 %v80_v23  ;;  %v90_v61 = vld [vmem:[%s10039_s0 + $0x1f8] sm:$0xff] }
  0x4d   :  { %5556 = vmatprep.mubr.f32.mxu0 %v49_v62  ;;  %5604 = vmatprep.mubr.f32.mxu1 %v81_v24  ;;  %v3233_v62 = vld [vmem:[%s10042_s3 + $0x90] sm:$0xff] }
  0x4e   :  { %5880 = vmatprep.subr.bf16.mxu1 %v6957_v28 }
  0x4f   :  { %5882 = vmatpush1.bf16.msra.mxu1 %v5881_v56 }
  0x50   :  { %5557 = vmatmul.mubr.f32.gmra.mrb[22].mxu0 %v50_v63  ;;  %5605 = vmatmul.mubr.f32.gmra.mrb[22].mxu1 %v82_v25  ;;  %v3234_v63 = vld [vmem:[%s10042_s3 + $0x98] sm:$0xff] }
  0x51   :  { %5559 = vmatprep.mubr.f32.mxu0 %v51_v0  ;;  %5607 = vmatprep.mubr.f32.mxu1 %v83_v26  ;;  %v5887_v0 = vpack.c.bf16 %v3234_v63, %v3233_v62 }
  0x52   :  { %5883 = vmatprep.subr.bf16.mxu1 %v6957_v28 }
  0x53   :  { %5885 = vmatpush1.bf16.msra.mxu1 %v5884_v59 }
  0x54   :  { %5560 = vmatmul.mubr.f32.gmra.mrb[24].mxu0 %v52_v1  ;;  %5608 = vmatmul.mubr.f32.gmra.mrb[24].mxu1 %v84_v27  ;;  %v7493_v1 = vld [vmem:[%s10041_s2] ss:$0 sm:$0xff] }
  0x55   :  { %5562 = vmatprep.mubr.f32.mxu0 %v53_v2  ;;  %5610 = vmatprep.mubr.f32.mxu1 %v85_v38  ;;  %v3235_v2 = vld [vmem:[%s10042_s3 + $0xa0] sm:$0xff] }
  0x56   :  { %5886 = vmatprep.subr.bf16.mxu1 %v6957_v28 }
  0x57   :  { %5888 = vmatpush1.bf16.msra.mxu1 %v5887_v0 }
  0x58   :  { %5563 = vmatmul.mubr.f32.gmra.mrb[26].mxu0 %v54_v3  ;;  %5611 = vmatmul.mubr.f32.gmra.mrb[26].mxu1 %v86_v39  ;;  %v3236_v3 = vld [vmem:[%s10042_s3 + $0xa8] sm:$0xff] }
  0x59   :  { %5565 = vmatprep.mubr.f32.mxu0 %v55_v4  ;;  %5613 = vmatprep.mubr.f32.mxu1 %v87_v49 }
  0x5a   :  { %5889 = vmatprep.subr.bf16.mxu1 %v6957_v28 }
  0x5c   :  { %5566 = vmatmul.mubr.f32.gmra.mrb[28].mxu0 %v56_v5  ;;  %5614 = vmatmul.mubr.f32.gmra.mrb[28].mxu1 %v88_v50 }
  0x5d   :  { %5568 = vmatprep.mubr.f32.mxu0 %v57_v6  ;;  %5616 = vmatprep.mubr.f32.mxu1 %v89_v60  ;;  %v5890_v6 = vpack.c.bf16 %v3236_v3, %v3235_v2 }
  0x5f   :  { %5891 = vmatpush1.bf16.msra.mxu1 %v5890_v6 }
  0x60   :  { %5569 = vmatmul.mubr.f32.gmra.mrb[30].mxu0 %v58_v7  ;;  %5617 = vmatmul.mubr.f32.gmra.mrb[30].mxu1 %v90_v61 }
  0x61   :  { %5892 = vmatprep.subr.bf16.mxu1 %v6957_v28 }
  0x63   :  { %5894 = vmatpush1.bf16.msra.mxu1 %v5893_v21 }
  0x64   :  { %5895 = vmatprep.subr.bf16.mxu1 %v6957_v28 }
  0x67   :  { %5897 = vmatpush1.bf16.msra.mxu1 %v5896_v37 }
  0x68   :  { %5898 = vmatprep.subr.bf16.mxu1 %v6957_v28 }
  0x6b   :  { %5900 = vmatpush1.bf16.msra.mxu1 %v5899_v55 }
  0x6c   :  { %5901 = vmatprep.subr.bf16.mxu1 %v6957_v28 }
  0xf7   :  { %v5525_v4 = vpop.f32.mrb[0].mxu0  ;;  %v5573_v5 = vpop.f32.mrb[0].mxu1 }
  0xf8   :  { %v186_v7 = vadd.f32 %v5525_v4, %v7493_v1  ;;  %v346_v8 = vadd.f32 %v5573_v5, %v7493_v1  ;;  %v180_v9 = vpop.f32.mrb[1].mxu0  ;;  %v340_v10 = vpop.f32.mrb[1].mxu1 }
  0xf9   :  { %v181_v11 = vadd.f32 %v7493_v1, %v180_v9  ;;  %v341_v12 = vadd.f32 %v7493_v1, %v340_v10 }
  0xfa   :  { %v500_v13 = vmax.f32 %v186_v7, 0.0  ;;  %v532_v14 = vmax.f32 %v346_v8, 0.0 }
  0xfb   :  { %v499_v17 = vmax.f32 %v181_v11, 0.0  ;;  %v531_v18 = vmax.f32 %v341_v12, 0.0  ;;  %v5528_v19 = vpop.f32.mrb[2].mxu0  ;;  %v5576_v20 = vpop.f32.mrb[2].mxu1 }
  0xfc   :  { %653 = vst.msk [vmem:[#allocation2 + $0x21] sm:$0xff] %vm563_vm0, %v500_v13  ;;  %685 = vst.msk [vmem:[#allocation2 + $0x1d1] sm:$0xff] %vm563_vm0, %v532_v14  ;;  %v196_v22 = vadd.f32 %v5528_v19, %v7493_v1  ;;  %v356_v23 = vadd.f32 %v5576_v20, %v7493_v1  ;;  %v190_v24 = vpop.f32.mrb[3].mxu0  ;;  %v350_v25 = vpop.f32.mrb[3].mxu1 }
  0xfd   :  { %652 = vst.msk [vmem:[#allocation2 + $0x19] sm:$0xff] %vm563_vm0, %v499_v17  ;;  %684 = vst.msk [vmem:[#allocation2 + $0x1c9] sm:$0xff] %vm563_vm0, %v531_v18  ;;  %v191_v26 = vadd.f32 %v7493_v1, %v190_v24  ;;  %v351_v27 = vadd.f32 %v7493_v1, %v350_v25 }
  0xfe   :  { %v502_v29 = vmax.f32 %v196_v22, 0.0  ;;  %v534_v30 = vmax.f32 %v356_v23, 0.0  ;;  %v812_v22 = vld [vmem:[#allocation2 + $0x1b1] sm:$0xff] }
  0xff   :  { %v501_v33 = vmax.f32 %v191_v26, 0.0  ;;  %v533_v34 = vmax.f32 %v351_v27, 0.0  ;;  %v5531_v35 = vpop.f32.mrb[4].mxu0  ;;  %v5579_v36 = vpop.f32.mrb[4].mxu1 }
 0x100   :  { %655 = vst.msk [vmem:[#allocation2 + $0x39] sm:$0xff] %vm563_vm0, %v502_v29  ;;  %687 = vst.msk [vmem:[#allocation2 + $0x1e9] sm:$0xff] %vm563_vm0, %v534_v30  ;;  %v206_v38 = vadd.f32 %v5531_v35, %v7493_v1  ;;  %v366_v39 = vadd.f32 %v5579_v36, %v7493_v1  ;;  %v200_v40 = vpop.f32.mrb[5].mxu0  ;;  %v360_v41 = vpop.f32.mrb[5].mxu1 }
 0x101   :  { %654 = vst.msk [vmem:[#allocation2 + $0x31] sm:$0xff] %vm563_vm0, %v501_v33  ;;  %686 = vst.msk [vmem:[#allocation2 + $0x1e1] sm:$0xff] %vm563_vm0, %v533_v34  ;;  %v201_v42 = vadd.f32 %v7493_v1, %v200_v40  ;;  %v361_v43 = vadd.f32 %v7493_v1, %v360_v41 }
 0x102   :  { %v504_v45 = vmax.f32 %v206_v38, 0.0  ;;  %v536_v46 = vmax.f32 %v366_v39, 0.0 }
 0x103   :  { %v503_v49 = vmax.f32 %v201_v42, 0.0  ;;  %v535_v50 = vmax.f32 %v361_v43, 0.0  ;;  %v5534_v51 = vpop.f32.mrb[6].mxu0  ;;  %v5582_v52 = vpop.f32.mrb[6].mxu1  ;;  %v7543_v53 = vld [vmem:[#allocation2 + $0x1d2] sm:$0xff]  ;;  %v783_v54 = vld [vmem:[#allocation2 + $0x21] sm:$0xff] }
 0x104   :  { %657 = vst.msk [vmem:[#allocation2 + $0x51] sm:$0xff] %vm563_vm0, %v504_v45  ;;  %689 = vst.msk [vmem:[#allocation2 + $0x201] sm:$0xff] %vm563_vm0, %v536_v46  ;;  %v216_v56 = vadd.f32 %v5534_v51, %v7493_v1  ;;  %v376_v57 = vadd.f32 %v5582_v52, %v7493_v1  ;;  %v210_v58 = vpop.f32.mrb[7].mxu0  ;;  %v370_v59 = vpop.f32.mrb[7].mxu1  ;;  %v5952_v60 = vpack.i.bf16 %v813_v44, %v7543_v53  ;;  %v782_v61 = vld [vmem:[#allocation2 + $0x19] sm:$0xff]  ;;  %v7557_v5 = vld [vmem:[#allocation2 + $0x22] sm:$0xff] }
 0x105   :  { %656 = vst.msk [vmem:[#allocation2 + $0x49] sm:$0xff] %vm563_vm0, %v503_v49  ;;  %688 = vst.msk [vmem:[#allocation2 + $0x1f9] sm:$0xff] %vm563_vm0, %v535_v50  ;;  %v211_v62 = vadd.f32 %v7493_v1, %v210_v58  ;;  %v371_v63 = vadd.f32 %v7493_v1, %v370_v59  ;;  %v5957_v0 = vpack.i.bf16 %v783_v54, %v782_v61  ;;  %v7555_v4 = vld [vmem:[#allocation2 + $0x1a] sm:$0xff]  ;;  %v941_v9 = vld [vmem:[#allocation2 + $0x1d0] sm:$0xff] }
 0x106   :  { %v506_v2 = vmax.f32 %v216_v56, 0.0  ;;  %v538_v3 = vmax.f32 %v376_v57, 0.0  ;;  %5953 = vrot.lane.b32.xlu1 %v5952_v60, %s6956_s14  ;;  %v5962_v18 = vpack.i.bf16 %v7557_v5, %v7555_v4  ;;  %v7583_v23 = vld [vmem:[#allocation2 + $0x1ca] sm:$0xff]  ;;  %v909_v55 = vld [vmem:[#allocation2 + $0x20] sm:$0xff] }
 0x107   :  { %v505_v6 = vmax.f32 %v211_v62, 0.0  ;;  %v537_v7 = vmax.f32 %v371_v63, 0.0  ;;  %v5537_v8 = vpop.f32.mrb[8].mxu0  ;;  %5958 = vrot.lane.b32.xlu0 %v5957_v0, %s6956_s14  ;;  %v7561_v10 = vld [vmem:[#allocation2 + $0x1e9] sm:$0xff]  ;;  %v7563_v11 = vld [vmem:[#allocation2 + $0x3a] sm:$0xff]  ;;  %v5585_v16 = vpop.f32.mrb[8].mxu1  ;;  %v5967_v39 = vpack.i.bf16 %v812_v22, %v7583_v23 }
 0x108   :  { %659 = vst.msk [vmem:[#allocation2 + $0x69] sm:$0xff] %vm563_vm0, %v506_v2  ;;  %691 = vst.msk [vmem:[#allocation2 + $0x219] sm:$0xff] %vm563_vm0, %v538_v3  ;;  %v226_v12 = vadd.f32 %v5537_v8, %v7493_v1  ;;  %v220_v13 = vpop.f32.mrb[9].mxu0  ;;  %v7568_v14 = vld [vmem:[#allocation2 + $0x32] sm:$0xff]  ;;  %v5977_v15 = vpack.i.bf16 %v941_v9, %v7561_v10  ;;  %v7578_v19 = vld [vmem:[#allocation2 + $0x1ea] sm:$0xff]  ;;  %v380_v20 = vpop.f32.mrb[9].mxu1  ;;  %v386_v24 = vadd.f32 %v5585_v16, %v7493_v1 }
 0x109   :  { %658 = vst.msk [vmem:[#allocation2 + $0x61] sm:$0xff] %vm563_vm0, %v505_v6  ;;  %690 = vst.msk [vmem:[#allocation2 + $0x211] sm:$0xff] %vm563_vm0, %v537_v7  ;;  %v221_v17 = vadd.f32 %v7493_v1, %v220_v13  ;;  %5627 = vmatprep.mubr.msk.f32.mxu0 %vm563_vm0, %v7568_v14  ;;  %v815_v27 = vld [vmem:[#allocation2 + $0x1d1] sm:$0xff]  ;;  %v381_v30 = vadd.f32 %v7493_v1, %v380_v20  ;;  %v785_v41 = vld [vmem:[#allocation2 + $0x39] sm:$0xff] }
 0x10a   :  { %v508_v21 = vmax.f32 %v226_v12, 0.0  ;;  %5978 = vrot.lane.b32.xlu1 %v5977_v15, %s6958_s17  ;;  %5628 = vmatmul.mubr.msk.f32.vlgmr.msra.gmra.mrb[32].mxu0 %vm563_vm0, %v7563_v11  ;;  %v5982_v35 = vpack.i.bf16 %v815_v27, %v7578_v19  ;;  %v540_v36 = vmax.f32 %v386_v24, 0.0  ;;  %v784_v40 = vld [vmem:[#allocation2 + $0x31] sm:$0xff]  ;;  %v5972_v58 = vpack.i.bf16 %v909_v55, %v785_v41  ;;  %v844_v59 = vld [vmem:[#allocation2 + $0x2] sm:$0xff] }
 0x10b   :  { %v507_v25 = vmax.f32 %v221_v17, 0.0  ;;  %v5540_v26 = vpop.f32.mrb[10].mxu0  ;;  %5963 = vrot.lane.b32.xlu0 %v5962_v18, %s6956_s14  ;;  %v7587_v29 = vld [vmem:[#allocation2 + $0x52] sm:$0xff]  ;;  %v5588_v31 = vpop.f32.mrb[10].mxu1  ;;  %v539_v42 = vmax.f32 %v381_v30, 0.0  ;;  %v5987_v44 = vpack.i.bf16 %v785_v41, %v784_v40  ;;  %v845_v18 = vld [vmem:[#allocation2 + $0xa] sm:$0xff]  ;;  %v6007_v55 = vpack.i.bf16 %v7563_v11, %v7568_v14 }
 0x10c   :  { %661 = vst.msk [vmem:[#allocation2 + $0x81] sm:$0xff] %vm563_vm0, %v508_v21  ;;  %v236_v32 = vadd.f32 %v5540_v26, %v7493_v1  ;;  %v230_v33 = vpop.f32.mrb[11].mxu0  ;;  %v7592_v34 = vld [vmem:[#allocation2 + $0x4a] sm:$0xff]  ;;  %v390_v37 = vpop.f32.mrb[11].mxu1  ;;  %693 = vst.msk [vmem:[#allocation2 + $0x231] sm:$0xff] %vm563_vm0, %v540_v36  ;;  %v396_v48 = vadd.f32 %v5588_v31, %v7493_v1  ;;  %v908_v13 = vld [vmem:[#allocation2 + $0x18] sm:$0xff] }
 0x10d   :  { %660 = vst.msk [vmem:[#allocation2 + $0x79] sm:$0xff] %vm563_vm0, %v507_v25  ;;  %v231_v38 = vadd.f32 %v7493_v1, %v230_v33  ;;  %5630 = vmatprep.mubr.msk.f32.mxu0 %vm563_vm0, %v7592_v34  ;;  %692 = vst.msk [vmem:[#allocation2 + $0x229] sm:$0xff] %vm563_vm0, %v539_v42  ;;  %v391_v49 = vadd.f32 %v7493_v1, %v390_v37  ;;  %v7618_v60 = vld [vmem:[#allocation2 + $0x30] sm:$0xff]  ;;  %v5997_v17 = vpack.i.bf16 %v908_v13, %v784_v40  ;;  %v7637_v20 = vld [vmem:[#allocation2 + $0x38] sm:$0xff] }
 0x10e   :  { %v510_v43 = vmax.f32 %v236_v32, 0.0  ;;  %5983 = vrot.lane.b32.xlu1 %v5982_v35, %s6956_s14  ;;  %5631 = vmatmul.mubr.msk.f32.gmra.mrb[34].mxu0 %vm563_vm0, %v7587_v29  ;;  %v542_v61 = vmax.f32 %v396_v48, 0.0  ;;  %v5992_v12 = vpack.i.bf16 %v844_v59, %v7618_v60  ;;  %v7643_v24 = vld [vmem:[#allocation2 + $0x1e1] sm:$0xff]  ;;  %v6002_v36 = vpack.i.bf16 %v845_v18, %v7637_v20  ;;  %v814_v18 = vld [vmem:[#allocation2 + $0x1c9] sm:$0xff] }
 0x10f   :  { %v509_v45 = vmax.f32 %v231_v38, 0.0  ;;  %v5543_v46 = vpop.f32.mrb[12].mxu0  ;;  %5968 = vrot.lane.b32.xlu0 %v5967_v39, %s6956_s14  ;;  %v7605_v47 = vld [vmem:[#allocation2 + $0x6a] sm:$0xff]  ;;  %v5591_v50 = vpop.f32.mrb[12].mxu1  ;;  %v541_v62 = vmax.f32 %v391_v49, 0.0  ;;  %v877_v42 = vld [vmem:[#allocation2 + $0x1ba] sm:$0xff] }
 0x110   :  { %663 = vst.msk [vmem:[#allocation2 + $0x99] sm:$0xff] %vm563_vm0, %v510_v43  ;;  %v246_v51 = vadd.f32 %v5543_v46, %v7493_v1  ;;  %v240_v52 = vpop.f32.mrb[13].mxu0  ;;  %v7612_v54 = vld [vmem:[#allocation2 + $0x62] sm:$0xff]  ;;  %v400_v56 = vpop.f32.mrb[13].mxu1  ;;  %695 = vst.msk [vmem:[#allocation2 + $0x249] sm:$0xff] %vm563_vm0, %v542_v61  ;;  %v406_v21 = vadd.f32 %v5591_v50, %v7493_v1 }
 0x111   :  { %662 = vst.msk [vmem:[#allocation2 + $0x91] sm:$0xff] %vm563_vm0, %v509_v45  ;;  %v241_v57 = vadd.f32 %v7493_v1, %v240_v52  ;;  %5633 = vmatprep.mubr.msk.f32.mxu0 %vm563_vm0, %v7612_v54  ;;  %694 = vst.msk [vmem:[#allocation2 + $0x241] sm:$0xff] %vm563_vm0, %v541_v62  ;;  %v401_v25 = vadd.f32 %v7493_v1, %v400_v56  ;;  %v940_v37 = vld [vmem:[#allocation2 + $0x1c8] sm:$0xff]  ;;  %v7682_v59 = vld [vmem:[#allocation2 + $0x1e0] sm:$0xff] }
 0x112   :  { %v512_v63 = vmax.f32 %v246_v51, 0.0  ;;  %5634 = vmatmul.mubr.msk.f32.gmra.mrb[36].mxu0 %vm563_vm0, %v7605_v47  ;;  %5988 = vrot.lane.b32.xlu1 %v5987_v44, %s6956_s14  ;;  %v544_v31 = vmax.f32 %v406_v21, 0.0  ;;  %v6017_v40 = vpack.i.bf16 %v940_v37, %v7643_v24  ;;  %v7663_v43 = vld [vmem:[#allocation2 + $0x1e8] sm:$0xff] }
 0x113   :  { %v511_v0 = vmax.f32 %v241_v57, 0.0  ;;  %v5546_v2 = vpop.f32.mrb[14].mxu0  ;;  %5973 = vrot.lane.b32.xlu0 %v5972_v58, %s6958_s17  ;;  %v7624_v3 = vld [vmem:[#allocation2 + $0x82] sm:$0xff]  ;;  %v5594_v6 = vpop.f32.mrb[14].mxu1  ;;  %v543_v38 = vmax.f32 %v401_v25, 0.0  ;;  %v6022_v57 = vpack.i.bf16 %v877_v42, %v7663_v43  ;;  %v876_v58 = vld [vmem:[#allocation2 + $0x1b2] sm:$0xff] }
 0x114   :  { %665 = vst.msk [vmem:[#allocation2 + $0xb1] sm:$0xff] %vm563_vm0, %v512_v63  ;;  %v256_v7 = vadd.f32 %v5546_v2, %v7493_v1  ;;  %v250_v8 = vpop.f32.mrb[15].mxu0  ;;  %v7630_v9 = vld [vmem:[#allocation2 + $0x7a] sm:$0xff]  ;;  %v410_v15 = vpop.f32.mrb[15].mxu1  ;;  %697 = vst.msk [vmem:[#allocation2 + $0x261] sm:$0xff] %vm563_vm0, %v544_v31  ;;  %v416_v48 = vadd.f32 %v5594_v6, %v7493_v1  ;;  %v7710_v25 = vld [vmem:[#allocation2 + $0x51] sm:$0xff] }
 0x115   :  { %664 = vst.msk [vmem:[#allocation2 + $0xa9] sm:$0xff] %vm563_vm0, %v511_v0  ;;  %v251_v16 = vadd.f32 %v7493_v1, %v250_v8  ;;  %5636 = vmatprep.mubr.msk.f32.mxu0 %vm563_vm0, %v7630_v9  ;;  %696 = vst.msk [vmem:[#allocation2 + $0x259] sm:$0xff] %vm563_vm0, %v543_v38  ;;  %v411_v49 = vadd.f32 %v7493_v1, %v410_v15  ;;  %v7687_v0 = vld [vmem:[#allocation2 + $0x1e2] sm:$0xff]  ;;  %v6032_v42 = vpack.i.bf16 %v7637_v20, %v7710_v25  ;;  %v7738_v20 = vld [vmem:[#allocation2 + $0x50] sm:$0xff] }
 0x116   :  { %v514_v22 = vmax.f32 %v256_v7, 0.0  ;;  %5637 = vmatmul.mubr.msk.f32.gmra.mrb[38].mxu0 %vm563_vm0, %v7624_v3  ;;  %5993 = vrot.lane.b32.xlu1 %v5992_v12, %s6959_s1  ;;  %v546_v61 = vmax.f32 %v416_v48, 0.0  ;;  %v3243_v8 = vld [vmem:[%s10042_s3 + $0xe0] sm:$0xff]  ;;  %v3244_v12 = vld [vmem:[%s10042_s3 + $0xe8] sm:$0xff] }
 0x117   :  { %v513_v26 = vmax.f32 %v251_v16, 0.0  ;;  %v5549_v27 = vpop.f32.mrb[16].mxu0  ;;  %5998 = vrot.lane.b32.xlu0 %v5997_v17, %s6958_s17  ;;  %v7647_v30 = vld [vmem:[#allocation2 + $0x9a] sm:$0xff]  ;;  %v545_v62 = vmax.f32 %v411_v49, 0.0  ;;  %v6012_v17 = vpack.i.bf16 %v876_v58, %v7682_v59 }
 0x118   :  { %667 = vst.msk [vmem:[#allocation2 + $0xc9] sm:$0xff] %vm563_vm0, %v514_v22  ;;  %v266_v32 = vadd.f32 %v5549_v27, %v7493_v1  ;;  %v260_v33 = vpop.f32.mrb[17].mxu0  ;;  %v7651_v35 = vld [vmem:[#allocation2 + $0x92] sm:$0xff]  ;;  %699 = vst.msk [vmem:[#allocation2 + $0x279] sm:$0xff] %vm563_vm0, %v546_v61  ;;  %v6027_v22 = vpack.i.bf16 %v814_v18, %v7687_v0  ;;  %v7733_v49 = vld [vmem:[#allocation2 + $0x201] sm:$0xff]  ;;  %v6067_v18 = vpack.i.bf16 %v7587_v29, %v7592_v34 }
 0x119   :  { %666 = vst.msk [vmem:[#allocation2 + $0xc1] sm:$0xff] %vm563_vm0, %v513_v26  ;;  %v261_v39 = vadd.f32 %v7493_v1, %v260_v33  ;;  %5639 = vmatprep.mubr.msk.f32.mxu0 %vm563_vm0, %v7651_v35  ;;  %698 = vst.msk [vmem:[#allocation2 + $0x271] sm:$0xff] %vm563_vm0, %v545_v62  ;;  %v3245_v26 = vld [vmem:[%s10042_s3 + $0xf0] sm:$0xff]  ;;  %v3246_v27 = vld [vmem:[%s10042_s3 + $0xf8] sm:$0xff]  ;;  %v5902_v33 = vpack.c.bf16 %v3244_v12, %v3243_v8  ;;  %v6062_v62 = vpack.i.bf16 %v7557_v5, %v7738_v20 }
 0x11a   :  { %v516_v41 = vmax.f32 %v266_v32, 0.0  ;;  %5640 = vmatmul.mubr.msk.f32.gmra.mrb[40].mxu0 %vm563_vm0, %v7647_v30  ;;  %6003 = vrot.lane.b32.xlu1 %v6002_v36, %s6959_s1  ;;  %v7721_v32 = vld [vmem:[#allocation2 + $0x48] sm:$0xff] }
 0x11b   :  { %v515_v44 = vmax.f32 %v261_v39, 0.0  ;;  %v5552_v45 = vpop.f32.mrb[18].mxu0  ;;  %6018 = vrot.lane.b32.xlu0 %v6017_v40, %s6958_s17  ;;  %v7667_v46 = vld [vmem:[#allocation2 + $0xb2] sm:$0xff]  ;;  %5903 = vmatpush1.bf16.msra.mxu1 %v5902_v33  ;;  %v6052_v48 = vpack.i.bf16 %v7555_v4, %v7721_v32 }
 0x11c   :  { %669 = vst.msk [vmem:[#allocation2 + $0xe1] sm:$0xff] %vm563_vm0, %v516_v41  ;;  %v276_v50 = vadd.f32 %v5552_v45, %v7493_v1  ;;  %v270_v51 = vpop.f32.mrb[19].mxu0  ;;  %v7673_v52 = vld [vmem:[#allocation2 + $0xaa] sm:$0xff]  ;;  %5904 = vmatprep.subr.bf16.mxu1 %v6957_v28  ;;  %v6037_v28 = vpack.i.bf16 %v7663_v43, %v7733_v49 }
 0x11d   :  { %668 = vst.msk [vmem:[#allocation2 + $0xd9] sm:$0xff] %vm563_vm0, %v515_v44  ;;  %v271_v56 = vadd.f32 %v7493_v1, %v270_v51  ;;  %5642 = vmatprep.mubr.msk.f32.mxu0 %vm563_vm0, %v7673_v52  ;;  %v5905_v44 = vpack.c.bf16 %v3246_v27, %v3245_v26 }
 0x11e   :  { %v518_v63 = vmax.f32 %v276_v50, 0.0  ;;  %5643 = vmatmul.mubr.msk.f32.gmra.mrb[42].mxu0 %vm563_vm0, %v7667_v46  ;;  %6008 = vrot.lane.b32.xlu1 %v6007_v55, %s6956_s14 }
 0x11f   :  { %v517_v2 = vmax.f32 %v271_v56, 0.0  ;;  %v5555_v6 = vpop.f32.mrb[20].mxu0  ;;  %6023 = vrot.lane.b32.xlu0 %v6022_v57, %s6959_s1  ;;  %v7690_v7 = vld [vmem:[#allocation2 + $0xca] sm:$0xff]  ;;  %5906 = vmatpush1.bf16.msra.mxu1 %v5905_v44 }
 0x120   :  { %671 = vst.msk [vmem:[#allocation2 + $0xf9] sm:$0xff] %vm563_vm0, %v518_v63  ;;  %v286_v13 = vadd.f32 %v5555_v6, %v7493_v1  ;;  %v280_v15 = vpop.f32.mrb[21].mxu0  ;;  %v7702_v16 = vld [vmem:[#allocation2 + $0xc2] sm:$0xff] }
 0x121   :  { %670 = vst.msk [vmem:[#allocation2 + $0xf1] sm:$0xff] %vm563_vm0, %v517_v2  ;;  %v281_v21 = vadd.f32 %v7493_v1, %v280_v15  ;;  %5645 = vmatprep.mubr.msk.f32.mxu0 %vm563_vm0, %v7702_v16  ;;  %v7750_v63 = vld [vmem:[#allocation2 + $0x202] sm:$0xff] }
 0x122   :  { %v520_v31 = vmax.f32 %v286_v13, 0.0  ;;  %5646 = vmatmul.mubr.msk.f32.gmra.mrb[44].mxu0 %vm563_vm0, %v7690_v7  ;;  %6013 = vrot.lane.b32.xlu1 %v6012_v17, %s6959_s1  ;;  %v6042_v5 = vpack.i.bf16 %v7561_v10, %v7750_v63 }
 0x123   :  { %v519_v36 = vmax.f32 %v281_v21, 0.0  ;;  %v5558_v37 = vpop.f32.mrb[22].mxu0  ;;  %6028 = vrot.lane.b32.xlu0 %v6027_v22, %s6956_s14  ;;  %v1244_v38 = vld [vmem:[#allocation2 + $0xe2] sm:$0xff]  ;;  %v7766_v22 = vld [vmem:[#allocation2 + $0x1f9] sm:$0xff] }
 0x124   :  { %673 = vst.msk [vmem:[#allocation2 + $0x111] sm:$0xff] %vm563_vm0, %v520_v31  ;;  %v296_v39 = vadd.f32 %v5558_v37, %v7493_v1  ;;  %v290_v40 = vpop.f32.mrb[23].mxu0  ;;  %v1243_v41 = vld [vmem:[#allocation2 + $0xda] sm:$0xff]  ;;  %v786_v31 = vld [vmem:[#allocation2 + $0x49] sm:$0xff] }
 0x125   :  { %672 = vst.msk [vmem:[#allocation2 + $0x109] sm:$0xff] %vm563_vm0, %v519_v36  ;;  %v291_v45 = vadd.f32 %v7493_v1, %v290_v40  ;;  %5648 = vmatprep.mubr.msk.f32.mxu0 %vm563_vm0, %v1243_v41  ;;  %v6077_v40 = vpack.i.bf16 %v7682_v59, %v7766_v22 }
 0x126   :  { %v522_v50 = vmax.f32 %v296_v39, 0.0  ;;  %5649 = vmatmul.mubr.msk.f32.gmra.mrb[46].mxu0 %vm563_vm0, %v1244_v38  ;;  %6033 = vrot.lane.b32.xlu1 %v6032_v42, %s6958_s17  ;;  %v6047_v38 = vpack.i.bf16 %v7710_v25, %v786_v31  ;;  %v1136_v42 = vld [vmem:[#allocation2 + $0x200] sm:$0xff] }
 0x127   :  { %v521_v51 = vmax.f32 %v291_v45, 0.0  ;;  %v5561_v55 = vpop.f32.mrb[24].mxu0  ;;  %6053 = vrot.lane.b32.xlu0 %v6052_v48, %s6959_s1  ;;  %v1246_v56 = vld [vmem:[#allocation2 + $0xfa] sm:$0xff] }
 0x128   :  { %675 = vst.msk [vmem:[#allocation2 + $0x129] sm:$0xff] %vm563_vm0, %v522_v50  ;;  %v306_v4 = vadd.f32 %v5561_v55, %v7493_v1  ;;  %v300_v57 = vpop.f32.mrb[25].mxu0  ;;  %v1245_v58 = vld [vmem:[#allocation2 + $0xf2] sm:$0xff]  ;;  %v6057_v55 = vpack.i.bf16 %v7618_v60, %v786_v31  ;;  %v1106_v31 = vld [vmem:[#allocation2 + $0x68] sm:$0xff] }
 0x129   :  { %674 = vst.msk [vmem:[#allocation2 + $0x121] sm:$0xff] %vm563_vm0, %v521_v51  ;;  %v301_v61 = vadd.f32 %v7493_v1, %v300_v57  ;;  %5651 = vmatprep.mubr.msk.f32.mxu0 %vm563_vm0, %v1245_v58  ;;  %v7789_v58 = vld [vmem:[#allocation2 + $0x1fa] sm:$0xff] }
 0x12a   :  { %v524_v2 = vmax.f32 %v306_v4, 0.0  ;;  %5652 = vmatmul.mubr.msk.f32.gmra.mrb[48].mxu0 %vm563_vm0, %v1246_v56  ;;  %6038 = vrot.lane.b32.xlu1 %v6037_v28, %s6958_s17  ;;  %v6082_v56 = vpack.i.bf16 %v7543_v53, %v1136_v42  ;;  %v1135_v4 = vld [vmem:[#allocation2 + $0x1f8] sm:$0xff]  ;;  %v6087_v53 = vpack.i.bf16 %v7643_v24, %v7789_v58  ;;  %v7808_v24 = vld [vmem:[#allocation2 + $0x61] sm:$0xff] }
 0x12b   :  { %v523_v6 = vmax.f32 %v301_v61, 0.0  ;;  %v5564_v8 = vpop.f32.mrb[26].mxu0  ;;  %6063 = vrot.lane.b32.xlu0 %v6062_v62, %s6959_s1  ;;  %v1248_v43 = vld [vmem:[#allocation2 + $0x112] sm:$0xff]  ;;  %v6072_v62 = vpack.i.bf16 %v7583_v23, %v1135_v4 }
 0x12c   :  { %677 = vst.msk [vmem:[#allocation2 + $0x141] sm:$0xff] %vm563_vm0, %v524_v2  ;;  %v316_v12 = vadd.f32 %v5564_v8, %v7493_v1  ;;  %v310_v13 = vpop.f32.mrb[27].mxu0  ;;  %v1247_v15 = vld [vmem:[#allocation2 + $0x10a] sm:$0xff]  ;;  %v1202_v2 = vld [vmem:[#allocation2 + $0x219] sm:$0xff] }
 0x12d   :  { %676 = vst.msk [vmem:[#allocation2 + $0x139] sm:$0xff] %vm563_vm0, %v523_v6  ;;  %v311_v17 = vadd.f32 %v7493_v1, %v310_v13  ;;  %5654 = vmatprep.mubr.msk.f32.mxu0 %vm563_vm0, %v1247_v15  ;;  %v7800_v6 = vld [vmem:[#allocation2 + $0x69] sm:$0xff]  ;;  %v1075_v13 = vld [vmem:[#allocation2 + $0x21a] sm:$0xff] }
 0x12e   :  { %v526_v21 = vmax.f32 %v316_v12, 0.0  ;;  %5655 = vmatmul.mubr.msk.f32.gmra.mrb[50].mxu0 %vm563_vm0, %v1248_v43  ;;  %6043 = vrot.lane.b32.xlu1 %v6042_v5, %s6956_s14  ;;  %v6097_v12 = vpack.i.bf16 %v1136_v42, %v1202_v2  ;;  %v6092_v23 = vpack.i.bf16 %v7738_v20, %v7800_v6  ;;  %v7815_v20 = vld [vmem:[#allocation2 + $0x60] sm:$0xff]  ;;  %v1267_v42 = vld [vmem:[#allocation2 + $0x22a] sm:$0xff] }
 0x12f   :  { %v525_v26 = vmax.f32 %v311_v17, 0.0  ;;  %v5567_v27 = vpop.f32.mrb[28].mxu0  ;;  %6068 = vrot.lane.b32.xlu0 %v6067_v18, %s6956_s14  ;;  %v1250_v10 = vld [vmem:[#allocation2 + $0x12a] sm:$0xff]  ;;  %v6102_v17 = vpack.i.bf16 %v7733_v49, %v1075_v13  ;;  %v1259_v18 = vld [vmem:[#allocation2 + $0x19a] sm:$0xff]  ;;  %v6107_v49 = vpack.i.bf16 %v7568_v14, %v7815_v20  ;;  %v7836_v14 = vld [vmem:[#allocation2 + $0x212] sm:$0xff] }
 0x130   :  { %679 = vst.msk [vmem:[#allocation2 + $0x159] sm:$0xff] %vm563_vm0, %v526_v21  ;;  %v326_v33 = vadd.f32 %v5567_v27, %v7493_v1  ;;  %v320_v36 = vpop.f32.mrb[29].mxu0  ;;  %v1249_v37 = vld [vmem:[#allocation2 + $0x122] sm:$0xff]  ;;  %v6112_v21 = vpack.i.bf16 %v7721_v32, %v7808_v24  ;;  %v1138_v32 = vld [vmem:[#allocation2 + $0x218] sm:$0xff] }
 0x131   :  { %678 = vst.msk [vmem:[#allocation2 + $0x151] sm:$0xff] %vm563_vm0, %v525_v26  ;;  %v321_v39 = vadd.f32 %v7493_v1, %v320_v36  ;;  %5657 = vmatprep.mubr.msk.f32.mxu0 %vm563_vm0, %v1249_v37  ;;  %v7819_v26 = vld [vmem:[#allocation2 + $0x211] sm:$0xff]  ;;  %v1260_v27 = vld [vmem:[#allocation2 + $0x1a2] sm:$0xff]  ;;  %v6137_v36 = vpack.i.bf16 %v7578_v19, %v1138_v32  ;;  %v6122_v37 = vpack.i.bf16 %v7605_v47, %v7612_v54 }
 0x132   :  { %v528_v41 = vmax.f32 %v326_v33, 0.0  ;;  %5658 = vmatmul.mubr.msk.f32.gmra.mrb[52].mxu0 %vm563_vm0, %v1250_v10  ;;  %6048 = vrot.lane.b32.xlu1 %v6047_v38, %s6956_s14  ;;  %v6132_v10 = vpack.i.bf16 %v1135_v4, %v7819_v26  ;;  %v6117_v33 = vpack.i.bf16 %v7563_v11, %v1106_v31  ;;  %v6142_v11 = vpack.i.bf16 %v7766_v22, %v7836_v14  ;;  %v1137_v38 = vld [vmem:[#allocation2 + $0x210] sm:$0xff]  ;;  %v1108_v22 = vld [vmem:[#allocation2 + $0x80] sm:$0xff] }
 0x133   :  { %v527_v44 = vmax.f32 %v321_v39, 0.0  ;;  %v5570_v45 = vpop.f32.mrb[30].mxu0  ;;  %6078 = vrot.lane.b32.xlu0 %v6077_v40, %s6958_s17  ;;  %v1252_v25 = vld [vmem:[#allocation2 + $0x142] sm:$0xff]  ;;  %v6127_v39 = vpack.i.bf16 %v7687_v0, %v1137_v38  ;;  %v1171_v4 = vld [vmem:[#allocation2 + $0x79] sm:$0xff]  ;;  %v6197_v2 = vpack.i.bf16 %v7819_v26, %v1267_v42  ;;  %v7893_v26 = vpop.permute.xlu0 %5948 }
 0x134   :  { %681 = vst.msk [vmem:[#allocation2 + $0x171] sm:$0xff] %vm563_vm0, %v528_v41  ;;  %v336_v48 = vadd.f32 %v5570_v45, %v7493_v1  ;;  %v330_v50 = vpop.f32.mrb[31].mxu0  ;;  %v1251_v51 = vld [vmem:[#allocation2 + $0x13a] sm:$0xff] }
 0x135   :  { %680 = vst.msk [vmem:[#allocation2 + $0x169] sm:$0xff] %vm563_vm0, %v527_v44  ;;  %v331_v59 = vadd.f32 %v7493_v1, %v330_v50  ;;  %5660 = vmatprep.mubr.msk.f32.mxu0 %vm563_vm0, %v1251_v51  ;;  %v1172_v41 = vld [vmem:[#allocation2 + $0x81] sm:$0xff]  ;;  %v1268_v44 = vld [vmem:[#allocation2 + $0x232] sm:$0xff]  ;;  %v6177_v50 = vpack.i.bf16 %v7808_v24, %v7630_v9  ;;  %v5597_v24 = vpop.f32.mrb[16].mxu1 }
 0x136   :  { %v530_v57 = vmax.f32 %v336_v48, 0.0  ;;  %5661 = vmatmul.mubr.msk.f32.gmra.mrb[54].mxu0 %vm563_vm0, %v1252_v25  ;;  %6058 = vrot.lane.b32.xlu1 %v6057_v55, %s6958_s17  ;;  %v6147_v45 = vpack.i.bf16 %v1106_v31, %v1172_v41  ;;  %v1269_v25 = vld [vmem:[#allocation2 + $0x242] sm:$0xff]  ;;  %v6172_v48 = vpack.i.bf16 %v7587_v29, %v1108_v22  ;;  %v1204_v51 = vld [vmem:[#allocation2 + $0x231] sm:$0xff]  ;;  %v1271_v29 = vld [vmem:[#allocation2 + $0x25a] sm:$0xff] }
 0x137   :  { %v529_v28 = vmax.f32 %v331_v59, 0.0  ;;  %6083 = vrot.lane.b32.xlu0 %v6082_v56, %s6959_s1  ;;  %v1254_v60 = vld [vmem:[#allocation2 + $0x15a] sm:$0xff]  ;;  %v1203_v55 = vld [vmem:[#allocation2 + $0x229] sm:$0xff]  ;;  %v6157_v59 = vpack.i.bf16 %v1138_v32, %v1204_v51 }
 0x138   :  { %683 = vst.msk [vmem:[#allocation2 + $0x189] sm:$0xff] %vm563_vm0, %v530_v57  ;;  %v1253_v61 = vld [vmem:[#allocation2 + $0x152] sm:$0xff]  ;;  %v6187_v56 = vpack.i.bf16 %v1137_v38, %v1203_v55  ;;  %v1272_v57 = vld [vmem:[#allocation2 + $0x262] sm:$0xff] }
 0x139   :  { %682 = vst.msk [vmem:[#allocation2 + $0x181] sm:$0xff] %vm563_vm0, %v529_v28  ;;  %5663 = vmatprep.mubr.msk.f32.mxu0 %vm563_vm0, %v1253_v61  ;;  %v1140_v28 = vld [vmem:[#allocation2 + $0x230] sm:$0xff] }
 0x13a   :  { %5664 = vmatmul.mubr.msk.f32.gmra.mrb[56].mxu0 %vm563_vm0, %v1254_v60  ;;  %6073 = vrot.lane.b32.xlu1 %v6072_v62, %s6959_s1  ;;  %v6167_v60 = vpack.i.bf16 %v7815_v20, %v1171_v4  ;;  %v6192_v61 = vpack.i.bf16 %v7750_v63, %v1140_v28  ;;  %v1139_v62 = vld [vmem:[#allocation2 + $0x228] sm:$0xff] }
 0x13b   :  { %6088 = vrot.lane.b32.xlu0 %v6087_v53, %s6956_s14  ;;  %v1256_v8 = vld [vmem:[#allocation2 + $0x172] sm:$0xff]  ;;  %v6182_v53 = vpack.i.bf16 %v7789_v58, %v1139_v62 }
 0x13c   :  { %v1255_v43 = vld [vmem:[#allocation2 + $0x16a] sm:$0xff] }
 0x13d   :  { %5666 = vmatprep.mubr.msk.f32.mxu0 %vm563_vm0, %v1255_v43 }
 0x13e   :  { %5667 = vmatmul.mubr.msk.f32.gmra.mrb[58].mxu0 %vm563_vm0, %v1256_v8  ;;  %6098 = vrot.lane.b32.xlu1 %v6097_v12, %s6958_s17  ;;  %v1173_v8 = vld [vmem:[#allocation2 + $0x91] sm:$0xff] }
 0x13f   :  { %6093 = vrot.lane.b32.xlu0 %v6092_v23, %s6958_s17  ;;  %v1258_v15 = vld [vmem:[#allocation2 + $0x18a] sm:$0xff]  ;;  %v6207_v23 = vpack.i.bf16 %v1172_v41, %v7647_v30  ;;  %v1205_v30 = vld [vmem:[#allocation2 + $0x241] sm:$0xff] }
 0x140   :  { %v1257_v5 = vld [vmem:[#allocation2 + $0x182] sm:$0xff] }
 0x141   :  { %5669 = vmatprep.mubr.msk.f32.mxu0 %vm563_vm0, %v1257_v5  ;;  %v426_v5 = vadd.f32 %v5597_v24, %v7493_v1  ;;  %v1274_v24 = vld [vmem:[#allocation2 + $0x27a] sm:$0xff] }
 0x142   :  { %5670 = vmatmul.mubr.msk.f32.gmra.mrb[60].mxu0 %vm563_vm0, %v1258_v15  ;;  %6103 = vrot.lane.b32.xlu1 %v6102_v17, %s6956_s14  ;;  %v420_v17 = vpop.f32.mrb[17].mxu1 }
 0x143   :  { %6113 = vrot.lane.b32.xlu0 %v6112_v21, %s6958_s17  ;;  %5672 = vmatprep.mubr.msk.f32.mxu0 %vm563_vm0, %v1259_v18  ;;  %v6227_v18 = vpack.i.bf16 %v1171_v4, %v7651_v35  ;;  %v1141_v21 = vld [vmem:[#allocation2 + $0x240] sm:$0xff]  ;;  %v421_v20 = vadd.f32 %v7493_v1, %v420_v17  ;;  %v7901_v1 = vld [vmem:[#allocation2 + $0xa9] sm:$0xff] }
 0x144   :  { %v717_v17 = vld [vmem:[#allocation2 + $0x8] sm:$0xff] }
 0x146   :  { %5673 = vmatmul.mubr.msk.f32.gmra.mrb[62].mxu0 %vm563_vm0, %v1260_v27  ;;  %6108 = vrot.lane.b32.xlu1 %v6107_v49, %s6959_s1  ;;  %v547_v27 = vmax.f32 %v421_v20, 0.0  ;;  %v6232_v49 = vpack.i.bf16 %v7836_v14, %v1141_v21 }
 0x147   :  { %5675 = vmatprep.mubr.msk.f32.mxu0 %vm563_vm0, %v7687_v0  ;;  %6133 = vrot.lane.b32.xlu0 %v6132_v10, %s6958_s17  ;;  %v6152_v0 = vpack.i.bf16 %v7800_v6, %v7624_v3  ;;  %v1174_v6 = vld [vmem:[#allocation2 + $0x99] sm:$0xff]  ;;  %v7897_v10 = vld [vmem:[#allocation2 + $0xb1] sm:$0xff] }
 0x148   :  { %v6202_v43 = vpack.i.bf16 %v1108_v22, %v1174_v6  ;;  %700 = vst.msk [vmem:[#allocation2 + $0x289] sm:$0xff] %vm563_vm0, %v547_v27  ;;  %v6267_v22 = vpack.i.bf16 %v1173_v8, %v7673_v52 }
 0x14a   :  { %5676 = vmatmul.mubr.msk.f32.gmra.mrb[64].mxu0 %vm563_vm0, %v7578_v19  ;;  %6118 = vrot.lane.b32.xlu1 %v6117_v33, %s6959_s1  ;;  %v1107_v19 = vld [vmem:[#allocation2 + $0x78] sm:$0xff] }
 0x14b   :  { %5678 = vmatprep.mubr.msk.f32.mxu0 %vm563_vm0, %v7789_v58  ;;  %6138 = vrot.lane.b32.xlu0 %v6137_v36, %s6959_s1  ;;  %v6162_v40 = vpack.i.bf16 %v7592_v34, %v1107_v19  ;;  %v1270_v34 = vld [vmem:[#allocation2 + $0x24a] sm:$0xff]  ;;  %v6217_v12 = vpack.i.bf16 %v1107_v19, %v1173_v8 }
 0x14c   :  { %v1109_v58 = vld [vmem:[#allocation2 + $0x90] sm:$0xff]  ;;  %v1111_v19 = vld [vmem:[#allocation2 + $0xa8] sm:$0xff] }
 0x14d   :  { %v6212_v15 = vpack.i.bf16 %v7612_v54, %v1109_v58  ;;  %v6237_v54 = vpack.i.bf16 %v1139_v62, %v1205_v30  ;;  %v6257_v33 = vpack.i.bf16 %v1109_v58, %v7901_v1  ;;  %v1112_v36 = vld [vmem:[#allocation2 + $0xb0] sm:$0xff]  ;;  %v972_v62 = vld [vmem:[#allocation2 + $0x19] sm:$0xff] }
 0x14e   :  { %5679 = vmatmul.mubr.msk.f32.gmra.mrb[66].mxu0 %vm563_vm0, %v7750_v63  ;;  %6123 = vrot.lane.b32.xlu1 %v6122_v37, %s6956_s14  ;;  %v1110_v63 = vld [vmem:[#allocation2 + $0x98] sm:$0xff]  ;;  %v6247_v37 = vpack.i.bf16 %v1174_v6, %v7667_v46  ;;  %v6262_v38 = vpack.i.bf16 %v7624_v3, %v1112_v36  ;;  %v7929_v46 = vld [vmem:[#allocation2 + $0xc1] sm:$0xff]  ;;  %v5600_v3 = vpop.f32.mrb[18].mxu1 }
 0x14f   :  { %5681 = vmatprep.mubr.msk.f32.mxu0 %vm563_vm0, %v7836_v14  ;;  %6143 = vrot.lane.b32.xlu0 %v6142_v11, %s6956_s14  ;;  %v6242_v31 = vpack.i.bf16 %v1110_v63, %v7897_v10  ;;  %v6287_v51 = vpack.i.bf16 %v1111_v19, %v7929_v46 }
 0x152   :  { %5682 = vmatmul.mubr.msk.f32.gmra.mrb[68].mxu0 %vm563_vm0, %v1075_v13  ;;  %6128 = vrot.lane.b32.xlu1 %v6127_v39, %s6959_s1  ;;  %v6222_v13 = vpack.i.bf16 %v7605_v47, %v1110_v63  ;;  %v548_v47 = vmax.f32 %v426_v5, 0.0  ;;  %v1273_v63 = vld [vmem:[#allocation2 + $0x272] sm:$0xff] }
 0x153   :  { %6163 = vrot.lane.b32.xlu0 %v6162_v40, %s6959_s1  ;;  %5684 = vmatprep.mubr.msk.f32.mxu0 %vm563_vm0, %v1267_v42  ;;  %v6252_v40 = vpack.i.bf16 %v7630_v9, %v1111_v19  ;;  %v7926_v42 = vld [vmem:[#allocation2 + $0xc9] sm:$0xff] }
 0x154   :  { %701 = vst.msk [vmem:[#allocation2 + $0x291] sm:$0xff] %vm563_vm0, %v548_v47 }
 0x156   :  { %6148 = vrot.lane.b32.xlu1 %v6147_v45, %s6958_s17  ;;  %5685 = vmatmul.mubr.msk.f32.gmra.mrb[70].mxu0 %vm563_vm0, %v1268_v44  ;;  %v7935_v44 = vld [vmem:[%s10041_s2] ss:$0 sm:$0xff]  ;;  %v430_v45 = vpop.f32.mrb[19].mxu1 }
 0x157   :  { %6173 = vrot.lane.b32.xlu0 %v6172_v48, %s6959_s1  ;;  %5687 = vmatprep.mubr.msk.f32.mxu0 %vm563_vm0, %v1269_v25  ;;  %v436_v9 = vadd.f32 %v7935_v44, %v5600_v3  ;;  %v5950_v25 = vunpack.i.l.bf16 %v7893_v26  ;;  %v6272_v48 = vpack.i.bf16 %v1112_v36, %v7926_v42 }
 0x159   :  { %v550_v55 = vmax.f32 %v436_v9, 0.0 }
 0x15a   :  { %6153 = vrot.lane.b32.xlu1 %v6152_v0, %s6956_s14  ;;  %5688 = vmatmul.mubr.msk.f32.gmra.mrb[72].mxu0 %vm563_vm0, %v1270_v34  ;;  %v431_v34 = vadd.f32 %v7935_v44, %v430_v45  ;;  %v716_v0 = vld [vmem:[#allocation2] sm:$0xff] }
 0x15b   :  { %6178 = vrot.lane.b32.xlu0 %v6177_v50, %s6956_s14  ;;  %5690 = vmatprep.mubr.msk.f32.mxu0 %vm563_vm0, %v1271_v29  ;;  %703 = vst.msk [vmem:[#allocation2 + $0x2a9] sm:$0xff] %vm563_vm0, %v550_v55  ;;  %v2829_v28 = vsel %vm563_vm0, %v716_v0, %v5950_v25  ;;  %v7995_v0 = vld [vmem:[#allocation2 + $0xe2] sm:$0xff] }
 0x15c   :  { %v549_v4 = vmax.f32 %v431_v34, 0.0  ;;  %v1116_v55 = vld [vmem:[#allocation2 + $0xe0] sm:$0xff] }
 0x15e   :  { %6158 = vrot.lane.b32.xlu1 %v6157_v59, %s6958_s17  ;;  %5691 = vmatmul.mubr.msk.f32.gmra.mrb[74].mxu0 %vm563_vm0, %v1272_v57  ;;  %v857_v59 = vld [vmem:[#allocation2 + $0x9a] sm:$0xff]  ;;  %v5951_v57 = vunpack.i.h.bf16 %v7893_v26  ;;  %702 = vst.msk [vmem:[#allocation2 + $0x2a1] sm:$0xff] %vm563_vm0, %v549_v4 }
 0x15f   :  { %6188 = vrot.lane.b32.xlu0 %v6187_v56, %s6958_s17  ;;  %v7948_v56 = vld [vmem:[#allocation2 + $0xc8] sm:$0xff]  ;;  %5693 = vmatprep.mubr.msk.f32.mxu0 %vm563_vm0, %v1273_v63 }
 0x160   :  { %v6292_v8 = vpack.i.bf16 %v857_v59, %v7948_v56 }
 0x162   :  { %6168 = vrot.lane.b32.xlu1 %v6167_v60, %s6958_s17  ;;  %5694 = vmatmul.mubr.msk.f32.gmra.mrb[76].mxu0 %vm563_vm0, %v1274_v24  ;;  %v8024_v24 = vld [vmem:[#allocation2 + $0xf1] sm:$0xff] }
 0x163   :  { %6193 = vrot.lane.b32.xlu0 %v6192_v61, %s6959_s1  ;;  %v6277_v61 = vpack.i.bf16 %v7897_v10, %v7690_v7  ;;  %v7972_v10 = vld [vmem:[#allocation2 + $0xe1] sm:$0xff] }
 0x164   :  { %v6302_v9 = vpack.i.bf16 %v7948_v56, %v7972_v10  ;;  %v6307_v56 = vpack.i.bf16 %v7926_v42, %v7995_v0 }
 0x166   :  { %6183 = vrot.lane.b32.xlu1 %v6182_v53, %s6959_s1 }
 0x167   :  { %6198 = vrot.lane.b32.xlu0 %v6197_v2, %s6956_s14 }
 0x16a   :  { %6203 = vrot.lane.b32.xlu1 %v6202_v43, %s6958_s17  ;;  %v856_v43 = vld [vmem:[#allocation2 + $0x92] sm:$0xff] }
 0x16b   :  { %6218 = vrot.lane.b32.xlu0 %v6217_v12, %s6958_s17  ;;  %v1113_v12 = vld [vmem:[#allocation2 + $0xc0] sm:$0xff] }
 0x16c   :  { %v6282_v20 = vpack.i.bf16 %v856_v43, %v1113_v12 }
 0x16e   :  { %6208 = vrot.lane.b32.xlu1 %v6207_v23, %s6956_s14 }
 0x16f   :  { %6223 = vrot.lane.b32.xlu0 %v6222_v13, %s6959_s1 }
 0x172   :  { %6213 = vrot.lane.b32.xlu1 %v6212_v15, %s6959_s1 }
 0x173   :  { %6228 = vrot.lane.b32.xlu0 %v6227_v18, %s6956_s14 }
 0x176   :  { %6233 = vrot.lane.b32.xlu1 %v6232_v49, %s6959_s1  ;;  %v6297_v49 = vpack.i.bf16 %v7901_v1, %v7702_v16 }
 0x177   :  { %6238 = vrot.lane.b32.xlu0 %v6237_v54, %s6958_s17  ;;  %v973_v54 = vld [vmem:[#allocation2 + $0x21] sm:$0xff] }
 0x178   :  { %v7904_v35 = vpop.permute.xlu1 %5953 }
 0x179   :  { %v7907_v32 = vpop.permute.xlu0 %5958 }
 0x17a   :  { %6243 = vrot.lane.b32.xlu1 %v6242_v31, %s6958_s17 }
 0x17b   :  { %6258 = vrot.lane.b32.xlu0 %v6257_v33, %s6958_s17 }
 0x17c   :  { %v7912_v14 = vpop.permute.xlu1 %5978 }
 0x17d   :  { %v7915_v11 = vpop.permute.xlu0 %5963 }
 0x17e   :  { %6248 = vrot.lane.b32.xlu1 %v6247_v37, %s6956_s14  ;;  %v5965_v29 = vunpack.i.l.bf16 %v7915_v11  ;;  %v5966_v23 = vunpack.i.h.bf16 %v7915_v11  ;;  %v2830_v37 = vsel %vm563_vm0, %v717_v17, %v5951_v57  ;;  %v7979_v11 = vld [vmem:[#allocation2 + $0xd9] sm:$0xff] }
 0x17f   :  { %6263 = vrot.lane.b32.xlu0 %v6262_v38, %s6959_s1  ;;  %v5603_v38 = vpop.f32.mrb[20].mxu1  ;;  %v6317_v34 = vpack.i.bf16 %v1113_v12, %v7979_v11 }
 0x180   :  { %v7920_v39 = vpop.permute.xlu1 %5983  ;;  %v3023_v7 = vsel %vm563_vm0, %v972_v62, %v5965_v29  ;;  %v3024_v36 = vsel %vm563_vm0, %v973_v54, %v5966_v23  ;;  %v446_v19 = vadd.f32 %v7935_v44, %v5603_v38  ;;  %v1275_v62 = vld [vmem:[#allocation2 + $0x28a] sm:$0xff]  ;;  %v860_v54 = vld [vmem:[#allocation2 + $0xc2] sm:$0xff] }
 0x181   :  { %v7923_v41 = vpop.permute.xlu0 %5968  ;;  %5696 = vmatprep.mubr.msk.f32.mxu0 %vm563_vm0, %v1275_v62 }
 0x182   :  { %6253 = vrot.lane.b32.xlu1 %v6252_v40, %s6959_s1  ;;  %v440_v40 = vpop.f32.mrb[21].mxu1 }
 0x183   :  { %6268 = vrot.lane.b32.xlu0 %v6267_v22, %s6956_s14  ;;  %v441_v25 = vadd.f32 %v7935_v44, %v440_v40 }
 0x184   :  { %v7939_v52 = vpop.permute.xlu1 %5988 }
 0x185   :  { %v7943_v50 = vpop.permute.xlu0 %5973  ;;  %v551_v29 = vmax.f32 %v441_v25, 0.0 }
 0x186   :  { %6273 = vrot.lane.b32.xlu1 %v6272_v48, %s6958_s17  ;;  %v5976_v31 = vunpack.i.h.bf16 %v7943_v50  ;;  %v5975_v33 = vunpack.i.l.bf16 %v7943_v50  ;;  %v552_v50 = vmax.f32 %v446_v19, 0.0  ;;  %v5960_v19 = vunpack.i.l.bf16 %v7907_v32 }
 0x187   :  { %6288 = vrot.lane.b32.xlu0 %v6287_v51, %s6958_s17  ;;  %v859_v51 = vld [vmem:[#allocation2 + $0xb2] sm:$0xff]  ;;  %704 = vst.msk [vmem:[#allocation2 + $0x2b9] sm:$0xff] %vm563_vm0, %v551_v29 }
 0x188   :  { %v5994_v60 = vpop.permute.xlu1 %5993  ;;  %705 = vst.msk [vmem:[#allocation2 + $0x2c1] sm:$0xff] %vm563_vm0, %v552_v50  ;;  %v6322_v57 = vpack.i.bf16 %v859_v51, %v1116_v55 }
 0x189   :  { %v5996_v53 = vunpack.i.h.bf16 %v5994_v60  ;;  %v5995_v2 = vunpack.i.l.bf16 %v5994_v60  ;;  %v5999_v6 = vpop.permute.xlu0 %5998  ;;  %v1115_v60 = vld [vmem:[#allocation2 + $0xd8] sm:$0xff] }
 0x18a   :  { %v6001_v13 = vunpack.i.h.bf16 %v5999_v6  ;;  %v6000_v58 = vunpack.i.l.bf16 %v5999_v6  ;;  %6278 = vrot.lane.b32.xlu1 %v6277_v61, %s6956_s14  ;;  %v5606_v61 = vpop.f32.mrb[22].mxu1 }
 0x18b   :  { %6293 = vrot.lane.b32.xlu0 %v6292_v8, %s6959_s1  ;;  %v3087_v15 = vsel %vm2893_vm3, %v3023_v7, %v5995_v2  ;;  %v2894_v5 = vsel %vm2893_vm3, %v2829_v28, %v5996_v53  ;;  %v858_v28 = vld [vmem:[#allocation2 + $0xaa] sm:$0xff]  ;;  %v8008_v53 = vld [vmem:[#allocation2 + $0xda] sm:$0xff]  ;;  %v456_v2 = vadd.f32 %v7935_v44, %v5606_v61  ;;  %v450_v6 = vpop.f32.mrb[23].mxu1  ;;  %v1276_v8 = vld [vmem:[#allocation2 + $0x292] sm:$0xff] }
 0x18c   :  { %v6004_v18 = vpop.permute.xlu1 %6003  ;;  %v3151_v21 = vsel %vm2958_vm4, %v3087_v15, %v6000_v58  ;;  %v2959_v30 = vsel %vm2958_vm4, %v2894_v5, %v6001_v13  ;;  %v451_v42 = vadd.f32 %v7935_v44, %v450_v6  ;;  %5697 = vmatmul.mubr.msk.f32.gmra.mrb[78].mxu0 %vm563_vm0, %v1276_v8  ;;  %v6312_v12 = vpack.i.bf16 %v858_v28, %v1115_v60  ;;  %v8021_v58 = vld [vmem:[#allocation2 + $0xf9] sm:$0xff] }
 0x18d   :  { %v6006_v47 = vunpack.i.h.bf16 %v6004_v18  ;;  %v6005_v26 = vunpack.i.l.bf16 %v6004_v18  ;;  %v7968_v27 = vpop.permute.xlu0 %6018  ;;  %3514 = vmatprep.mubr.f32.mxu1 %v3151_v21  ;;  %v554_v63 = vmax.f32 %v456_v2, 0.0  ;;  %v6327_v13 = vpack.i.bf16 %v7929_v46, %v8008_v53  ;;  %v8035_v18 = vld [vmem:[#allocation2 + $0xfa] sm:$0xff]  ;;  %v861_v21 = vld [vmem:[#allocation2 + $0xca] sm:$0xff] }
 0x18e   :  { %6283 = vrot.lane.b32.xlu1 %v6282_v20, %s6959_s1  ;;  %3515 = vmatmul.mubr.f32.vlgmr.msra.gmra.mrb[32].mxu1 %v2959_v30  ;;  %v553_v7 = vmax.f32 %v451_v42, 0.0  ;;  %v6332_v5 = vpack.i.bf16 %v1116_v55, %v8021_v58  ;;  %v6347_v46 = vpack.i.bf16 %v1115_v60, %v8024_v24  ;;  %v1118_v20 = vld [vmem:[#allocation2 + $0xf8] sm:$0xff]  ;;  %v8064_v55 = vld [vmem:[#allocation2 + $0x109] sm:$0xff] }
 0x18f   :  { %6298 = vrot.lane.b32.xlu0 %v6297_v49, %s6956_s14  ;;  %v3088_v16 = vsel %vm2893_vm3, %v3024_v36, %v6005_v26  ;;  %v2895_v1 = vsel %vm2893_vm3, %v2830_v37, %v6006_v47  ;;  %707 = vst.msk [vmem:[#allocation2 + $0x2d9] sm:$0xff] %vm563_vm0, %v554_v63  ;;  %v6337_v47 = vpack.i.bf16 %v7972_v10, %v8035_v18  ;;  %v1277_v36 = vld [vmem:[#allocation2 + $0x2a2] sm:$0xff]  ;;  %v8046_v37 = vld [vmem:[#allocation2 + $0xf2] sm:$0xff] }
 0x190   :  { %v7985_v22 = vpop.permute.xlu1 %6008  ;;  %v3152_v3 = vsel %vm2958_vm4, %v3088_v16, %v5975_v33  ;;  %v2960_v45 = vsel %vm2958_vm4, %v2895_v1, %v5976_v31  ;;  %706 = vst.msk [vmem:[#allocation2 + $0x2d1] sm:$0xff] %vm563_vm0, %v553_v7  ;;  %v6352_v49 = vpack.i.bf16 %v861_v21, %v1118_v20  ;;  %v1117_v31 = vld [vmem:[#allocation2 + $0xf0] sm:$0xff]  ;;  %v5609_v33 = vpop.f32.mrb[24].mxu1  ;;  %5699 = vmatprep.mubr.msk.f32.mxu0 %vm563_vm0, %v1277_v36  ;;  %v718_v61 = vld [vmem:[#allocation2 + $0x18] sm:$0xff] }
 0x191   :  { %v7992_v48 = vpop.permute.xlu0 %6023  ;;  %3519 = vmatprep.mubr.f32.mxu1 %v3152_v3  ;;  %v466_v38 = vadd.f32 %v7935_v44, %v5609_v33  ;;  %v460_v16 = vpop.f32.mrb[25].mxu1  ;;  %v1278_v1 = vld [vmem:[#allocation2 + $0x2aa] sm:$0xff]  ;;  %v6010_v40 = vunpack.i.l.bf16 %v7985_v22  ;;  %v6357_v51 = vpack.i.bf16 %v7979_v11, %v8046_v37  ;;  %v5961_v11 = vunpack.i.h.bf16 %v7907_v32  ;;  %v975_v42 = vld [vmem:[#allocation2 + $0x39] sm:$0xff] }
 0x192   :  { %6303 = vrot.lane.b32.xlu1 %v6302_v9, %s6958_s17  ;;  %3520 = vmatmul.mubr.f32.gmra.mrb[34].mxu1 %v2960_v45  ;;  %v461_v10 = vadd.f32 %v7935_v44, %v460_v16  ;;  %v6342_v9 = vpack.i.bf16 %v860_v54, %v1117_v31  ;;  %v8057_v45 = vld [vmem:[#allocation2 + $0x111] sm:$0xff]  ;;  %v6377_v2 = vpack.i.bf16 %v1117_v31, %v8064_v55  ;;  %v719_v54 = vld [vmem:[#allocation2 + $0x20] sm:$0xff] }
 0x193   :  { %6318 = vrot.lane.b32.xlu0 %v6317_v34, %s6958_s17  ;;  %5700 = vmatmul.mubr.msk.f32.gmra.mrb[80].mxu0 %vm563_vm0, %v1278_v1  ;;  %v556_v25 = vmax.f32 %v466_v38, 0.0  ;;  %v6011_v34 = vunpack.i.h.bf16 %v7985_v22  ;;  %v6362_v22 = vpack.i.bf16 %v1118_v20, %v8057_v45  ;;  %v974_v60 = vld [vmem:[#allocation2 + $0x31] sm:$0xff]  ;;  %v2831_v8 = vsel %vm563_vm0, %v718_v61, %v5960_v19  ;;  %v1119_v19 = vld [vmem:[#allocation2 + $0x108] sm:$0xff] }
 0x194   :  { %v8000_v59 = vpop.permute.xlu1 %6013  ;;  %v555_v29 = vmax.f32 %v461_v10, 0.0  ;;  %v3025_v6 = vsel %vm563_vm0, %v974_v60, %v6010_v40  ;;  %v8081_v7 = vld [vmem:[#allocation2 + $0x112] sm:$0xff]  ;;  %v2832_v36 = vsel %vm563_vm0, %v719_v54, %v5961_v11  ;;  %v5612_v40 = vpop.f32.mrb[26].mxu1  ;;  %v8119_v61 = vld [vmem:[#allocation2 + $0x129] sm:$0xff] }
 0x195   :  { %v8005_v4 = vpop.permute.xlu0 %6028  ;;  %709 = vst.msk [vmem:[#allocation2 + $0x2f1] sm:$0xff] %vm563_vm0, %v556_v25  ;;  %v1120_v20 = vld [vmem:[#allocation2 + $0x110] sm:$0xff]  ;;  %v6367_v33 = vpack.i.bf16 %v8021_v58, %v8081_v7  ;;  %v476_v58 = vadd.f32 %v7935_v44, %v5612_v40 }
 0x196   :  { %6308 = vrot.lane.b32.xlu1 %v6307_v56, %s6956_s14  ;;  %708 = vst.msk [vmem:[#allocation2 + $0x2e9] sm:$0xff] %vm563_vm0, %v555_v29  ;;  %v6382_v1 = vpack.i.bf16 %v7995_v0, %v1120_v20  ;;  %v8104_v25 = vld [vmem:[#allocation2 + $0x10a] sm:$0xff]  ;;  %v1280_v29 = vld [vmem:[#allocation2 + $0x2c2] sm:$0xff]  ;;  %v1282_v40 = vld [vmem:[#allocation2 + $0x2da] sm:$0xff] }
 0x197   :  { %6323 = vrot.lane.b32.xlu0 %v6322_v57, %s6959_s1  ;;  %v6387_v60 = vpack.i.bf16 %v8024_v24, %v8104_v25  ;;  %v976_v54 = vld [vmem:[#allocation2 + $0x49] sm:$0xff] }
 0x198   :  { %v8015_v43 = vpop.permute.xlu1 %6033 }
 0x199   :  { %v8017_v23 = vpop.permute.xlu0 %6053 }
 0x19a   :  { %6313 = vrot.lane.b32.xlu1 %v6312_v12, %s6959_s1  ;;  %v6056_v56 = vunpack.i.h.bf16 %v8017_v23  ;;  %v6055_v57 = vunpack.i.l.bf16 %v8017_v23 }
 0x19b   :  { %6328 = vrot.lane.b32.xlu0 %v6327_v13, %s6956_s14 }
 0x19c   :  { %v8029_v15 = vpop.permute.xlu1 %6038  ;;  %v3089_v32 = vsel %vm2893_vm3, %v3025_v6, %v6055_v57  ;;  %v6372_v57 = vpack.i.bf16 %v8008_v53, %v1119_v19  ;;  %v5990_v6 = vunpack.i.l.bf16 %v7939_v52 }
 0x19d   :  { %v8032_v17 = vpop.permute.xlu0 %6063 }
 0x19e   :  { %6333 = vrot.lane.b32.xlu1 %v6332_v5, %s6958_s17  ;;  %v6065_v28 = vunpack.i.l.bf16 %v8032_v17  ;;  %v6066_v12 = vunpack.i.h.bf16 %v8032_v17  ;;  %v3026_v5 = vsel %vm563_vm0, %v975_v42, %v6011_v34  ;;  %v1279_v34 = vld [vmem:[#allocation2 + $0x2ba] sm:$0xff]  ;;  %v8132_v42 = vld [vmem:[#allocation2 + $0x12a] sm:$0xff] }
 0x19f   :  { %6348 = vrot.lane.b32.xlu0 %v6347_v46, %s6958_s17  ;;  %v2896_v46 = vsel %vm2893_vm3, %v2831_v8, %v6056_v56  ;;  %5702 = vmatprep.mubr.msk.f32.mxu0 %vm563_vm0, %v1279_v34 }
 0x1a0   :  { %v8039_v30 = vpop.permute.xlu1 %6043  ;;  %v3090_v21 = vsel %vm2893_vm3, %v3026_v5, %v6065_v28  ;;  %v2897_v10 = vsel %vm2893_vm3, %v2832_v36, %v6066_v12  ;;  %v558_v28 = vmax.f32 %v476_v58, 0.0  ;;  %5703 = vmatmul.mubr.msk.f32.gmra.mrb[82].mxu0 %vm563_vm0, %v1280_v29  ;;  %v8134_v12 = vld [vmem:[#allocation2 + $0x128] sm:$0xff] }
 0x1a1   :  { %v8043_v26 = vpop.permute.xlu0 %6068 }
 0x1a2   :  { %6338 = vrot.lane.b32.xlu1 %v6337_v47, %s6956_s14  ;;  %v6035_v47 = vunpack.i.l.bf16 %v8015_v43  ;;  %711 = vst.msk [vmem:[#allocation2 + $0x309] sm:$0xff] %vm563_vm0, %v558_v28 }
 0x1a3   :  { %6353 = vrot.lane.b32.xlu0 %v6352_v49, %s6959_s1 }
 0x1a4   :  { %v8055_v3 = vpop.permute.xlu1 %6048  ;;  %v3154_v16 = vsel %vm2958_vm4, %v3090_v21, %v6035_v47  ;;  %v720_v21 = vld [vmem:[#allocation2 + $0x30] sm:$0xff] }
 0x1a5   :  { %v8060_v50 = vpop.permute.xlu0 %6078  ;;  %v2833_v36 = vsel %vm563_vm0, %v720_v21, %v5990_v6  ;;  %v977_v6 = vld [vmem:[#allocation2 + $0x51] sm:$0xff]  ;;  %v8173_v21 = vld [vmem:[#allocation2 + $0x139] sm:$0xff] }
 0x1a6   :  { %6343 = vrot.lane.b32.xlu1 %v6342_v9, %s6959_s1  ;;  %v6036_v9 = vunpack.i.h.bf16 %v8015_v43 }
 0x1a7   :  { %6358 = vrot.lane.b32.xlu0 %v6357_v51, %s6956_s14  ;;  %v470_v51 = vpop.f32.mrb[27].mxu1 }
 0x1a8   :  { %v6059_v62 = vpop.permute.xlu1 %6058  ;;  %v471_v0 = vadd.f32 %v7935_v44, %v470_v51  ;;  %v2962_v43 = vsel %vm2958_vm4, %v2897_v10, %v6036_v9 }
 0x1a9   :  { %v6061_v63 = vunpack.i.h.bf16 %v6059_v62  ;;  %v6060_v23 = vunpack.i.l.bf16 %v6059_v62  ;;  %v8079_v13 = vpop.permute.xlu0 %6083  ;;  %v8122_v62 = vld [vmem:[#allocation2 + $0x121] sm:$0xff] }
 0x1aa   :  { %6363 = vrot.lane.b32.xlu1 %v6362_v22, %s6958_s17  ;;  %v557_v11 = vmax.f32 %v471_v0, 0.0  ;;  %v6407_v8 = vpack.i.bf16 %v1119_v19, %v8122_v62 }
 0x1ab   :  { %6378 = vrot.lane.b32.xlu0 %v6377_v2, %s6958_s17  ;;  %v3153_v17 = vsel %vm2958_vm4, %v3089_v32, %v6060_v23  ;;  %v2961_v49 = vsel %vm2958_vm4, %v2896_v46, %v6061_v63  ;;  %v6392_v2 = vpack.i.bf16 %v1120_v20, %v8119_v61  ;;  %v6070_v63 = vunpack.i.l.bf16 %v8043_v26 }
 0x1ac   :  { %v8092_v31 = vpop.permute.xlu1 %6073  ;;  %3524 = vmatprep.mubr.f32.mxu1 %v3153_v17  ;;  %710 = vst.msk [vmem:[#allocation2 + $0x301] sm:$0xff] %vm563_vm0, %v557_v11  ;;  %v5991_v23 = vunpack.i.h.bf16 %v7939_v52  ;;  %v6397_v32 = vpack.i.bf16 %v8057_v45, %v8132_v42  ;;  %v6412_v46 = vpack.i.bf16 %v8035_v18, %v8134_v12  ;;  %v6071_v20 = vunpack.i.h.bf16 %v8043_v26  ;;  %v1281_v52 = vld [vmem:[#allocation2 + $0x2d2] sm:$0xff]  ;;  %v8150_v18 = vld [vmem:[#allocation2 + $0x122] sm:$0xff] }
 0x1ad   :  { %v8097_v38 = vpop.permute.xlu0 %6088  ;;  %3525 = vmatmul.mubr.f32.gmra.mrb[36].mxu1 %v2961_v49  ;;  %v3027_v45 = vsel %vm563_vm0, %v976_v54, %v6070_v63  ;;  %5705 = vmatprep.mubr.msk.f32.mxu0 %vm563_vm0, %v1281_v52  ;;  %v1124_v52 = vld [vmem:[#allocation2 + $0x140] sm:$0xff] }
 0x1ae   :  { %6368 = vrot.lane.b32.xlu1 %v6367_v33, %s6956_s14  ;;  %3529 = vmatprep.mubr.f32.mxu1 %v3154_v16  ;;  %v1121_v33 = vld [vmem:[#allocation2 + $0x120] sm:$0xff]  ;;  %v5615_v16 = vpop.f32.mrb[28].mxu1 }
 0x1af   :  { %6383 = vrot.lane.b32.xlu0 %v6382_v1, %s6959_s1  ;;  %v486_v26 = vadd.f32 %v7935_v44, %v5615_v16  ;;  %v480_v19 = vpop.f32.mrb[29].mxu1  ;;  %5706 = vmatmul.mubr.msk.f32.gmra.mrb[84].mxu0 %vm563_vm0, %v1282_v40  ;;  %v6402_v29 = vpack.i.bf16 %v8046_v37, %v1121_v33  ;;  %v8189_v16 = vld [vmem:[#allocation2 + $0x142] sm:$0xff]  ;;  %v8201_v40 = vld [vmem:[#allocation2 + $0x13a] sm:$0xff] }
 0x1b0   :  { %v8110_v56 = vpop.permute.xlu1 %6098  ;;  %v481_v34 = vadd.f32 %v7935_v44, %v480_v19  ;;  %v5618_v19 = vpop.f32.mrb[30].mxu1 }
 0x1b1   :  { %v8115_v22 = vpop.permute.xlu0 %6093  ;;  %3530 = vmatmul.mubr.f32.gmra.mrb[38].mxu1 %v2962_v43 }
 0x1b2   :  { %6373 = vrot.lane.b32.xlu1 %v6372_v57, %s6959_s1  ;;  %v560_v57 = vmax.f32 %v486_v26, 0.0  ;;  %v559_v63 = vmax.f32 %v481_v34, 0.0  ;;  %v6095_v37 = vunpack.i.l.bf16 %v8115_v22  ;;  %v1123_v26 = vld [vmem:[#allocation2 + $0x138] sm:$0xff] }
 0x1b3   :  { %6388 = vrot.lane.b32.xlu0 %v6387_v60, %s6956_s14  ;;  %v1284_v34 = vld [vmem:[#allocation2 + $0x2f2] sm:$0xff] }
 0x1b4   :  { %v8127_v53 = vpop.permute.xlu1 %6103  ;;  %713 = vst.msk [vmem:[#allocation2 + $0x321] sm:$0xff] %vm563_vm0, %v560_v57  ;;  %712 = vst.msk [vmem:[#allocation2 + $0x319] sm:$0xff] %vm563_vm0, %v559_v63  ;;  %v8215_v57 = vld [vmem:[#allocation2 + $0x159] sm:$0xff]  ;;  %v6050_v63 = vunpack.i.l.bf16 %v8055_v3 }
 0x1b5   :  { %v6114_v24 = vpop.permute.xlu0 %6113 }
 0x1b6   :  { %6393 = vrot.lane.b32.xlu1 %v6392_v2, %s6958_s17  ;;  %v6116_v1 = vunpack.i.h.bf16 %v6114_v24  ;;  %v6115_v10 = vunpack.i.l.bf16 %v6114_v24  ;;  %v6417_v2 = vpack.i.bf16 %v8064_v55, %v8150_v18  ;;  %v8166_v24 = vld [vmem:[#allocation2 + $0x141] sm:$0xff] }
 0x1b7   :  { %6408 = vrot.lane.b32.xlu0 %v6407_v8, %s6958_s17  ;;  %v721_v8 = vld [vmem:[#allocation2 + $0x38] sm:$0xff] }
 0x1b8   :  { %v6109_v5 = vpop.permute.xlu1 %6108 }
 0x1b9   :  { %v6111_v47 = vunpack.i.h.bf16 %v6109_v5  ;;  %v6110_v17 = vunpack.i.l.bf16 %v6109_v5  ;;  %v8145_v49 = vpop.permute.xlu0 %6133  ;;  %v6096_v5 = vunpack.i.h.bf16 %v8115_v22 }
 0x1ba   :  { %6398 = vrot.lane.b32.xlu1 %v6397_v32, %s6956_s14  ;;  %v3028_v32 = vsel %vm563_vm0, %v977_v6, %v6071_v20  ;;  %v6422_v20 = vpack.i.bf16 %v8134_v12, %v8166_v24  ;;  %v6427_v12 = vpack.i.bf16 %v8119_v61, %v8189_v16  ;;  %v8229_v6 = vld [vmem:[#allocation2 + $0x15a] sm:$0xff] }
 0x1bb   :  { %6413 = vrot.lane.b32.xlu0 %v6412_v46, %s6959_s1  ;;  %v3091_v9 = vsel %vm2893_vm3, %v3027_v45, %v6110_v17  ;;  %v2898_v58 = vsel %vm2893_vm3, %v2833_v36, %v6111_v47  ;;  %v2834_v46 = vsel %vm563_vm0, %v721_v8, %v5991_v23  ;;  %v6437_v36 = vpack.i.bf16 %v1121_v33, %v8173_v21  ;;  %v1283_v33 = vld [vmem:[#allocation2 + $0x2ea] sm:$0xff]  ;;  %v1126_v8 = vld [vmem:[#allocation2 + $0x158] sm:$0xff] }
 0x1bc   :  { %v6119_v51 = vpop.permute.xlu1 %6118  ;;  %v3155_v0 = vsel %vm2958_vm4, %v3091_v9, %v6115_v10  ;;  %v2963_v43 = vsel %vm2958_vm4, %v2898_v58, %v6116_v1  ;;  %v6442_v45 = vpack.i.bf16 %v8081_v7, %v1124_v52  ;;  %v496_v9 = vadd.f32 %v7935_v44, %v5618_v19  ;;  %5708 = vmatprep.mubr.msk.f32.mxu0 %vm563_vm0, %v1283_v33  ;;  %v490_v58 = vpop.f32.mrb[31].mxu1 }
 0x1bd   :  { %v6121_v28 = vunpack.i.h.bf16 %v6119_v51  ;;  %v6120_v60 = vunpack.i.l.bf16 %v6119_v51  ;;  %v8162_v11 = vpop.permute.xlu0 %6138  ;;  %3534 = vmatprep.mubr.f32.mxu1 %v3155_v0  ;;  %v491_v61 = vadd.f32 %v7935_v44, %v490_v58  ;;  %5709 = vmatmul.mubr.msk.f32.gmra.mrb[86].mxu0 %vm563_vm0, %v1284_v34  ;;  %v6432_v51 = vpack.i.bf16 %v8104_v25, %v1123_v26  ;;  %v979_v58 = vld [vmem:[#allocation2 + $0x69] sm:$0xff]  ;;  %v1132_v34 = vld [vmem:[#allocation2 + $0x1a0] sm:$0xff] }
 0x1be   :  { %6403 = vrot.lane.b32.xlu1 %v6402_v29, %s6959_s1  ;;  %3535 = vmatmul.mubr.f32.gmra.mrb[40].mxu1 %v2963_v43  ;;  %v562_v0 = vmax.f32 %v496_v9, 0.0  ;;  %v6447_v43 = vpack.i.bf16 %v8122_v62, %v8201_v40  ;;  %v6452_v25 = vpack.i.bf16 %v1124_v52, %v8215_v57 }
 0x1bf   :  { %6418 = vrot.lane.b32.xlu0 %v6417_v2, %s6956_s14  ;;  %v3092_v55 = vsel %vm2893_vm3, %v3028_v32, %v6120_v60  ;;  %v2899_v47 = vsel %vm2893_vm3, %v2834_v46, %v6121_v28  ;;  %v561_v28 = vmax.f32 %v491_v61, 0.0  ;;  %v8218_v60 = vld [vmem:[#allocation2 + $0x151] sm:$0xff]  ;;  %v6457_v32 = vpack.i.bf16 %v8166_v24, %v8229_v6 }
 0x1c0   :  { %v8180_v22 = vpop.permute.xlu1 %6123  ;;  %v3156_v17 = vsel %vm2958_vm4, %v3092_v55, %v6095_v37  ;;  %v2964_v23 = vsel %vm2958_vm4, %v2899_v47, %v6096_v5  ;;  %715 = vst.msk [vmem:[#allocation2 + $0x339] sm:$0xff] %vm563_vm0, %v562_v0  ;;  %v6467_v62 = vpack.i.bf16 %v1123_v26, %v8218_v60  ;;  %v8239_v46 = vld [vmem:[#allocation2 + $0x150] sm:$0xff]  ;;  %v6051_v26 = vunpack.i.h.bf16 %v8055_v3 }
 0x1c1   :  { %v8186_v54 = vpop.permute.xlu0 %6143  ;;  %3539 = vmatprep.mubr.f32.mxu1 %v3156_v17  ;;  %714 = vst.msk [vmem:[#allocation2 + $0x331] sm:$0xff] %vm563_vm0, %v561_v28  ;;  %v6125_v5 = vunpack.i.l.bf16 %v8180_v22  ;;  %v6126_v55 = vunpack.i.h.bf16 %v8180_v22  ;;  %v6472_v17 = vpack.i.bf16 %v8132_v42, %v1126_v8  ;;  %v1286_v24 = vld [vmem:[#allocation2 + $0x30a] sm:$0xff]  ;;  %v6462_v22 = vpack.i.bf16 %v8150_v18, %v8239_v46  ;;  %v978_v42 = vld [vmem:[#allocation2 + $0x61] sm:$0xff] }
 0x1c2   :  { %6423 = vrot.lane.b32.xlu1 %v6422_v20, %s6958_s17  ;;  %3540 = vmatmul.mubr.f32.gmra.mrb[42].mxu1 %v2964_v23  ;;  %v8245_v20 = vld [vmem:[#allocation2 + $0x152] sm:$0xff]  ;;  %v1285_v23 = vld [vmem:[#allocation2 + $0x302] sm:$0xff] }
 0x1c3   :  { %6438 = vrot.lane.b32.xlu0 %v6437_v36, %s6958_s17  ;;  %5711 = vmatprep.mubr.msk.f32.mxu0 %vm563_vm0, %v1285_v23  ;;  %v3029_v33 = vsel %vm563_vm0, %v978_v42, %v6125_v5  ;;  %v3030_v3 = vsel %vm563_vm0, %v979_v58, %v6126_v55  ;;  %v8285_v42 = vld [vmem:[#allocation2 + $0x169] sm:$0xff] }
 0x1c4   :  { %v8193_v1 = vpop.permute.xlu1 %6128  ;;  %5712 = vmatmul.mubr.msk.f32.gmra.mrb[88].mxu0 %vm563_vm0, %v1286_v24 }
 0x1c5   :  { %v8197_v10 = vpop.permute.xlu0 %6163 }
 0x1c6   :  { %6428 = vrot.lane.b32.xlu1 %v6427_v12, %s6956_s14  ;;  %v6166_v36 = vunpack.i.h.bf16 %v8197_v10  ;;  %v6165_v52 = vunpack.i.l.bf16 %v8197_v10  ;;  %v6477_v10 = vpack.i.bf16 %v8173_v21, %v8245_v20 }
 0x1c7   :  { %6443 = vrot.lane.b32.xlu0 %v6442_v45, %s6959_s1  ;;  %v722_v45 = vld [vmem:[#allocation2 + $0x48] sm:$0xff] }
 0x1c8   :  { %v8208_v7 = vpop.permute.xlu1 %6148  ;;  %v2835_v9 = vsel %vm563_vm0, %v722_v45, %v6050_v63  ;;  %v3093_v21 = vsel %vm2893_vm3, %v3029_v33, %v6165_v52  ;;  %v8298_v33 = vld [vmem:[#allocation2 + $0x168] sm:$0xff] }
 0x1c9   :  { %v8211_v29 = vpop.permute.xlu0 %6173  ;;  %v2900_v28 = vsel %vm2893_vm3, %v2835_v9, %v6166_v36  ;;  %v6150_v63 = vunpack.i.l.bf16 %v8208_v7  ;;  %v1287_v9 = vld [vmem:[#allocation2 + $0x31a] sm:$0xff] }
 0x1ca   :  { %6433 = vrot.lane.b32.xlu1 %v6432_v51, %s6959_s1  ;;  %v6175_v12 = vunpack.i.l.bf16 %v8211_v29  ;;  %v6176_v61 = vunpack.i.h.bf16 %v8211_v29  ;;  %5714 = vmatprep.mubr.msk.f32.mxu0 %vm563_vm0, %v1287_v9 }
 0x1cb   :  { %6448 = vrot.lane.b32.xlu0 %v6447_v43, %s6956_s14  ;;  %v8264_v43 = vld [vmem:[#allocation2 + $0x171] sm:$0xff] }
 0x1cc   :  { %v8223_v44 = vpop.permute.xlu1 %6153  ;;  %v6482_v23 = vpack.i.bf16 %v1126_v8, %v8264_v43 }
 0x1cd   :  { %v8226_v2 = vpop.permute.xlu0 %6178 }
 0x1ce   :  { %6453 = vrot.lane.b32.xlu1 %v6452_v25, %s6958_s17  ;;  %v3094_v25 = vsel %vm2893_vm3, %v3030_v3, %v6175_v12 }
 0x1cf   :  { %6468 = vrot.lane.b32.xlu0 %v6467_v62, %s6958_s17  ;;  %v875_v62 = vld [vmem:[#allocation2 + $0x172] sm:$0xff]  ;;  %v3158_v12 = vsel %vm2958_vm4, %v3094_v25, %v6150_v63  ;;  %v6181_v63 = vunpack.i.h.bf16 %v8226_v2 }
 0x1d0   :  { %v8235_v37 = vpop.permute.xlu1 %6158  ;;  %v1131_v25 = vld [vmem:[#allocation2 + $0x198] sm:$0xff] }
 0x1d1   :  { %10054 = vst [vmem:[#allocation6_spill] sm:$0xff] %v8235_v37  ;;  %v8242_v47 = vpop.permute.xlu0 %6188  ;;  %v8617_v37 = vld [vmem:[#allocation2 + $0x290] sm:$0xff] }
 0x1d2   :  { %10055 = vst [vmem:[#allocation7_spill] sm:$0xff] %v8242_v47  ;;  %6458 = vrot.lane.b32.xlu1 %v6457_v32, %s6956_s14  ;;  %v6492_v32 = vpack.i.bf16 %v875_v62, %v1132_v34  ;;  %v8303_v34 = vld [vmem:[#allocation2 + $0x170] sm:$0xff] }
 0x1d3   :  { %6473 = vrot.lane.b32.xlu0 %v6472_v17, %s6959_s1  ;;  %v723_v17 = vld [vmem:[#allocation2 + $0x50] sm:$0xff] }
 0x1d4   :  { %v6169_v19 = vpop.permute.xlu1 %6168  ;;  %v2836_v36 = vsel %vm563_vm0, %v723_v17, %v6051_v26  ;;  %v6487_v26 = vpack.i.bf16 %v8215_v57, %v875_v62  ;;  %v1288_v57 = vld [vmem:[#allocation2 + $0x322] sm:$0xff] }
 0x1d5   :  { %v6171_v51 = vunpack.i.h.bf16 %v6169_v19  ;;  %v6170_v18 = vunpack.i.l.bf16 %v6169_v19  ;;  %v8262_v0 = vpop.permute.xlu0 %6193  ;;  %v2901_v24 = vsel %vm2893_vm3, %v2836_v36, %v6176_v61  ;;  %5715 = vmatmul.mubr.msk.f32.gmra.mrb[90].mxu0 %vm563_vm0, %v1288_v57  ;;  %v981_v36 = vld [vmem:[#allocation2 + $0x81] sm:$0xff] }
 0x1d6   :  { %10056 = vst [vmem:[#allocation8_spill] sm:$0xff] %v8262_v0  ;;  %6463 = vrot.lane.b32.xlu1 %v6462_v22, %s6959_s1  ;;  %v6151_v22 = vunpack.i.h.bf16 %v8208_v7 }
 0x1d7   :  { %6478 = vrot.lane.b32.xlu0 %v6477_v10, %s6956_s14  ;;  %v3157_v29 = vsel %vm2958_vm4, %v3093_v21, %v6170_v18  ;;  %v2965_v5 = vsel %vm2958_vm4, %v2900_v28, %v6171_v51  ;;  %v6502_v10 = vpack.i.bf16 %v8239_v46, %v8285_v42  ;;  %v6497_v46 = vpack.i.bf16 %v8201_v40, %v8298_v33  ;;  %v874_v28 = vld [vmem:[#allocation2 + $0x16a] sm:$0xff] }
 0x1d8   :  { %v8275_v55 = vpop.permute.xlu1 %6183  ;;  %3544 = vmatprep.mubr.f32.mxu1 %v3157_v29  ;;  %v2966_v8 = vsel %vm2958_vm4, %v2901_v24, %v6151_v22  ;;  %v6155_v51 = vunpack.i.l.bf16 %v8223_v44  ;;  %v6180_v18 = vunpack.i.l.bf16 %v8226_v2  ;;  %v6507_v21 = vpack.i.bf16 %v8189_v16, %v8303_v34  ;;  %v980_v16 = vld [vmem:[#allocation2 + $0x79] sm:$0xff] }
 0x1d9   :  { %v8279_v52 = vpop.permute.xlu0 %6198  ;;  %3545 = vmatmul.mubr.f32.gmra.mrb[44].mxu1 %v2965_v5  ;;  %v6156_v40 = vunpack.i.h.bf16 %v8223_v44  ;;  %v6517_v17 = vpack.i.bf16 %v874_v28, %v1131_v25 }
 0x1da   :  { %10057 = vst [vmem:[#allocation9_spill] sm:$0xff] %v8279_v52  ;;  %6483 = vrot.lane.b32.xlu1 %v6482_v23, %s6958_s17  ;;  %3549 = vmatprep.mubr.f32.mxu1 %v3158_v12  ;;  %v6512_v23 = vpack.i.bf16 %v8218_v60, %v874_v28  ;;  %v3031_v2 = vsel %vm563_vm0, %v980_v16, %v6180_v18  ;;  %v8335_v28 = vld [vmem:[#allocation2 + $0x248] sm:$0xff]  ;;  %v1289_v18 = vld [vmem:[#allocation2 + $0x332] sm:$0xff] }
 0x1db   :  { %6493 = vrot.lane.b32.xlu0 %v6492_v32, %s6959_s1  ;;  %5717 = vmatprep.mubr.msk.f32.mxu0 %vm563_vm0, %v1289_v18 }
 0x1dc   :  { %v8288_v45 = vpop.permute.xlu1 %6203 }
 0x1dd   :  { %v8292_v19 = vpop.permute.xlu0 %6218  ;;  %3550 = vmatmul.mubr.f32.gmra.mrb[46].mxu1 %v2966_v8  ;;  %v8296_v7 = vpop.f32.mrb[32].mxu0  ;;  %v1194_v8 = vld [vmem:[#allocation2 + $0x189] sm:$0xff] }
 0x1de   :  { %6488 = vrot.lane.b32.xlu1 %v6487_v26, %s6956_s14  ;;  %v8301_v58 = vpop.f32.mrb[33].mxu0  ;;  %v724_v26 = vld [vmem:[#allocation2 + $0x60] sm:$0xff]  ;;  %v6221_v44 = vunpack.i.h.bf16 %v8292_v19  ;;  %v6220_v57 = vunpack.i.l.bf16 %v8292_v19 }
 0x1df   :  { %6503 = vrot.lane.b32.xlu0 %v6502_v10, %s6958_s17  ;;  %v3032_v10 = vsel %vm563_vm0, %v981_v36, %v6155_v51  ;;  %v2837_v60 = vsel %vm563_vm0, %v724_v26, %v6181_v63  ;;  %v1290_v19 = vld [vmem:[#allocation2 + $0x33a] sm:$0xff]  ;;  %v4285_v63 = vld [vmem:[%s10044_s5 + $0x8] sm:$0xff] }
 0x1e0   :  { %v8308_v61 = vpop.permute.xlu1 %6208  ;;  %5718 = vmatmul.mubr.msk.f32.gmra.mrb[92].mxu0 %vm563_vm0, %v1290_v19  ;;  %v1292_v19 = vld [vmem:[#allocation2 + $0x352] sm:$0xff] }
 0x1e1   :  { %v6224_v3 = vpop.permute.xlu0 %6223  ;;  %v8316_v62 = vpop.f32.mrb[34].mxu0 }
 0x1e2   :  { %6498 = vrot.lane.b32.xlu1 %v6497_v46, %s6959_s1  ;;  %v8320_v29 = vpop.f32.mrb[35].mxu0  ;;  %v6225_v5 = vunpack.i.l.bf16 %v6224_v3  ;;  %v6226_v46 = vunpack.i.h.bf16 %v6224_v3  ;;  %v4284_v3 = vld [vmem:[%s10044_s5] sm:$0xff] }
 0x1e3   :  { %6508 = vrot.lane.b32.xlu0 %v6507_v21, %s6959_s1  ;;  %v885_v21 = vld [vmem:[#allocation2 + $0x21a] sm:$0xff] }
 0x1e4   :  { %v6214_v32 = vpop.permute.xlu1 %6213  ;;  %v3096_v16 = vsel %vm2893_vm3, %v3032_v10, %v6225_v5  ;;  %v6542_v26 = vpack.i.bf16 %v885_v21, %v8335_v28  ;;  %v1067_v10 = vld [vmem:[#allocation2 + $0x18a] sm:$0xff] }
 0x1e5   :  { %v6216_v12 = vunpack.i.h.bf16 %v6214_v32  ;;  %v6215_v24 = vunpack.i.l.bf16 %v6214_v32  ;;  %v8325_v22 = vpop.permute.xlu0 %6228  ;;  %v8329_v9 = vpop.f32.mrb[36].mxu0  ;;  %v4286_v21 = vld [vmem:[%s10044_s5 + $0x10] sm:$0xff] }
 0x1e6   :  { %10058 = vst [vmem:[#allocation10_spill] sm:$0xff] %v8329_v9  ;;  %6518 = vrot.lane.b32.xlu1 %v6517_v17, %s6959_s1  ;;  %v8337_v25 = vpop.f32.mrb[37].mxu0  ;;  %v6205_v17 = vunpack.i.l.bf16 %v8288_v45  ;;  %v5915_v9 = vpack.c.bf16 %v4285_v63, %v4284_v3 }
 0x1e7   :  { %10059 = vst [vmem:[#allocation11_spill] sm:$0xff] %v8337_v25  ;;  %6513 = vrot.lane.b32.xlu0 %v6512_v23, %s6956_s14  ;;  %v3095_v51 = vsel %vm2893_vm3, %v3031_v2, %v6215_v24  ;;  %v2902_v32 = vsel %vm2893_vm3, %v2837_v60, %v6216_v12  ;;  %v6522_v12 = vpack.i.bf16 %v8303_v34, %v1194_v8  ;;  %v725_v24 = vld [vmem:[#allocation2 + $0x68] sm:$0xff]  ;;  %v8549_v25 = vld [vmem:[#allocation2 + $0x278] sm:$0xff] }
 0x1e8   :  { %v8351_v23 = vpop.permute.xlu1 %6233  ;;  %v3159_v36 = vsel %vm2958_vm4, %v3095_v51, %v6220_v57  ;;  %v2967_v5 = vsel %vm2958_vm4, %v2902_v32, %v6221_v44  ;;  %v2838_v60 = vsel %vm563_vm0, %v725_v24, %v6156_v40  ;;  %v3160_v34 = vsel %vm2958_vm4, %v3096_v16, %v6205_v17  ;;  %v1193_v44 = vld [vmem:[#allocation2 + $0x181] sm:$0xff]  ;;  %v1291_v51 = vld [vmem:[#allocation2 + $0x34a] sm:$0xff]  ;;  %v4287_v32 = vld [vmem:[%s10044_s5 + $0x18] sm:$0xff]  ;;  %5916 = vmatprep.subr.bf16.mxu0 %v5915_v9 }
 0x1e9   :  { %10060 = vst [vmem:[#allocation12_spill] sm:$0xff] %v8351_v23  ;;  %v8357_v2 = vpop.permute.xlu0 %6238  ;;  %3554 = vmatprep.mubr.f32.mxu1 %v3159_v36  ;;  %v8361_v18 = vpop.f32.mrb[38].mxu0  ;;  %v2903_v8 = vsel %vm2893_vm3, %v2838_v60, %v6226_v46  ;;  %v6206_v40 = vunpack.i.h.bf16 %v8288_v45  ;;  %v6527_v46 = vpack.i.bf16 %v8264_v43, %v1067_v10  ;;  %5720 = vmatprep.mubr.msk.f32.mxu0 %vm563_vm0, %v1291_v51  ;;  %v8382_v36 = vld [vmem:[#allocation2 + $0x180] sm:$0xff] }
 0x1ea   :  { %10061 = vst [vmem:[#allocation13_spill] sm:$0xff] %v8357_v2  ;;  %10062 = vst [vmem:[#allocation14_spill] sm:$0xff] %v8361_v18  ;;  %6523 = vrot.lane.b32.xlu1 %v6522_v12, %s6958_s17  ;;  %3555 = vmatmul.mubr.f32.gmra.mrb[48].mxu1 %v2967_v5  ;;  %v8366_v57 = vpop.f32.mrb[39].mxu0  ;;  %v5919_v3 = vpack.c.bf16 %v4287_v32, %v4286_v21  ;;  %v6552_v45 = vpack.i.bf16 %v8298_v33, %v1193_v44  ;;  %v8387_v5 = vld [vmem:[#allocation2 + $0x188] sm:$0xff]  ;;  %v6231_v21 = vunpack.i.h.bf16 %v8325_v22  ;;  %v8483_v2 = vld [vmem:[#allocation2 + $0x260] sm:$0xff] }
 0x1eb   :  { %10063 = vst [vmem:[#allocation15_spill] sm:$0xff] %v8366_v57  ;;  %6543 = vrot.lane.b32.xlu0 %v6542_v26, %s6959_s1  ;;  %3559 = vmatprep.mubr.f32.mxu1 %v3160_v34  ;;  %v2968_v17 = vsel %vm2958_vm4, %v2903_v8, %v6206_v40  ;;  %v6532_v33 = vpack.i.bf16 %v8245_v20, %v8382_v36  ;;  %v6210_v26 = vunpack.i.l.bf16 %v8308_v61  ;;  %v821_v34 = vld [vmem:[#allocation2 + $0x219] sm:$0xff]  ;;  %v1066_v44 = vld [vmem:[#allocation2 + $0x182] sm:$0xff]  ;;  %v6211_v32 = vunpack.i.h.bf16 %v8308_v61 }
 0x1ec   :  { %v8376_v16 = vpop.permute.xlu1 %6243  ;;  %5918 = vmatpush3.bf16.msra.mxu0 %v5915_v9  ;;  %v6230_v9 = vunpack.i.l.bf16 %v8325_v22  ;;  %v6557_v60 = vpack.i.bf16 %v8229_v6, %v8387_v5  ;;  %v8401_v8 = vld [vmem:[#allocation2 + $0x232] sm:$0xff] }
 0x1ed   :  { %v6259_v63 = vpop.permute.xlu0 %6258  ;;  %v8384_v12 = vpop.f32.mrb[40].mxu0  ;;  %5721 = vmatmul.mubr.msk.f32.gmra.mrb[94].mxu0 %vm563_vm0, %v1292_v19  ;;  %5920 = vmatprep.subr.bf16.mxu0 %v5919_v3  ;;  %v6537_v6 = vpack.i.bf16 %v821_v34, %v8401_v8  ;;  %v6562_v19 = vpack.i.bf16 %v8285_v42, %v1066_v44  ;;  %v1195_v44 = vld [vmem:[#allocation2 + $0x199] sm:$0xff] }
 0x1ee   :  { %10064 = vst [vmem:[#allocation16_spill] sm:$0xff] %v8384_v12  ;;  %6528 = vrot.lane.b32.xlu1 %v6527_v46, %s6956_s14  ;;  %3560 = vmatmul.mubr.f32.gmra.mrb[50].mxu1 %v2968_v17  ;;  %v8389_v43 = vpop.f32.mrb[41].mxu0  ;;  %v982_v17 = vld [vmem:[#allocation2 + $0x91] sm:$0xff]  ;;  %v6261_v18 = vunpack.i.h.bf16 %v6259_v63  ;;  %v6260_v34 = vunpack.i.l.bf16 %v6259_v63 }
 0x1ef   :  { %10065 = vst [vmem:[#allocation17_spill] sm:$0xff] %v8389_v43  ;;  %6553 = vrot.lane.b32.xlu0 %v6552_v45, %s6958_s17  ;;  %v983_v45 = vld [vmem:[#allocation2 + $0x99] sm:$0xff]  ;;  %v3033_v22 = vsel %vm563_vm0, %v982_v17, %v6230_v9 }
 0x1f0   :  { %v8393_v24 = vpop.permute.xlu1 %6248  ;;  %5922 = vmatpush3.bf16.msra.mxu0 %v5919_v3  ;;  %v726_v43 = vld [vmem:[#allocation2 + $0x78] sm:$0xff] }
 0x1f1   :  { %v6264_v10 = vpop.permute.xlu0 %6263  ;;  %v8403_v51 = vpop.f32.mrb[42].mxu0  ;;  %v2839_v42 = vsel %vm563_vm0, %v726_v43, %v6231_v21  ;;  %v727_v21 = vld [vmem:[#allocation2 + $0x80] sm:$0xff] }
 0x1f2   :  { %10066 = vst [vmem:[#allocation18_spill] sm:$0xff] %v8403_v51  ;;  %6533 = vrot.lane.b32.xlu1 %v6532_v33, %s6959_s1  ;;  %v8407_v20 = vpop.f32.mrb[43].mxu0  ;;  %v6265_v40 = vunpack.i.l.bf16 %v6264_v10  ;;  %v949_v33 = vld [vmem:[#allocation2 + $0x230] sm:$0xff]  ;;  %v6266_v57 = vunpack.i.h.bf16 %v6264_v10 }
 0x1f3   :  { %10067 = vst [vmem:[#allocation19_spill] sm:$0xff] %v8407_v20  ;;  %6558 = vrot.lane.b32.xlu0 %v6557_v60, %s6959_s1  ;;  %v8416_v20 = vld [vmem:[#allocation2 + $0x249] sm:$0xff]  ;;  %v3034_v60 = vsel %vm563_vm0, %v983_v45, %v6210_v26  ;;  %v6245_v45 = vunpack.i.l.bf16 %v8376_v16 }
 0x1f4   :  { %v6254_v46 = vpop.permute.xlu1 %6253  ;;  %v3098_v26 = vsel %vm2893_vm3, %v3034_v60, %v6265_v40  ;;  %v6547_v10 = vpack.i.bf16 %v949_v33, %v8416_v20  ;;  %v2840_v40 = vsel %vm563_vm0, %v727_v21, %v6211_v32  ;;  %v822_v60 = vld [vmem:[#allocation2 + $0x229] sm:$0xff] }
 0x1f5   :  { %v6256_v51 = vunpack.i.h.bf16 %v6254_v46  ;;  %v6255_v3 = vunpack.i.l.bf16 %v6254_v46  ;;  %v8413_v12 = vpop.permute.xlu0 %6268  ;;  %v8419_v61 = vpop.f32.mrb[44].mxu0  ;;  %v3162_v33 = vsel %vm2958_vm4, %v3098_v26, %v6245_v45 }
 0x1f6   :  { %10068 = vst [vmem:[#allocation20_spill] sm:$0xff] %v8419_v61  ;;  %6538 = vrot.lane.b32.xlu1 %v6537_v6, %s6956_s14  ;;  %v8423_v46 = vpop.f32.mrb[45].mxu0  ;;  %v6271_v21 = vunpack.i.h.bf16 %v8413_v12 }
 0x1f7   :  { %10069 = vst [vmem:[#allocation21_spill] sm:$0xff] %v8423_v46  ;;  %6563 = vrot.lane.b32.xlu0 %v6562_v19, %s6956_s14  ;;  %v3097_v9 = vsel %vm2893_vm3, %v3033_v22, %v6255_v3  ;;  %v2904_v17 = vsel %vm2893_vm3, %v2839_v42, %v6256_v51  ;;  %v6567_v19 = vpack.i.bf16 %v8382_v36, %v1195_v44  ;;  %v886_v3 = vld [vmem:[#allocation2 + $0x22a] sm:$0xff]  ;;  %v8438_v51 = vld [vmem:[#allocation2 + $0x258] sm:$0xff]  ;;  %v6246_v36 = vunpack.i.h.bf16 %v8376_v16 }
 0x1f8   :  { %v8430_v61 = vpop.permute.xlu1 %6273  ;;  %v3161_v63 = vsel %vm2958_vm4, %v3097_v9, %v6260_v34  ;;  %v2969_v43 = vsel %vm2958_vm4, %v2904_v17, %v6261_v18  ;;  %v2905_v18 = vsel %vm2893_vm3, %v2840_v40, %v6266_v57  ;;  %v8446_v34 = vld [vmem:[#allocation2 + $0x242] sm:$0xff]  ;;  %v6577_v44 = vpack.i.bf16 %v886_v3, %v8438_v51  ;;  %v728_v46 = vld [vmem:[#allocation2 + $0x90] sm:$0xff] }
 0x1f9   :  { %v8435_v6 = vpop.permute.xlu0 %6288  ;;  %3564 = vmatprep.mubr.f32.mxu1 %v3161_v63  ;;  %v8441_v22 = vpop.f32.mrb[46].mxu0  ;;  %v6250_v9 = vunpack.i.l.bf16 %v8393_v24  ;;  %v6270_v17 = vunpack.i.l.bf16 %v8413_v12  ;;  %v2970_v57 = vsel %vm2958_vm4, %v2905_v18, %v6246_v36  ;;  %v6572_v45 = vpack.i.bf16 %v822_v60, %v8446_v34  ;;  %v1196_v63 = vld [vmem:[#allocation2 + $0x1a1] sm:$0xff]  ;;  %v984_v36 = vld [vmem:[#allocation2 + $0xa9] sm:$0xff] }
 0x1fa   :  { %10070 = vst [vmem:[#allocation22_spill] sm:$0xff] %v8441_v22  ;;  %6548 = vrot.lane.b32.xlu1 %v6547_v10, %s6958_s17  ;;  %3565 = vmatmul.mubr.f32.gmra.mrb[52].mxu1 %v2969_v43  ;;  %v8448_v42 = vpop.f32.mrb[47].mxu0  ;;  %v950_v10 = vld [vmem:[#allocation2 + $0x240] sm:$0xff]  ;;  %v6251_v40 = vunpack.i.h.bf16 %v8393_v24  ;;  %v6587_v18 = vpack.i.bf16 %v8387_v5, %v1196_v63  ;;  %v985_v22 = vld [vmem:[#allocation2 + $0xb1] sm:$0xff]  ;;  %v6291_v5 = vunpack.i.h.bf16 %v8435_v6  ;;  %v6290_v63 = vunpack.i.l.bf16 %v8435_v6 }
 0x1fb   :  { %10071 = vst [vmem:[#allocation23_spill] sm:$0xff] %v8448_v42  ;;  %6568 = vrot.lane.b32.xlu0 %v6567_v19, %s6958_s17  ;;  %3569 = vmatprep.mubr.f32.mxu1 %v3162_v33  ;;  %v8459_v43 = vld [vmem:[#allocation2 + $0x259] sm:$0xff] }
 0x1fc   :  { %v8452_v32 = vpop.permute.xlu1 %6278  ;;  %v6582_v60 = vpack.i.bf16 %v950_v10, %v8459_v43 }
 0x1fd   :  { %v6294_v26 = vpop.permute.xlu0 %6293  ;;  %v8461_v16 = vpop.f32.mrb[48].mxu0 }
 0x1fe   :  { %10072 = vst [vmem:[#allocation24_spill] sm:$0xff] %v8461_v16  ;;  %6578 = vrot.lane.b32.xlu1 %v6577_v44, %s6959_s1  ;;  %3570 = vmatmul.mubr.f32.gmra.mrb[54].mxu1 %v2970_v57  ;;  %v8465_v19 = vpop.f32.mrb[49].mxu0  ;;  %v6295_v3 = vunpack.i.l.bf16 %v6294_v26  ;;  %v3035_v44 = vsel %vm563_vm0, %v984_v36, %v6270_v17  ;;  %v823_v57 = vld [vmem:[#allocation2 + $0x231] sm:$0xff]  ;;  %v6296_v10 = vunpack.i.h.bf16 %v6294_v26 }
 0x1ff   :  { %10073 = vst [vmem:[#allocation25_spill] sm:$0xff] %v8465_v19  ;;  %6573 = vrot.lane.b32.xlu0 %v6572_v45, %s6956_s14  ;;  %v8474_v19 = vld [vmem:[#allocation2 + $0x24a] sm:$0xff]  ;;  %v3036_v45 = vsel %vm563_vm0, %v985_v22, %v6250_v9 }
 0x200   :  { %v6284_v33 = vpop.permute.xlu1 %6283  ;;  %v3100_v9 = vsel %vm2893_vm3, %v3036_v45, %v6295_v3  ;;  %v824_v45 = vld [vmem:[#allocation2 + $0x241] sm:$0xff] }
 0x201   :  { %v6286_v16 = vunpack.i.h.bf16 %v6284_v33  ;;  %v6285_v42 = vunpack.i.l.bf16 %v6284_v33  ;;  %v8471_v12 = vpop.permute.xlu0 %6298  ;;  %v8477_v24 = vpop.f32.mrb[50].mxu0  ;;  %v2841_v33 = vsel %vm563_vm0, %v728_v46, %v6271_v21  ;;  %v6592_v46 = vpack.i.bf16 %v823_v57, %v8474_v19 }
 0x202   :  { %10074 = vst [vmem:[#allocation26_spill] sm:$0xff] %v8477_v24  ;;  %6588 = vrot.lane.b32.xlu1 %v6587_v18, %s6958_s17  ;;  %v8485_v17 = vpop.f32.mrb[51].mxu0  ;;  %v6275_v24 = vunpack.i.l.bf16 %v8430_v61  ;;  %v729_v18 = vld [vmem:[#allocation2 + $0x98] sm:$0xff] }
 0x203   :  { %10075 = vst [vmem:[#allocation27_spill] sm:$0xff] %v8485_v17  ;;  %6583 = vrot.lane.b32.xlu0 %v6582_v60, %s6958_s17  ;;  %v3099_v36 = vsel %vm2893_vm3, %v3035_v44, %v6285_v42  ;;  %v2906_v22 = vsel %vm2893_vm3, %v2841_v33, %v6286_v16  ;;  %v6597_v42 = vpack.i.bf16 %v8401_v8, %v8483_v2  ;;  %v8501_v16 = vld [vmem:[#allocation2 + $0x261] sm:$0xff]  ;;  %v6280_v33 = vunpack.i.l.bf16 %v8452_v32 }
 0x204   :  { %v8492_v6 = vpop.permute.xlu1 %6303  ;;  %v3163_v26 = vsel %vm2958_vm4, %v3099_v36, %v6290_v63  ;;  %v2971_v21 = vsel %vm2958_vm4, %v2906_v22, %v6291_v5  ;;  %v2842_v3 = vsel %vm563_vm0, %v729_v18, %v6251_v40  ;;  %v3164_v44 = vsel %vm2958_vm4, %v3100_v9, %v6275_v24  ;;  %v8520_v22 = vld [vmem:[#allocation2 + $0x25a] sm:$0xff] }
 0x205   :  { %v8497_v17 = vpop.permute.xlu0 %6318  ;;  %3574 = vmatprep.mubr.f32.mxu1 %v3163_v26  ;;  %v8504_v60 = vpop.f32.mrb[52].mxu0  ;;  %v2907_v57 = vsel %vm2893_vm3, %v2842_v3, %v6296_v10  ;;  %v6276_v63 = vunpack.i.h.bf16 %v8430_v61  ;;  %v6602_v40 = vpack.i.bf16 %v8335_v28, %v8501_v16  ;;  %v6300_v36 = vunpack.i.l.bf16 %v8471_v12  ;;  %v8523_v61 = vld [vmem:[#allocation2 + $0x270] sm:$0xff] }
 0x206   :  { %10076 = vst [vmem:[#allocation28_spill] sm:$0xff] %v8504_v60  ;;  %6593 = vrot.lane.b32.xlu1 %v6592_v46, %s6956_s14  ;;  %3575 = vmatmul.mubr.f32.gmra.mrb[56].mxu1 %v2971_v21  ;;  %v8509_v5 = vpop.f32.mrb[53].mxu0  ;;  %v6607_v9 = vpack.i.bf16 %v824_v45, %v8520_v22  ;;  %v8525_v26 = vld [vmem:[#allocation2 + $0x271] sm:$0xff]  ;;  %v6301_v21 = vunpack.i.h.bf16 %v8471_v12  ;;  %v986_v45 = vld [vmem:[#allocation2 + $0xc1] sm:$0xff] }
 0x207   :  { %10077 = vst [vmem:[#allocation29_spill] sm:$0xff] %v8509_v5  ;;  %6598 = vrot.lane.b32.xlu0 %v6597_v42, %s6959_s1  ;;  %3579 = vmatprep.mubr.f32.mxu1 %v3164_v44  ;;  %v2972_v10 = vsel %vm2958_vm4, %v2907_v57, %v6276_v63  ;;  %v6281_v42 = vunpack.i.h.bf16 %v8452_v32  ;;  %v6612_v44 = vpack.i.bf16 %v8446_v34, %v8523_v61  ;;  %v987_v63 = vld [vmem:[#allocation2 + $0xc9] sm:$0xff]  ;;  %v6321_v32 = vunpack.i.h.bf16 %v8497_v17 }
 0x208   :  { %v8513_v8 = vpop.permute.xlu1 %6308  ;;  %v6617_v57 = vpack.i.bf16 %v8438_v51, %v8525_v26  ;;  %v6320_v34 = vunpack.i.l.bf16 %v8497_v17 }
 0x209   :  { %v6324_v24 = vpop.permute.xlu0 %6323  ;;  %v8527_v46 = vpop.f32.mrb[54].mxu0 }
 0x20a   :  { %10078 = vst [vmem:[#allocation30_spill] sm:$0xff] %v8527_v46  ;;  %6603 = vrot.lane.b32.xlu1 %v6602_v40, %s6958_s17  ;;  %3580 = vmatmul.mubr.f32.gmra.mrb[58].mxu1 %v2972_v10  ;;  %v8531_v28 = vpop.f32.mrb[55].mxu0  ;;  %v6325_v18 = vunpack.i.l.bf16 %v6324_v24  ;;  %v3037_v10 = vsel %vm563_vm0, %v986_v45, %v6300_v36  ;;  %v6326_v5 = vunpack.i.h.bf16 %v6324_v24 }
 0x20b   :  { %10079 = vst [vmem:[#allocation31_spill] sm:$0xff] %v8531_v28  ;;  %6608 = vrot.lane.b32.xlu0 %v6607_v9, %s6956_s14  ;;  %v730_v28 = vld [vmem:[#allocation2 + $0xa8] sm:$0xff]  ;;  %v3038_v9 = vsel %vm563_vm0, %v987_v63, %v6280_v33  ;;  %v6305_v63 = vunpack.i.l.bf16 %v8492_v6 }
 0x20c   :  { %v6314_v3 = vpop.permute.xlu1 %6313  ;;  %v2843_v51 = vsel %vm563_vm0, %v730_v28, %v6301_v21  ;;  %v3102_v45 = vsel %vm2893_vm3, %v3038_v9, %v6325_v18  ;;  %v8568_v18 = vld [vmem:[#allocation2 + $0x279] sm:$0xff] }
 0x20d   :  { %v6316_v12 = vunpack.i.h.bf16 %v6314_v3  ;;  %v6315_v46 = vunpack.i.l.bf16 %v6314_v3  ;;  %v8539_v40 = vpop.permute.xlu0 %6328  ;;  %v8543_v60 = vpop.f32.mrb[56].mxu0  ;;  %v3166_v9 = vsel %vm2958_vm4, %v3102_v45, %v6305_v63 }
 0x20e   :  { %10080 = vst [vmem:[#allocation32_spill] sm:$0xff] %v8543_v60  ;;  %6613 = vrot.lane.b32.xlu1 %v6612_v44, %s6959_s1  ;;  %v8551_v3 = vpop.f32.mrb[57].mxu0  ;;  %v8561_v44 = vld [vmem:[#allocation2 + $0x262] sm:$0xff] }
 0x20f   :  { %10081 = vst [vmem:[#allocation33_spill] sm:$0xff] %v8551_v3  ;;  %6618 = vrot.lane.b32.xlu0 %v6617_v57, %s6958_s17  ;;  %v3101_v36 = vsel %vm2893_vm3, %v3037_v10, %v6315_v46  ;;  %v2908_v33 = vsel %vm2893_vm3, %v2843_v51, %v6316_v12  ;;  %v6622_v21 = vpack.i.bf16 %v8416_v20, %v8561_v44  ;;  %v731_v57 = vld [vmem:[#allocation2 + $0xb0] sm:$0xff]  ;;  %v6310_v51 = vunpack.i.l.bf16 %v8513_v8 }
 0x210   :  { %v8558_v17 = vpop.permute.xlu1 %6333  ;;  %v3165_v24 = vsel %vm2958_vm4, %v3101_v36, %v6320_v34  ;;  %v2973_v28 = vsel %vm2958_vm4, %v2908_v33, %v6321_v32  ;;  %v6627_v46 = vpack.i.bf16 %v8474_v19, %v8549_v25  ;;  %v2844_v12 = vsel %vm563_vm0, %v731_v57, %v6281_v42 }
 0x211   :  { %v6349_v60 = vpop.permute.xlu0 %6348  ;;  %3584 = vmatprep.mubr.f32.mxu1 %v3165_v24  ;;  %v8571_v10 = vpop.f32.mrb[58].mxu0  ;;  %v2909_v20 = vsel %vm2893_vm3, %v2844_v12, %v6326_v5  ;;  %v6306_v34 = vunpack.i.h.bf16 %v8492_v6  ;;  %v6632_v42 = vpack.i.bf16 %v8483_v2, %v8568_v18  ;;  %v6330_v36 = vunpack.i.l.bf16 %v8539_v40  ;;  %v8587_v5 = vld [vmem:[#allocation2 + $0x272] sm:$0xff]  ;;  %v8593_v24 = vld [vmem:[#allocation2 + $0x288] sm:$0xff] }
 0x212   :  { %10082 = vst [vmem:[#allocation34_spill] sm:$0xff] %v8571_v10  ;;  %6623 = vrot.lane.b32.xlu1 %v6622_v21, %s6956_s14  ;;  %3585 = vmatmul.mubr.f32.gmra.mrb[60].mxu1 %v2973_v28  ;;  %v8576_v32 = vpop.f32.mrb[59].mxu0  ;;  %v6637_v6 = vpack.i.bf16 %v8459_v43, %v8587_v5  ;;  %v8595_v21 = vld [vmem:[#allocation2 + $0x289] sm:$0xff]  ;;  %v6331_v2 = vunpack.i.h.bf16 %v8539_v40  ;;  %v6642_v43 = vpack.i.bf16 %v8520_v22, %v8593_v24  ;;  %v6351_v10 = vunpack.i.h.bf16 %v6349_v60 }
 0x213   :  { %10083 = vst [vmem:[#allocation35_spill] sm:$0xff] %v8576_v32  ;;  %6628 = vrot.lane.b32.xlu0 %v6627_v46, %s6959_s1  ;;  %3589 = vmatprep.mubr.f32.mxu1 %v3166_v9  ;;  %v2974_v45 = vsel %vm2958_vm4, %v2909_v20, %v6306_v34  ;;  %v6311_v46 = vunpack.i.h.bf16 %v8513_v8  ;;  %v6647_v9 = vpack.i.bf16 %v8523_v61, %v8595_v21  ;;  %v988_v20 = vld [vmem:[#allocation2 + $0xd9] sm:$0xff]  ;;  %v989_v34 = vld [vmem:[#allocation2 + $0xe1] sm:$0xff]  ;;  %v6350_v32 = vunpack.i.l.bf16 %v6349_v60 }
 0x214   :  { %v8580_v19 = vpop.permute.xlu1 %6338  ;;  %v3040_v8 = vsel %vm563_vm0, %v989_v34, %v6310_v51  ;;  %v6335_v51 = vunpack.i.l.bf16 %v8558_v17 }
 0x215   :  { %v6354_v33 = vpop.permute.xlu0 %6353  ;;  %v8591_v63 = vpop.f32.mrb[60].mxu0 }
 0x216   :  { %10084 = vst [vmem:[#allocation36_spill] sm:$0xff] %v8591_v63  ;;  %6633 = vrot.lane.b32.xlu1 %v6632_v42, %s6958_s17  ;;  %3590 = vmatmul.mubr.f32.gmra.mrb[62].mxu1 %v2974_v45  ;;  %v8599_v28 = vpop.f32.mrb[61].mxu0  ;;  %v6355_v57 = vunpack.i.l.bf16 %v6354_v33  ;;  %v6356_v3 = vunpack.i.h.bf16 %v6354_v33 }
 0x217   :  { %10085 = vst [vmem:[#allocation37_spill] sm:$0xff] %v8599_v28  ;;  %6638 = vrot.lane.b32.xlu0 %v6637_v6, %s6956_s14  ;;  %v3039_v28 = vsel %vm563_vm0, %v988_v20, %v6330_v36  ;;  %v732_v6 = vld [vmem:[#allocation2 + $0xc0] sm:$0xff] }
 0x218   :  { %v6344_v12 = vpop.permute.xlu1 %6343  ;;  %v2845_v61 = vsel %vm563_vm0, %v732_v6, %v6331_v2  ;;  %v3104_v20 = vsel %vm2893_vm3, %v3040_v8, %v6355_v57  ;;  %v8636_v57 = vld [vmem:[#allocation2 + $0x291] sm:$0xff]  ;;  %v6336_v8 = vunpack.i.h.bf16 %v8558_v17 }
 0x219   :  { %v6346_v40 = vunpack.i.h.bf16 %v6344_v12  ;;  %v6345_v63 = vunpack.i.l.bf16 %v6344_v12  ;;  %v8607_v42 = vpop.permute.xlu0 %6358  ;;  %v8609_v45 = vpop.f32.mrb[62].mxu0 }
 0x21a   :  { %10086 = vst [vmem:[#allocation38_spill] sm:$0xff] %v8609_v45  ;;  %6643 = vrot.lane.b32.xlu1 %v6642_v43, %s6959_s1  ;;  %v8614_v22 = vpop.f32.mrb[63].mxu0  ;;  %v8627_v43 = vld [vmem:[#allocation2 + $0x27a] sm:$0xff] }
 0x21b   :  { %10087 = vst [vmem:[#allocation39_spill] sm:$0xff] %v8614_v22  ;;  %6648 = vrot.lane.b32.xlu0 %v6647_v9, %s6958_s17  ;;  %v3103_v12 = vsel %vm2893_vm3, %v3039_v28, %v6345_v63  ;;  %v2910_v36 = vsel %vm2893_vm3, %v2845_v61, %v6346_v40  ;;  %v6652_v2 = vpack.i.bf16 %v8501_v16, %v8627_v43  ;;  %v733_v9 = vld [vmem:[#allocation2 + $0xc8] sm:$0xff] }
 0x21c   :  { %v8624_v60 = vpop.permute.xlu1 %6363  ;;  %v3167_v33 = vsel %vm2958_vm4, %v3103_v12, %v6350_v32  ;;  %v2975_v34 = vsel %vm2958_vm4, %v2910_v36, %v6351_v10  ;;  %v6657_v28 = vpack.i.bf16 %v8561_v44, %v8617_v37  ;;  %v2846_v40 = vsel %vm563_vm0, %v733_v9, %v6311_v46  ;;  %v8683_v22 = vld [vmem:[#allocation2 + $0x2a8] sm:$0xff] }
 0x21d   :  { %v8632_v6 = vpop.f32.mrb[64].mxu0  ;;  %v6379_v63 = vpop.permute.xlu0 %6378  ;;  %3594 = vmatprep.mubr.f32.mxu1 %v3167_v33  ;;  %v3168_v16 = vsel %vm2958_vm4, %v3104_v20, %v6335_v51  ;;  %v2911_v10 = vsel %vm2893_vm3, %v2846_v40, %v6356_v3  ;;  %v6662_v44 = vpack.i.bf16 %v8549_v25, %v8636_v57  ;;  %v6340_v46 = vunpack.i.l.bf16 %v8580_v19  ;;  %v8655_v3 = vld [vmem:[#allocation2 + $0x28a] sm:$0xff]  ;;  %v8659_v51 = vld [vmem:[#allocation2 + $0x2a0] sm:$0xff] }
 0x21e   :  { %10088 = vst [vmem:[#allocation40_spill] sm:$0xff] %v8632_v6  ;;  %v8639_v32 = vpop.f32.mrb[65].mxu0  ;;  %6653 = vrot.lane.b32.xlu1 %v6652_v2, %s6956_s14  ;;  %3595 = vmatmul.mubr.f32.gmra.mrb[64].mxu1 %v2975_v34  ;;  %v6360_v12 = vunpack.i.l.bf16 %v8607_v42  ;;  %v2976_v20 = vsel %vm2958_vm4, %v2911_v10, %v6336_v8  ;;  %v6667_v17 = vpack.i.bf16 %v8525_v26, %v8655_v3  ;;  %v8661_v2 = vld [vmem:[#allocation2 + $0x2a1] sm:$0xff]  ;;  %v6361_v25 = vunpack.i.h.bf16 %v8607_v42  ;;  %v990_v10 = vld [vmem:[#allocation2 + $0xf1] sm:$0xff]  ;;  %v991_v8 = vld [vmem:[#allocation2 + $0xf9] sm:$0xff] }
 0x21f   :  { %10089 = vst [vmem:[#allocation41_spill] sm:$0xff] %v8639_v32  ;;  %6658 = vrot.lane.b32.xlu0 %v6657_v28, %s6959_s1  ;;  %3599 = vmatprep.mubr.f32.mxu1 %v3168_v16  ;;  %v6341_v28 = vunpack.i.h.bf16 %v8580_v19  ;;  %v6672_v26 = vpack.i.bf16 %v8587_v5, %v8659_v51  ;;  %v6677_v16 = vpack.i.bf16 %v8593_v24, %v8661_v2  ;;  %v6381_v6 = vunpack.i.h.bf16 %v6379_v63 }
 0x220   :  { %v8646_v61 = vpop.permute.xlu1 %6368  ;;  %v3042_v19 = vsel %vm563_vm0, %v991_v8, %v6340_v46  ;;  %v6380_v32 = vunpack.i.l.bf16 %v6379_v63  ;;  %v6365_v46 = vunpack.i.l.bf16 %v8624_v60  ;;  %v8693_v8 = vld [vmem:[#allocation2 + $0x292] sm:$0xff] }
 0x221   :  { %v8652_v36 = vpop.f32.mrb[66].mxu0  ;;  %v6384_v33 = vpop.permute.xlu0 %6383 }
 0x222   :  { %10090 = vst [vmem:[#allocation42_spill] sm:$0xff] %v8652_v36  ;;  %v8664_v34 = vpop.f32.mrb[67].mxu0  ;;  %6663 = vrot.lane.b32.xlu1 %v6662_v44, %s6958_s17  ;;  %3600 = vmatmul.mubr.f32.gmra.mrb[66].mxu1 %v2976_v20  ;;  %v6385_v9 = vunpack.i.l.bf16 %v6384_v33  ;;  %v3041_v20 = vsel %vm563_vm0, %v990_v10, %v6360_v12  ;;  %v6386_v45 = vunpack.i.h.bf16 %v6384_v33 }
 0x223   :  { %10091 = vst [vmem:[#allocation43_spill] sm:$0xff] %v8664_v34  ;;  %6668 = vrot.lane.b32.xlu0 %v6667_v17, %s6956_s14  ;;  %v734_v17 = vld [vmem:[#allocation2 + $0xd8] sm:$0xff] }
 0x224   :  { %v6374_v40 = vpop.permute.xlu1 %6373  ;;  %v2847_v24 = vsel %vm563_vm0, %v734_v17, %v6361_v25  ;;  %v3106_v10 = vsel %vm2893_vm3, %v3042_v19, %v6385_v9  ;;  %v6682_v25 = vpack.i.bf16 %v8568_v18, %v8693_v8  ;;  %v6366_v19 = vunpack.i.h.bf16 %v8624_v60 }
 0x225   :  { %v6376_v42 = vunpack.i.h.bf16 %v6374_v40  ;;  %v6375_v36 = vunpack.i.l.bf16 %v6374_v40  ;;  %v8673_v34 = vpop.f32.mrb[68].mxu0  ;;  %v8675_v44 = vpop.permute.xlu0 %6388 }
 0x226   :  { %10092 = vst [vmem:[#allocation44_spill] sm:$0xff] %v8673_v34  ;;  %v8679_v5 = vpop.f32.mrb[69].mxu0  ;;  %6673 = vrot.lane.b32.xlu1 %v6672_v26, %s6959_s1  ;;  %v8745_v34 = vld [vmem:[#allocation2 + $0x2c0] sm:$0xff] }
 0x227   :  { %10093 = vst [vmem:[#allocation45_spill] sm:$0xff] %v8679_v5  ;;  %6678 = vrot.lane.b32.xlu0 %v6677_v16, %s6958_s17  ;;  %v3105_v40 = vsel %vm2893_vm3, %v3041_v20, %v6375_v36  ;;  %v2912_v12 = vsel %vm2893_vm3, %v2847_v24, %v6376_v42  ;;  %v735_v16 = vld [vmem:[#allocation2 + $0xe0] sm:$0xff]  ;;  %v6687_v36 = vpack.i.bf16 %v8627_v43, %v8683_v22  ;;  %v8702_v42 = vld [vmem:[#allocation2 + $0x2a9] sm:$0xff] }
 0x228   :  { %v8690_v63 = vpop.permute.xlu1 %6393  ;;  %v3169_v33 = vsel %vm2958_vm4, %v3105_v40, %v6380_v32  ;;  %v2977_v26 = vsel %vm2958_vm4, %v2912_v12, %v6381_v6  ;;  %v2848_v20 = vsel %vm563_vm0, %v735_v16, %v6341_v28  ;;  %v3170_v32 = vsel %vm2958_vm4, %v3106_v10, %v6365_v46  ;;  %v8723_v46 = vld [vmem:[#allocation2 + $0x2b8] sm:$0xff] }
 0x229   :  { %v6409_v17 = vpop.permute.xlu0 %6408  ;;  %3604 = vmatprep.mubr.f32.mxu1 %v3169_v33  ;;  %v8700_v9 = vpop.f32.mrb[70].mxu0  ;;  %v2913_v18 = vsel %vm2893_vm3, %v2848_v20, %v6386_v45  ;;  %v6692_v24 = vpack.i.bf16 %v8617_v37, %v8702_v42  ;;  %v6370_v28 = vunpack.i.l.bf16 %v8646_v61  ;;  %v6390_v40 = vunpack.i.l.bf16 %v8675_v44  ;;  %v8719_v45 = vld [vmem:[#allocation2 + $0x2a2] sm:$0xff]  ;;  %v8725_v33 = vld [vmem:[#allocation2 + $0x2b9] sm:$0xff] }
 0x22a   :  { %10094 = vst [vmem:[#allocation46_spill] sm:$0xff] %v8700_v9  ;;  %6683 = vrot.lane.b32.xlu1 %v6682_v25, %s6956_s14  ;;  %3605 = vmatmul.mubr.f32.gmra.mrb[68].mxu1 %v2977_v26  ;;  %v8708_v6 = vpop.f32.mrb[71].mxu0  ;;  %v2978_v10 = vsel %vm2958_vm4, %v2913_v18, %v6366_v19  ;;  %v6697_v60 = vpack.i.bf16 %v8595_v21, %v8719_v45  ;;  %v6391_v37 = vunpack.i.h.bf16 %v8675_v44  ;;  %v992_v18 = vld [vmem:[#allocation2 + $0x109] sm:$0xff]  ;;  %v993_v19 = vld [vmem:[#allocation2 + $0x111] sm:$0xff]  ;;  %v6411_v9 = vunpack.i.h.bf16 %v6409_v17 }
 0x22b   :  { %10095 = vst [vmem:[#allocation47_spill] sm:$0xff] %v8708_v6  ;;  %6688 = vrot.lane.b32.xlu0 %v6687_v36, %s6959_s1  ;;  %3609 = vmatprep.mubr.f32.mxu1 %v3170_v32  ;;  %v6371_v36 = vunpack.i.h.bf16 %v8646_v61  ;;  %v6702_v21 = vpack.i.bf16 %v8655_v3, %v8723_v46  ;;  %v6707_v32 = vpack.i.bf16 %v8659_v51, %v8725_v33  ;;  %v6410_v61 = vunpack.i.l.bf16 %v6409_v17 }
 0x22c   :  { %v8712_v43 = vpop.permute.xlu1 %6398 }
 0x22d   :  { %v6414_v12 = vpop.permute.xlu0 %6413  ;;  %v8727_v25 = vpop.f32.mrb[72].mxu0 }
 0x22e   :  { %10096 = vst [vmem:[#allocation48_spill] sm:$0xff] %v8727_v25  ;;  %6693 = vrot.lane.b32.xlu1 %v6692_v24, %s6958_s17  ;;  %3610 = vmatmul.mubr.f32.gmra.mrb[70].mxu1 %v2978_v10  ;;  %v8731_v26 = vpop.f32.mrb[73].mxu0  ;;  %v6415_v16 = vunpack.i.l.bf16 %v6414_v12  ;;  %v3043_v10 = vsel %vm563_vm0, %v992_v18, %v6390_v40  ;;  %v6416_v6 = vunpack.i.h.bf16 %v6414_v12  ;;  %v6395_v18 = vunpack.i.l.bf16 %v8690_v63  ;;  %v8755_v12 = vld [vmem:[#allocation2 + $0x2aa] sm:$0xff] }
 0x22f   :  { %10097 = vst [vmem:[#allocation49_spill] sm:$0xff] %v8731_v26  ;;  %6698 = vrot.lane.b32.xlu0 %v6697_v60, %s6956_s14  ;;  %v736_v26 = vld [vmem:[#allocation2 + $0xf0] sm:$0xff]  ;;  %v3044_v60 = vsel %vm563_vm0, %v993_v19, %v6370_v28 }
 0x230   :  { %v6404_v20 = vpop.permute.xlu1 %6403  ;;  %v2849_v3 = vsel %vm563_vm0, %v736_v26, %v6391_v37  ;;  %v3108_v40 = vsel %vm2893_vm3, %v3044_v60, %v6415_v16  ;;  %v6712_v37 = vpack.i.bf16 %v8636_v57, %v8755_v12  ;;  %v8762_v16 = vld [vmem:[#allocation2 + $0x2c1] sm:$0xff]  ;;  %v6396_v57 = vunpack.i.h.bf16 %v8690_v63 }
 0x231   :  { %v6406_v44 = vunpack.i.h.bf16 %v6404_v20  ;;  %v6405_v25 = vunpack.i.l.bf16 %v6404_v20  ;;  %v8739_v24 = vpop.permute.xlu0 %6418  ;;  %v6400_v60 = vunpack.i.l.bf16 %v8712_v43 }
 0x232   :  { %6703 = vrot.lane.b32.xlu1 %v6702_v21, %s6959_s1  ;;  %v737_v21 = vld [vmem:[#allocation2 + $0xf8] sm:$0xff] }
 0x233   :  { %6708 = vrot.lane.b32.xlu0 %v6707_v32, %s6958_s17  ;;  %v3107_v51 = vsel %vm2893_vm3, %v3043_v10, %v6405_v25  ;;  %v2914_v20 = vsel %vm2893_vm3, %v2849_v3, %v6406_v44  ;;  %v6717_v25 = vpack.i.bf16 %v8693_v8, %v8745_v34  ;;  %v2850_v19 = vsel %vm563_vm0, %v737_v21, %v6371_v36  ;;  %v995_v21 = vld [vmem:[#allocation2 + $0x129] sm:$0xff] }
 0x234   :  { %v8752_v28 = vpop.permute.xlu1 %6423  ;;  %v3171_v17 = vsel %vm2958_vm4, %v3107_v51, %v6410_v61  ;;  %v2979_v26 = vsel %vm2958_vm4, %v2914_v20, %v6411_v9  ;;  %v3172_v44 = vsel %vm2958_vm4, %v3108_v40, %v6395_v18  ;;  %v2915_v10 = vsel %vm2893_vm3, %v2850_v19, %v6416_v6  ;;  %v8777_v51 = vld [vmem:[#allocation2 + $0x2ba] sm:$0xff]  ;;  %v8781_v6 = vld [vmem:[#allocation2 + $0x2d0] sm:$0xff] }
 0x235   :  { %v6439_v32 = vpop.permute.xlu0 %6438  ;;  %3614 = vmatprep.mubr.f32.mxu1 %v3171_v17  ;;  %v6722_v8 = vpack.i.bf16 %v8683_v22, %v8762_v16  ;;  %v6420_v36 = vunpack.i.l.bf16 %v8739_v24  ;;  %v2980_v3 = vsel %vm2958_vm4, %v2915_v10, %v6396_v57  ;;  %v6727_v63 = vpack.i.bf16 %v8661_v2, %v8777_v51  ;;  %v8783_v20 = vld [vmem:[#allocation2 + $0x2d1] sm:$0xff]  ;;  %v738_v10 = vld [vmem:[#allocation2 + $0x108] sm:$0xff] }
 0x236   :  { %6713 = vrot.lane.b32.xlu1 %v6712_v37, %s6956_s14  ;;  %3615 = vmatmul.mubr.f32.gmra.mrb[72].mxu1 %v2979_v26  ;;  %v6421_v40 = vunpack.i.h.bf16 %v8739_v24  ;;  %v6401_v18 = vunpack.i.h.bf16 %v8712_v43  ;;  %v6732_v37 = vpack.i.bf16 %v8719_v45, %v8781_v6  ;;  %v6737_v2 = vpack.i.bf16 %v8723_v46, %v8783_v20  ;;  %v994_v26 = vld [vmem:[#allocation2 + $0x121] sm:$0xff] }
 0x237   :  { %6718 = vrot.lane.b32.xlu0 %v6717_v25, %s6959_s1  ;;  %3619 = vmatprep.mubr.f32.mxu1 %v3172_v44  ;;  %v3045_v44 = vsel %vm563_vm0, %v994_v26, %v6420_v36  ;;  %v3046_v57 = vsel %vm563_vm0, %v995_v21, %v6400_v60  ;;  %v6440_v43 = vunpack.i.l.bf16 %v6439_v32  ;;  %v6425_v26 = vunpack.i.l.bf16 %v8752_v28 }
 0x238   :  { %v8770_v9 = vpop.permute.xlu1 %6428  ;;  %v2851_v45 = vsel %vm563_vm0, %v738_v10, %v6421_v40 }
 0x239   :  { %v6444_v61 = vpop.permute.xlu0 %6443 }
 0x23a   :  { %6723 = vrot.lane.b32.xlu1 %v6722_v8, %s6958_s17  ;;  %3620 = vmatmul.mubr.f32.gmra.mrb[74].mxu1 %v2980_v3  ;;  %v6445_v22 = vunpack.i.l.bf16 %v6444_v61  ;;  %v6441_v8 = vunpack.i.h.bf16 %v6439_v32  ;;  %v6446_v3 = vunpack.i.h.bf16 %v6444_v61  ;;  %v8809_v61 = vld [vmem:[#allocation2 + $0x2c2] sm:$0xff] }
 0x23b   :  { %6728 = vrot.lane.b32.xlu0 %v6727_v63, %s6956_s14  ;;  %v8799_v63 = vld [vmem:[#allocation2 + $0x2d8] sm:$0xff]  ;;  %v6742_v40 = vpack.i.bf16 %v8702_v42, %v8809_v61  ;;  %v6426_v42 = vunpack.i.h.bf16 %v8752_v28 }
 0x23c   :  { %v6434_v17 = vpop.permute.xlu1 %6433  ;;  %v3110_v36 = vsel %vm2893_vm3, %v3046_v57, %v6445_v22  ;;  %v8816_v22 = vld [vmem:[#allocation2 + $0x2d9] sm:$0xff] }
 0x23d   :  { %v6436_v25 = vunpack.i.h.bf16 %v6434_v17  ;;  %v6435_v19 = vunpack.i.l.bf16 %v6434_v17  ;;  %v8793_v24 = vpop.permute.xlu0 %6448 }
 0x23e   :  { %6733 = vrot.lane.b32.xlu1 %v6732_v37, %s6959_s1 }
 0x23f   :  { %6738 = vrot.lane.b32.xlu0 %v6737_v2, %s6958_s17  ;;  %v3109_v46 = vsel %vm2893_vm3, %v3045_v44, %v6435_v19  ;;  %v2916_v17 = vsel %vm2893_vm3, %v2851_v45, %v6436_v25  ;;  %v739_v2 = vld [vmem:[#allocation2 + $0x110] sm:$0xff]  ;;  %v6747_v25 = vpack.i.bf16 %v8755_v12, %v8799_v63  ;;  %v3174_v44 = vsel %vm2958_vm4, %v3110_v36, %v6425_v26 }
 0x240   :  { %v8806_v60 = vpop.permute.xlu1 %6453  ;;  %v3173_v32 = vsel %vm2958_vm4, %v3109_v46, %v6440_v43  ;;  %v2981_v37 = vsel %vm2958_vm4, %v2916_v17, %v6441_v8  ;;  %v2852_v19 = vsel %vm563_vm0, %v739_v2, %v6401_v18  ;;  %v6752_v12 = vpack.i.bf16 %v8745_v34, %v8816_v22  ;;  %v8831_v46 = vld [vmem:[#allocation2 + $0x2d2] sm:$0xff]  ;;  %v8837_v17 = vld [vmem:[#allocation2 + $0x2e9] sm:$0xff]  ;;  %v997_v2 = vld [vmem:[#allocation2 + $0x141] sm:$0xff] }
 0x241   :  { %v6469_v21 = vpop.permute.xlu0 %6468  ;;  %3624 = vmatprep.mubr.f32.mxu1 %v3173_v32  ;;  %v2917_v10 = vsel %vm2893_vm3, %v2852_v19, %v6446_v3  ;;  %v6430_v8 = vunpack.i.l.bf16 %v8770_v9  ;;  %v6450_v18 = vunpack.i.l.bf16 %v8793_v24  ;;  %v6757_v28 = vpack.i.bf16 %v8725_v33, %v8831_v46  ;;  %v8835_v3 = vld [vmem:[#allocation2 + $0x2e8] sm:$0xff] }
 0x242   :  { %6743 = vrot.lane.b32.xlu1 %v6742_v40, %s6956_s14  ;;  %3625 = vmatmul.mubr.f32.gmra.mrb[76].mxu1 %v2981_v37  ;;  %v2982_v45 = vsel %vm2958_vm4, %v2917_v10, %v6426_v42  ;;  %v6451_v36 = vunpack.i.h.bf16 %v8793_v24  ;;  %v6431_v26 = vunpack.i.h.bf16 %v8770_v9  ;;  %v6762_v40 = vpack.i.bf16 %v8777_v51, %v8835_v3  ;;  %v996_v37 = vld [vmem:[#allocation2 + $0x139] sm:$0xff] }
 0x243   :  { %6748 = vrot.lane.b32.xlu0 %v6747_v25, %s6959_s1  ;;  %3629 = vmatprep.mubr.f32.mxu1 %v3174_v44  ;;  %v6767_v33 = vpack.i.bf16 %v8781_v6, %v8837_v17  ;;  %v3047_v44 = vsel %vm563_vm0, %v996_v37, %v6450_v18  ;;  %v740_v10 = vld [vmem:[#allocation2 + $0x120] sm:$0xff]  ;;  %v3048_v42 = vsel %vm563_vm0, %v997_v2, %v6430_v8  ;;  %v6455_v37 = vunpack.i.l.bf16 %v8806_v60 }
 0x244   :  { %v8824_v57 = vpop.permute.xlu1 %6458  ;;  %v2853_v51 = vsel %vm563_vm0, %v740_v10, %v6451_v36 }
 0x245   :  { %v6474_v43 = vpop.permute.xlu0 %6473 }
 0x246   :  { %6753 = vrot.lane.b32.xlu1 %v6752_v12, %s6958_s17  ;;  %3630 = vmatmul.mubr.f32.gmra.mrb[78].mxu1 %v2982_v45  ;;  %v6475_v34 = vunpack.i.l.bf16 %v6474_v43  ;;  %v6471_v12 = vunpack.i.h.bf16 %v6469_v21  ;;  %v6470_v45 = vunpack.i.l.bf16 %v6469_v21  ;;  %v6476_v9 = vunpack.i.h.bf16 %v6474_v43  ;;  %v8861_v43 = vld [vmem:[#allocation2 + $0x2da] sm:$0xff] }
 0x247   :  { %6758 = vrot.lane.b32.xlu0 %v6757_v28, %s6956_s14  ;;  %v8851_v28 = vld [vmem:[#allocation2 + $0x2f0] sm:$0xff]  ;;  %v6772_v36 = vpack.i.bf16 %v8762_v16, %v8861_v43 }
 0x248   :  { %v6464_v32 = vpop.permute.xlu1 %6463  ;;  %v3112_v18 = vsel %vm2893_vm3, %v3048_v42, %v6475_v34  ;;  %v6777_v34 = vpack.i.bf16 %v8809_v61, %v8851_v28  ;;  %v6456_v42 = vunpack.i.h.bf16 %v8806_v60  ;;  %v8891_v60 = vld [vmem:[#allocation2 + $0x301] sm:$0xff] }
 0x249   :  { %v6466_v25 = vunpack.i.h.bf16 %v6464_v32  ;;  %v6465_v19 = vunpack.i.l.bf16 %v6464_v32  ;;  %v6479_v24 = vpop.permute.xlu0 %6478  ;;  %v3176_v16 = vsel %vm2958_vm4, %v3112_v18, %v6455_v37  ;;  %v8889_v18 = vld [vmem:[#allocation2 + $0x300] sm:$0xff] }
 0x24a   :  { %6763 = vrot.lane.b32.xlu1 %v6762_v40, %s6959_s1 }
 0x24b   :  { %6768 = vrot.lane.b32.xlu0 %v6767_v33, %s6958_s17  ;;  %v3111_v6 = vsel %vm2893_vm3, %v3047_v44, %v6465_v19  ;;  %v2918_v32 = vsel %vm2893_vm3, %v2853_v51, %v6466_v25  ;;  %v741_v33 = vld [vmem:[#allocation2 + $0x128] sm:$0xff]  ;;  %v8870_v25 = vld [vmem:[#allocation2 + $0x2f1] sm:$0xff]  ;;  %v8873_v44 = vpop.f32.mrb[74].mxu0 }
 0x24c   :  { %v8858_v8 = vpop.permute.xlu1 %6483  ;;  %v3175_v21 = vsel %vm2958_vm4, %v3111_v6, %v6470_v45  ;;  %v2983_v40 = vsel %vm2958_vm4, %v2918_v32, %v6471_v12  ;;  %v2854_v19 = vsel %vm563_vm0, %v741_v33, %v6431_v26  ;;  %10098 = vst [vmem:[#allocation50_spill] sm:$0xff] %v8873_v44  ;;  %v6782_v61 = vpack.i.bf16 %v8799_v63, %v8870_v25  ;;  %v8885_v32 = vld [vmem:[#allocation2 + $0x2ea] sm:$0xff]  ;;  %v8894_v37 = vpop.f32.mrb[75].mxu0  ;;  %v742_v33 = vld [vmem:[#allocation2 + $0x138] sm:$0xff] }
 0x24d   :  { %v8866_v2 = vpop.permute.xlu0 %6493  ;;  %3634 = vmatprep.mubr.f32.mxu1 %v3175_v21  ;;  %v2919_v10 = vsel %vm2893_vm3, %v2854_v19, %v6476_v9  ;;  %v6481_v26 = vunpack.i.h.bf16 %v6479_v24  ;;  %v6480_v45 = vunpack.i.l.bf16 %v6479_v24  ;;  %v6787_v9 = vpack.i.bf16 %v8783_v20, %v8885_v32  ;;  %10099 = vst [vmem:[#allocation51_spill] sm:$0xff] %v8894_v37  ;;  %v8906_v44 = vld [vmem:[#allocation2 + $0x308] sm:$0xff] }
 0x24e   :  { %6773 = vrot.lane.b32.xlu1 %v6772_v36, %s6956_s14  ;;  %3635 = vmatmul.mubr.f32.gmra.mrb[80].mxu1 %v2983_v40  ;;  %v2984_v6 = vsel %vm2958_vm4, %v2919_v10, %v6456_v42  ;;  %v6460_v63 = vunpack.i.l.bf16 %v8824_v57  ;;  %v6461_v24 = vunpack.i.h.bf16 %v8824_v57  ;;  %v6792_v36 = vpack.i.bf16 %v8831_v46, %v8889_v18  ;;  %v998_v40 = vld [vmem:[#allocation2 + $0x151] sm:$0xff]  ;;  %v999_v46 = vld [vmem:[#allocation2 + $0x159] sm:$0xff] }
 0x24f   :  { %6778 = vrot.lane.b32.xlu0 %v6777_v34, %s6959_s1  ;;  %3639 = vmatprep.mubr.f32.mxu1 %v3176_v16  ;;  %v6797_v20 = vpack.i.bf16 %v8835_v3, %v8891_v60  ;;  %v3049_v10 = vsel %vm563_vm0, %v998_v40, %v6480_v45  ;;  %v2855_v42 = vsel %vm563_vm0, %v742_v33, %v6481_v26  ;;  %v6485_v3 = vunpack.i.l.bf16 %v8858_v8  ;;  %v8916_v40 = vld [vmem:[#allocation2 + $0x2f2] sm:$0xff] }
 0x250   :  { %v8880_v12 = vpop.permute.xlu1 %6488  ;;  %v3050_v45 = vsel %vm563_vm0, %v999_v46, %v6460_v63  ;;  %v8948_v46 = vpop.f32.mrb[76].mxu0 }
 0x251   :  { %v6504_v51 = vpop.permute.xlu0 %6503  ;;  %10101 = vst [vmem:[#allocation53_spill] sm:$0xff] %v8948_v46 }
 0x252   :  { %6783 = vrot.lane.b32.xlu1 %v6782_v61, %s6958_s17  ;;  %3640 = vmatmul.mubr.f32.gmra.mrb[82].mxu1 %v2984_v6  ;;  %v6506_v61 = vunpack.i.h.bf16 %v6504_v51  ;;  %v6505_v6 = vunpack.i.l.bf16 %v6504_v51 }
 0x253   :  { %6788 = vrot.lane.b32.xlu0 %v6787_v9, %s6956_s14 }
 0x254   :  { %v6499_v21 = vpop.permute.xlu1 %6498 }
 0x255   :  { %v6501_v34 = vunpack.i.h.bf16 %v6499_v21  ;;  %v6500_v19 = vunpack.i.l.bf16 %v6499_v21  ;;  %v6509_v16 = vpop.permute.xlu0 %6508 }
 0x256   :  { %v6511_v9 = vunpack.i.h.bf16 %v6509_v16  ;;  %v6510_v57 = vunpack.i.l.bf16 %v6509_v16  ;;  %6793 = vrot.lane.b32.xlu1 %v6792_v36, %s6959_s1  ;;  %v6802_v36 = vpack.i.bf16 %v8816_v22, %v8916_v40 }
 0x257   :  { %6798 = vrot.lane.b32.xlu0 %v6797_v20, %s6958_s17  ;;  %v3113_v21 = vsel %vm2893_vm3, %v3049_v10, %v6500_v19  ;;  %v2920_v37 = vsel %vm2893_vm3, %v2855_v42, %v6501_v34  ;;  %v743_v20 = vld [vmem:[#allocation2 + $0x140] sm:$0xff]  ;;  %v6807_v34 = vpack.i.bf16 %v8861_v43, %v8906_v44  ;;  %v8925_v19 = vld [vmem:[#allocation2 + $0x309] sm:$0xff] }
 0x258   :  { %v8913_v26 = vpop.permute.xlu1 %6518  ;;  %v3177_v51 = vsel %vm2958_vm4, %v3113_v21, %v6505_v6  ;;  %v2985_v33 = vsel %vm2958_vm4, %v2920_v37, %v6506_v61  ;;  %v3114_v16 = vsel %vm2893_vm3, %v3050_v45, %v6510_v57  ;;  %v2856_v10 = vsel %vm563_vm0, %v743_v20, %v6461_v24  ;;  %v8939_v24 = vld [vmem:[#allocation2 + $0x302] sm:$0xff] }
 0x259   :  { %v6514_v5 = vpop.permute.xlu0 %6513  ;;  %3644 = vmatprep.mubr.f32.mxu1 %v3177_v51  ;;  %v3178_v63 = vsel %vm2958_vm4, %v3114_v16, %v6485_v3  ;;  %v2921_v22 = vsel %vm2893_vm3, %v2856_v10, %v6511_v9  ;;  %v6486_v37 = vunpack.i.h.bf16 %v8858_v8  ;;  %v6812_v43 = vpack.i.bf16 %v8851_v28, %v8925_v19  ;;  %v8943_v9 = vld [vmem:[#allocation2 + $0x318] sm:$0xff]  ;;  %v8954_v28 = vld [vmem:[%s10043_s4] ss:$0 sm:$0xff] }
 0x25a   :  { %6803 = vrot.lane.b32.xlu1 %v6802_v36, %s6956_s14  ;;  %3645 = vmatmul.mubr.f32.gmra.mrb[84].mxu1 %v2985_v33  ;;  %v6817_v57 = vpack.i.bf16 %v8837_v17, %v8939_v24  ;;  %v8946_v8 = vld [vmem:[#allocation2 + $0x319] sm:$0xff]  ;;  %v6516_v3 = vunpack.i.h.bf16 %v6514_v5  ;;  %v6515_v21 = vunpack.i.l.bf16 %v6514_v5  ;;  %v6822_v17 = vpack.i.bf16 %v8885_v32, %v8943_v9  ;;  %v8962_v36 = vld [vmem:[#allocation2 + $0x321] sm:$0xff]  ;;  %v8968_v5 = vpop.f32.mrb[77].mxu0  ;;  %v8972_v32 = vld [vmem:[#allocation2 + $0x30a] sm:$0xff] }
 0x25b   :  { %6808 = vrot.lane.b32.xlu0 %v6807_v34, %s6959_s1  ;;  %3649 = vmatprep.mubr.f32.mxu1 %v3178_v63  ;;  %v2986_v6 = vsel %vm2958_vm4, %v2921_v22, %v6486_v37  ;;  %v8960_v51 = vld [vmem:[#allocation2 + $0x320] sm:$0xff]  ;;  %v6827_v20 = vpack.i.bf16 %v8889_v18, %v8946_v8  ;;  %10102 = vst [vmem:[#allocation54_spill] sm:$0xff] %v8968_v5  ;;  %v6490_v10 = vunpack.i.l.bf16 %v8880_v12  ;;  %v1000_v18 = vld [vmem:[#allocation2 + $0x169] sm:$0xff] }
 0x25c   :  { %v8932_v42 = vpop.permute.xlu1 %6523  ;;  %v6832_v22 = vpack.i.bf16 %v8870_v25, %v8972_v32  ;;  %v6837_v37 = vpack.i.bf16 %v8916_v40, %v8960_v51 }
 0x25d   :  { %v8936_v61 = vpop.permute.xlu0 %6543 }
 0x25e   :  { %10100 = vst [vmem:[#allocation52_spill] sm:$0xff] %v8936_v61  ;;  %6813 = vrot.lane.b32.xlu1 %v6812_v43, %s6958_s17  ;;  %3650 = vmatmul.mubr.f32.gmra.mrb[86].mxu1 %v2986_v6  ;;  %v6842_v43 = vpack.i.bf16 %v8906_v44, %v8962_v36  ;;  %v744_v6 = vld [vmem:[#allocation2 + $0x150] sm:$0xff] }
 0x25f   :  { %6818 = vrot.lane.b32.xlu0 %v6817_v57, %s6956_s14  ;;  %v6491_v57 = vunpack.i.h.bf16 %v8880_v12 }
 0x260   :  { %v8956_v45 = vpop.permute.xlu1 %6528 }
 0x261   :  { %v6554_v33 = vpop.permute.xlu0 %6553  ;;  %v3516_v16 = vpop.f32.mrb[32].mxu1 }
 0x262   :  { %v3517_v34 = vadd.f32 %v8954_v28, %v3516_v16  ;;  %6823 = vrot.lane.b32.xlu1 %v6822_v17, %s6959_s1  ;;  %v3518_v63 = vpop.f32.mrb[33].mxu1  ;;  %v6556_v46 = vunpack.i.h.bf16 %v6554_v33  ;;  %v6555_v5 = vunpack.i.l.bf16 %v6554_v33 }
 0x263   :  { %6828 = vrot.lane.b32.xlu0 %v6827_v20, %s6958_s17  ;;  %v3051_v20 = vsel %vm563_vm0, %v1000_v18, %v6515_v21  ;;  %v2857_v63 = vsel %vm563_vm0, %v744_v6, %v6516_v3 }
 0x264   :  { %v3902_v17 = vadd.f32 %v8301_v58, %v3517_v34  ;;  %v6534_v16 = vpop.permute.xlu1 %6533  ;;  %v1001_v58 = vld [vmem:[#allocation2 + $0x171] sm:$0xff]  ;;  %v6525_v34 = vunpack.i.l.bf16 %v8932_v42 }
 0x265   :  { %v6536_v25 = vunpack.i.h.bf16 %v6534_v16  ;;  %v6535_v61 = vunpack.i.l.bf16 %v6534_v16  ;;  %v6559_v23 = vpop.permute.xlu0 %6558  ;;  %v3521_v40 = vpop.f32.mrb[34].mxu1  ;;  %v3052_v33 = vsel %vm563_vm0, %v1001_v58, %v6490_v10  ;;  %v745_v16 = vld [vmem:[#allocation2 + $0x158] sm:$0xff] }
 0x266   :  { %v4220_v52 = vmax.f32 %v3902_v17, 0.0  ;;  %v6561_v47 = vunpack.i.h.bf16 %v6559_v23  ;;  %v6560_v0 = vunpack.i.l.bf16 %v6559_v23  ;;  %v3522_v44 = vadd.f32 %v8954_v28, %v3521_v40  ;;  %6833 = vrot.lane.b32.xlu1 %v6832_v22, %s6956_s14  ;;  %v3523_v12 = vpop.f32.mrb[35].mxu1  ;;  %v9008_v40 = vpop.f32.mrb[78].mxu0 }
 0x267   :  { %6838 = vrot.lane.b32.xlu0 %v6837_v37, %s6959_s1  ;;  %v3115_v3 = vsel %vm2893_vm3, %v3051_v20, %v6535_v61  ;;  %v2922_v21 = vsel %vm2893_vm3, %v2857_v63, %v6536_v25  ;;  %v8998_v61 = vld [vmem:[#allocation2 + $0x31a] sm:$0xff]  ;;  %v9003_v20 = vld [vmem:[#allocation2 + $0x330] sm:$0xff]  ;;  %v746_v12 = vld [vmem:[#allocation2 + $0x168] sm:$0xff] }
 0x268   :  { %v3907_v18 = vadd.f32 %v8296_v7, %v3522_v44  ;;  %v8992_v6 = vpop.permute.xlu1 %6538  ;;  %5731 = vmatprep.mubr.msk.f32.mxu0 %vm563_vm0, %v4220_v52  ;;  %v3179_v23 = vsel %vm2958_vm4, %v3115_v3, %v6555_v5  ;;  %v2987_v22 = vsel %vm2958_vm4, %v2922_v21, %v6556_v46  ;;  %v3116_v17 = vsel %vm2893_vm3, %v3052_v33, %v6560_v0  ;;  %v1225_v46 = vld [vmem:[#allocation2 + $0x331] sm:$0xff] }
 0x269   :  { %v6564_v37 = vpop.permute.xlu0 %6563  ;;  %3654 = vmatprep.mubr.f32.mxu1 %v3179_v23  ;;  %v6847_v10 = vpack.i.bf16 %v8891_v60, %v8998_v61  ;;  %v3180_v7 = vsel %vm2958_vm4, %v3116_v17, %v6525_v34  ;;  %v2858_v52 = vsel %vm563_vm0, %v745_v16, %v6491_v57  ;;  %v6526_v44 = vunpack.i.h.bf16 %v8932_v42  ;;  %v1002_v60 = vld [vmem:[#allocation2 + $0x181] sm:$0xff] }
 0x26a   :  { %v4221_v63 = vmax.f32 %v3907_v18, 0.0  ;;  %v6566_v5 = vunpack.i.h.bf16 %v6564_v37  ;;  %v6565_v25 = vunpack.i.l.bf16 %v6564_v37  ;;  %6843 = vrot.lane.b32.xlu1 %v6842_v43, %s6958_s17  ;;  %3655 = vmatmul.mubr.f32.gmra.mrb[88].mxu1 %v2987_v22  ;;  %v2923_v0 = vsel %vm2893_vm3, %v2858_v52, %v6561_v47  ;;  %v9024_v22 = vld [vmem:[#allocation2 + $0x338] sm:$0xff]  ;;  %v9037_v52 = vld [vmem:[#allocation2 + $0x322] sm:$0xff] }
 0x26b   :  { %6848 = vrot.lane.b32.xlu0 %v6847_v10, %s6956_s14  ;;  %3659 = vmatprep.mubr.f32.mxu1 %v3180_v7  ;;  %v6852_v43 = vpack.i.bf16 %v8939_v24, %v9003_v20  ;;  %v6521_v34 = vunpack.i.h.bf16 %v8913_v26  ;;  %v6520_v42 = vunpack.i.l.bf16 %v8913_v26  ;;  %v2988_v21 = vsel %vm2958_vm4, %v2923_v0, %v6526_v44  ;;  %v9026_v24 = vpop.f32.mrb[79].mxu0  ;;  %v1226_v0 = vld [vmem:[#allocation2 + $0x339] sm:$0xff] }
 0x26c   :  { %v9012_v58 = vpop.permute.xlu1 %6548  ;;  %5732 = vmatmul.mubr.msk.f32.vlgmr.msra.gmra.mrb[96].mxu0 %vm563_vm0, %v4221_v63  ;;  %v3053_v57 = vsel %vm563_vm0, %v1002_v60, %v6565_v25  ;;  %v2859_v47 = vsel %vm563_vm0, %v746_v12, %v6566_v5  ;;  %v6857_v33 = vpack.i.bf16 %v8943_v9, %v1225_v46  ;;  %v6531_v17 = vunpack.i.h.bf16 %v8956_v45  ;;  %v1003_v60 = vld [vmem:[#allocation2 + $0x189] sm:$0xff] }
 0x26d   :  { %v6569_v3 = vpop.permute.xlu0 %6568  ;;  %v6530_v16 = vunpack.i.l.bf16 %v8956_v45  ;;  %v3117_v26 = vsel %vm2893_vm3, %v3053_v57, %v6520_v42  ;;  %v2924_v37 = vsel %vm2893_vm3, %v2859_v47, %v6521_v34  ;;  %v5970_v9 = vunpack.i.l.bf16 %v7923_v41  ;;  %v747_v12 = vld [vmem:[#allocation2 + $0x170] sm:$0xff] }
 0x26e   :  { %v6571_v18 = vunpack.i.h.bf16 %v6569_v3  ;;  %v6570_v23 = vunpack.i.l.bf16 %v6569_v3  ;;  %6853 = vrot.lane.b32.xlu1 %v6852_v43, %s6959_s1  ;;  %3660 = vmatmul.mubr.f32.gmra.mrb[90].mxu1 %v2988_v21  ;;  %v6862_v63 = vpack.i.bf16 %v8925_v19, %v9037_v52  ;;  %v6867_v25 = vpack.i.bf16 %v8972_v32, %v9024_v22  ;;  %v1004_v47 = vld [vmem:[#allocation2 + $0x1c9] sm:$0xff] }
 0x26f   :  { %6858 = vrot.lane.b32.xlu0 %v6857_v33, %s6958_s17  ;;  %v5956_v46 = vunpack.i.h.bf16 %v7904_v35  ;;  %v6015_v44 = vunpack.i.l.bf16 %v8000_v59  ;;  %v5955_v19 = vunpack.i.l.bf16 %v7904_v35  ;;  %v5971_v43 = vunpack.i.h.bf16 %v7923_v41 }
 0x270   :  { %v9034_v10 = vpop.permute.xlu1 %6578  ;;  %v3181_v7 = vsel %vm2958_vm4, %v3117_v26, %v6570_v23  ;;  %v2989_v5 = vsel %vm2958_vm4, %v2924_v37, %v6571_v18  ;;  %v3054_v57 = vsel %vm563_vm0, %v1003_v60, %v6530_v16  ;;  %v2860_v32 = vsel %vm563_vm0, %v747_v12, %v6531_v17  ;;  %v6926_v26 = vld [vmem:[#allocation2 + $0x332] sm:$0xff]  ;;  %v1163_v17 = vld [vmem:[#allocation2 + $0x348] sm:$0xff] }
 0x271   :  { %v9042_v45 = vpop.permute.xlu0 %6573  ;;  %3664 = vmatprep.mubr.f32.mxu1 %v3181_v7  ;;  %v6496_v34 = vunpack.i.h.bf16 %v8866_v2  ;;  %v6495_v42 = vunpack.i.l.bf16 %v8866_v2  ;;  %v6872_v21 = vpack.i.bf16 %v8960_v51, %v1226_v0  ;;  %v3055_v33 = vsel %vm563_vm0, %v1004_v47, %v5970_v9  ;;  %v748_v37 = vld [vmem:[#allocation2 + $0x1b0] sm:$0xff]  ;;  %v749_v60 = vld [vmem:[#allocation2 + $0x1b8] sm:$0xff] }
 0x272   :  { %6863 = vrot.lane.b32.xlu1 %v6862_v63, %s6956_s14  ;;  %3665 = vmatmul.mubr.f32.gmra.mrb[92].mxu1 %v2989_v5  ;;  %v6016_v35 = vunpack.i.h.bf16 %v8000_v59  ;;  %v6877_v16 = vpack.i.bf16 %v8946_v8, %v6926_v26  ;;  %v6025_v7 = vunpack.i.l.bf16 %v7992_v48  ;;  %v3119_v9 = vsel %vm2893_vm3, %v3055_v33, %v6015_v44  ;;  %v1227_v59 = vld [vmem:[#allocation2 + $0x349] sm:$0xff]  ;;  %v1005_v0 = vld [vmem:[#allocation2 + $0x1d1] sm:$0xff] }
 0x273   :  { %6868 = vrot.lane.b32.xlu0 %v6867_v25, %s6959_s1  ;;  %v3118_v2 = vsel %vm2893_vm3, %v3054_v57, %v6495_v42  ;;  %v2925_v51 = vsel %vm2893_vm3, %v2860_v32, %v6496_v34  ;;  %v6020_v63 = vunpack.i.l.bf16 %v7968_v27  ;;  %v6026_v5 = vunpack.i.h.bf16 %v7992_v48 }
 0x274   :  { %v6589_v3 = vpop.permute.xlu1 %6588  ;;  %v6882_v57 = vpack.i.bf16 %v8998_v61, %v1163_v17  ;;  %v2861_v44 = vsel %vm563_vm0, %v748_v37, %v5971_v43  ;;  %v3056_v32 = vsel %vm563_vm0, %v1005_v0, %v5955_v19  ;;  %v6030_v47 = vunpack.i.l.bf16 %v8005_v4  ;;  %v1164_v19 = vld [vmem:[#allocation2 + $0x350] sm:$0xff] }
 0x275   :  { %v6591_v18 = vunpack.i.h.bf16 %v6589_v3  ;;  %v6590_v41 = vunpack.i.l.bf16 %v6589_v3  ;;  %v9059_v23 = vpop.permute.xlu0 %6583  ;;  %v3183_v34 = vsel %vm2958_vm4, %v3119_v9, %v6020_v63  ;;  %v6887_v42 = vpack.i.bf16 %v9003_v20, %v1227_v59 }
 0x276   :  { %6873 = vrot.lane.b32.xlu1 %v6872_v21, %s6958_s17  ;;  %v2926_v3 = vsel %vm2893_vm3, %v2861_v44, %v6016_v35  ;;  %v6021_v21 = vunpack.i.h.bf16 %v7968_v27  ;;  %v6075_v33 = vunpack.i.l.bf16 %v8092_v31  ;;  %v3120_v61 = vsel %vm2893_vm3, %v3056_v32, %v6025_v7  ;;  %v6927_v7 = vld [vmem:[#allocation2 + $0x33a] sm:$0xff] }
 0x277   :  { %6878 = vrot.lane.b32.xlu0 %v6877_v16, %s6956_s14  ;;  %v3182_v8 = vsel %vm2958_vm4, %v3118_v2, %v6590_v41  ;;  %v2990_v25 = vsel %vm2958_vm4, %v2925_v51, %v6591_v18  ;;  %v2862_v43 = vsel %vm563_vm0, %v749_v60, %v5956_v46  ;;  %v9088_v18 = vpop.f32.mrb[80].mxu0  ;;  %v5981_v41 = vunpack.i.h.bf16 %v7912_v14  ;;  %v750_v60 = vld [vmem:[#allocation2 + $0x1c8] sm:$0xff] }
 0x278   :  { %v9072_v12 = vpop.permute.xlu1 %6593  ;;  %3669 = vmatprep.mubr.f32.mxu1 %v3182_v8  ;;  %v5980_v20 = vunpack.i.l.bf16 %v7912_v14  ;;  %v5985_v35 = vunpack.i.l.bf16 %v7920_v39  ;;  %v2927_v27 = vsel %vm2893_vm3, %v2862_v43, %v6026_v5  ;;  %v9095_v26 = vpop.f32.mrb[81].mxu0  ;;  %v6031_v16 = vunpack.i.h.bf16 %v8005_v4  ;;  %v1006_v14 = vld [vmem:[#allocation2 + $0x1e1] sm:$0xff]  ;;  %v1228_v4 = vld [vmem:[#allocation2 + $0x351] sm:$0xff] }
 0x279   :  { %v9078_v48 = vpop.permute.xlu0 %6598  ;;  %3670 = vmatmul.mubr.f32.gmra.mrb[94].mxu1 %v2990_v25  ;;  %v6085_v17 = vunpack.i.l.bf16 %v8079_v13  ;;  %v2991_v46 = vsel %vm2958_vm4, %v2926_v3, %v6021_v21  ;;  %v6892_v2 = vpack.i.bf16 %v8962_v36, %v6927_v7  ;;  %v6076_v51 = vunpack.i.h.bf16 %v8092_v31  ;;  %v1007_v25 = vld [vmem:[#allocation2 + $0x1e9] sm:$0xff] }
 0x27a   :  { %6883 = vrot.lane.b32.xlu1 %v6882_v57, %s6959_s1  ;;  %3674 = vmatprep.mubr.f32.mxu1 %v3183_v34  ;;  %v3184_v59 = vsel %vm2958_vm4, %v3120_v61, %v5980_v20  ;;  %v6897_v63 = vpack.i.bf16 %v9037_v52, %v1164_v19  ;;  %v3057_v5 = vsel %vm563_vm0, %v1006_v14, %v6030_v47  ;;  %v5986_v36 = vunpack.i.h.bf16 %v7920_v39  ;;  %v1008_v14 = vld [vmem:[#allocation2 + $0x1f9] sm:$0xff] }
 0x27b   :  { %6888 = vrot.lane.b32.xlu0 %v6887_v42, %s6958_s17  ;;  %v3121_v8 = vsel %vm2893_vm3, %v3057_v5, %v6075_v33  ;;  %v6080_v31 = vunpack.i.l.bf16 %v8060_v50  ;;  %v2992_v0 = vsel %vm2958_vm4, %v2927_v27, %v5981_v41  ;;  %v3058_v52 = vsel %vm563_vm0, %v1007_v25, %v5985_v35  ;;  %v751_v41 = vld [vmem:[#allocation2 + $0x1d0] sm:$0xff] }
 0x27c   :  { %v9099_v37 = vpop.permute.xlu1 %6603  ;;  %v6086_v57 = vunpack.i.h.bf16 %v8079_v13  ;;  %v6902_v47 = vpack.i.bf16 %v9024_v22, %v1228_v4  ;;  %v2863_v34 = vsel %vm563_vm0, %v750_v60, %v6031_v16  ;;  %v3122_v39 = vsel %vm2893_vm3, %v3058_v52, %v6085_v17  ;;  %v752_v60 = vld [vmem:[#allocation2 + $0x1e0] sm:$0xff] }
 0x27d   :  { %v9104_v9 = vpop.permute.xlu0 %6608  ;;  %3675 = vmatmul.mubr.f32.gmra.mrb[96].mxu1 %v2991_v46  ;;  %v6090_v42 = vunpack.i.l.bf16 %v8097_v38  ;;  %v3185_v61 = vsel %vm2958_vm4, %v3121_v8, %v6080_v31  ;;  %v2928_v13 = vsel %vm2893_vm3, %v2863_v34, %v6076_v51  ;;  %v6040_v19 = vunpack.i.l.bf16 %v8029_v15  ;;  %v1009_v52 = vld [vmem:[#allocation2 + $0x201] sm:$0xff] }
 0x27e   :  { %6893 = vrot.lane.b32.xlu1 %v6892_v2, %s6956_s14  ;;  %3679 = vmatprep.mubr.f32.mxu1 %v3184_v59  ;;  %v6081_v22 = vunpack.i.h.bf16 %v8060_v50  ;;  %v6130_v43 = vunpack.i.l.bf16 %v8193_v1  ;;  %v6045_v20 = vunpack.i.l.bf16 %v8039_v30  ;;  %v2864_v27 = vsel %vm563_vm0, %v751_v41, %v5986_v36  ;;  %v9149_v36 = vpop.f32.mrb[82].mxu0 }
 0x27f   :  { %6898 = vrot.lane.b32.xlu0 %v6897_v63, %s6959_s1  ;;  %v6091_v16 = vunpack.i.h.bf16 %v8097_v38  ;;  %v3186_v50 = vsel %vm2958_vm4, %v3122_v39, %v6040_v19  ;;  %v2929_v2 = vsel %vm2893_vm3, %v2864_v27, %v6086_v57  ;;  %v6131_v51 = vunpack.i.h.bf16 %v8193_v1  ;;  %v9155_v57 = vpop.f32.mrb[83].mxu0  ;;  %v1010_v27 = vld [vmem:[#allocation2 + $0x211] sm:$0xff] }
 0x280   :  { %v9117_v44 = vpop.permute.xlu1 %6613  ;;  %v3526_v32 = vpop.f32.mrb[36].mxu1  ;;  %v2993_v7 = vsel %vm2958_vm4, %v2928_v13, %v6081_v22  ;;  %v3059_v38 = vsel %vm563_vm0, %v1008_v14, %v6090_v42  ;;  %v6041_v5 = vunpack.i.h.bf16 %v8029_v15  ;;  %v6140_v8 = vunpack.i.l.bf16 %v8162_v11  ;;  %v753_v22 = vld [vmem:[#allocation2 + $0x1e8] sm:$0xff]  ;;  %v10103_v14 = vld [vmem:[#allocation8_spill] sm:$0xff] }
 0x281   :  { %v3527_v3 = vadd.f32 %v8954_v28, %v3526_v32  ;;  %v9124_v21 = vpop.permute.xlu0 %6618  ;;  %v3528_v33 = vpop.f32.mrb[37].mxu1  ;;  %3680 = vmatmul.mubr.f32.gmra.mrb[98].mxu1 %v2992_v0  ;;  %v3123_v25 = vsel %vm2893_vm3, %v3059_v38, %v6130_v43  ;;  %v6046_v1 = vunpack.i.h.bf16 %v8039_v30  ;;  %v6135_v31 = vunpack.i.l.bf16 %v8145_v49  ;;  %v754_v38 = vld [vmem:[#allocation2 + $0x1f8] sm:$0xff] }
 0x282   :  { %6903 = vrot.lane.b32.xlu1 %v6902_v47, %s6958_s17  ;;  %3684 = vmatprep.mubr.f32.mxu1 %v3185_v61  ;;  %v6141_v15 = vunpack.i.h.bf16 %v8162_v11  ;;  %v2994_v47 = vsel %vm2958_vm4, %v2929_v2, %v6041_v5  ;;  %v2865_v34 = vsel %vm563_vm0, %v752_v60, %v6091_v16  ;;  %v3060_v30 = vsel %vm563_vm0, %v1009_v52, %v6045_v20 }
 0x283   :  { %v3912_v35 = vadd.f32 %v8320_v29, %v3527_v3  ;;  %v6145_v39 = vunpack.i.l.bf16 %v8186_v54  ;;  %v3187_v3 = vsel %vm2958_vm4, %v3123_v25, %v6135_v31  ;;  %v2930_v33 = vsel %vm2893_vm3, %v2865_v34, %v6131_v51  ;;  %v1011_v31 = vld [vmem:[#allocation2 + $0x219] sm:$0xff] }
 0x284   :  { %v9136_v17 = vpop.permute.xlu1 %6623  ;;  %v3531_v46 = vpop.f32.mrb[38].mxu1  ;;  %v6136_v11 = vunpack.i.h.bf16 %v8145_v49  ;;  %v6185_v61 = vunpack.i.l.bf16 %v8275_v55  ;;  %v3124_v13 = vsel %vm2893_vm3, %v3060_v30, %v6140_v8  ;;  %v6100_v19 = vunpack.i.l.bf16 %v8110_v56  ;;  %v10106_v30 = vld [vmem:[#allocation12_spill] sm:$0xff] }
 0x285   :  { %v4222_v59 = vmax.f32 %v3912_v35, 0.0  ;;  %v3532_v63 = vadd.f32 %v8954_v28, %v3531_v46  ;;  %v9143_v29 = vpop.permute.xlu0 %6628  ;;  %v3533_v4 = vpop.f32.mrb[39].mxu1  ;;  %3685 = vmatmul.mubr.f32.gmra.mrb[100].mxu1 %v2993_v7  ;;  %v6105_v43 = vunpack.i.l.bf16 %v8127_v53  ;;  %v6146_v41 = vunpack.i.h.bf16 %v8186_v54 }
 0x286   :  { %3689 = vmatprep.mubr.f32.mxu1 %v3186_v50  ;;  %v2995_v35 = vsel %vm2958_vm4, %v2930_v33, %v6136_v11  ;;  %v2866_v49 = vsel %vm563_vm0, %v753_v22, %v6046_v1  ;;  %v6186_v16 = vunpack.i.h.bf16 %v8275_v55  ;;  %v3188_v7 = vsel %vm2958_vm4, %v3124_v13, %v6100_v19  ;;  %v10104_v4 = vld [vmem:[#allocation7_spill] sm:$0xff]  ;;  %v755_v11 = vld [vmem:[#allocation2 + $0x200] sm:$0xff] }
 0x287   :  { %v3917_v0 = vadd.f32 %v8316_v62, %v3532_v63  ;;  %5734 = vmatprep.mubr.msk.f32.mxu0 %vm563_vm0, %v4222_v59  ;;  %v2931_v50 = vsel %vm2893_vm3, %v2866_v49, %v6141_v15  ;;  %v3061_v2 = vsel %vm563_vm0, %v1010_v27, %v6145_v39  ;;  %v6101_v54 = vunpack.i.h.bf16 %v8110_v56  ;;  %v10105_v56 = vld [vmem:[#allocation9_spill] sm:$0xff]  ;;  %v10107_v13 = vld [vmem:[#allocation6_spill] sm:$0xff]  ;;  %v10108_v49 = vld [vmem:[#allocation11_spill] sm:$0xff] }
 0x288   :  { %v9158_v32 = vpop.permute.xlu1 %6633  ;;  %v6195_v51 = vunpack.i.l.bf16 %v10103_v14  ;;  %v3125_v59 = vsel %vm2893_vm3, %v3061_v2, %v6185_v61  ;;  %v6106_v63 = vunpack.i.h.bf16 %v8127_v53  ;;  %v6190_v55 = vunpack.i.l.bf16 %v10104_v4  ;;  %v9205_v61 = vpop.f32.mrb[84].mxu0  ;;  %v1012_v2 = vld [vmem:[#allocation2 + $0x229] sm:$0xff] }
 0x289   :  { %v4223_v42 = vmax.f32 %v3917_v0, 0.0  ;;  %v9164_v62 = vpop.permute.xlu0 %6638  ;;  %3690 = vmatmul.mubr.f32.gmra.mrb[102].mxu1 %v2994_v47  ;;  %v6196_v5 = vunpack.i.h.bf16 %v10103_v14  ;;  %v2996_v25 = vsel %vm2958_vm4, %v2931_v50, %v6101_v54  ;;  %v2867_v1 = vsel %vm563_vm0, %v754_v38, %v6146_v41  ;;  %v10109_v54 = vld [vmem:[#allocation13_spill] sm:$0xff] }
 0x28a   :  { %3694 = vmatprep.mubr.f32.mxu1 %v3187_v3  ;;  %v6200_v0 = vunpack.i.l.bf16 %v10105_v56  ;;  %v3189_v53 = vsel %vm2958_vm4, %v3125_v59, %v6190_v55  ;;  %v2932_v15 = vsel %vm2893_vm3, %v2867_v1, %v6186_v16  ;;  %v3062_v47 = vsel %vm563_vm0, %v1011_v31, %v6105_v43  ;;  %v9210_v43 = vpop.f32.mrb[85].mxu0 }
 0x28b   :  { %5735 = vmatmul.mubr.msk.f32.gmra.mrb[98].mxu0 %vm563_vm0, %v4223_v42  ;;  %v6191_v34 = vunpack.i.h.bf16 %v10104_v4  ;;  %v6235_v39 = vunpack.i.l.bf16 %v10106_v30  ;;  %v3126_v33 = vsel %vm2893_vm3, %v3062_v47, %v6195_v51  ;;  %v6160_v19 = vunpack.i.l.bf16 %v10107_v13  ;;  %v10110_v47 = vld [vmem:[#allocation10_spill] sm:$0xff] }
 0x28c   :  { %v9175_v20 = vpop.permute.xlu1 %6643  ;;  %v6201_v22 = vunpack.i.h.bf16 %v10105_v56  ;;  %v2868_v41 = vsel %vm563_vm0, %v755_v11, %v6106_v63  ;;  %v6240_v14 = vunpack.i.l.bf16 %v10109_v54  ;;  %v6540_v51 = vunpack.i.l.bf16 %v8992_v6  ;;  %v756_v56 = vld [vmem:[#allocation2 + $0x210] sm:$0xff] }
 0x28d   :  { %v9180_v46 = vpop.permute.xlu0 %6648  ;;  %3695 = vmatmul.mubr.f32.gmra.mrb[104].mxu1 %v2995_v35  ;;  %v6236_v35 = vunpack.i.h.bf16 %v10106_v30  ;;  %v2933_v50 = vsel %vm2893_vm3, %v2868_v41, %v6196_v5  ;;  %v3190_v4 = vsel %vm2958_vm4, %v3126_v33, %v6160_v19  ;;  %v3063_v55 = vsel %vm563_vm0, %v1012_v2, %v6200_v0  ;;  %v10111_v19 = vld [vmem:[#allocation52_spill] sm:$0xff] }
 0x28e   :  { %3699 = vmatprep.mubr.f32.mxu1 %v3188_v7  ;;  %v2997_v7 = vsel %vm2958_vm4, %v2932_v15, %v6191_v34  ;;  %v6161_v38 = vunpack.i.h.bf16 %v10107_v13  ;;  %v3127_v5 = vsel %vm2893_vm3, %v3063_v55, %v6235_v39  ;;  %v6241_v15 = vunpack.i.h.bf16 %v10109_v54 }
 0x28f   :  { %v6550_v39 = vunpack.i.l.bf16 %v9012_v58  ;;  %v6575_v33 = vunpack.i.l.bf16 %v9042_v45  ;;  %v3191_v11 = vsel %vm2958_vm4, %v3127_v5, %v6240_v14  ;;  %v6586_v5 = vunpack.i.h.bf16 %v9059_v23 }
 0x290   :  { %v9191_v8 = vpop.permute.xlu1 %6653  ;;  %v2998_v0 = vsel %vm2958_vm4, %v2933_v50, %v6161_v38  ;;  %v6546_v50 = vunpack.i.h.bf16 %v10111_v19  ;;  %v6580_v38 = vunpack.i.l.bf16 %v9034_v10 }
 0x291   :  { %v9196_v60 = vpop.permute.xlu0 %6658  ;;  %v3536_v52 = vpop.f32.mrb[40].mxu1  ;;  %3700 = vmatmul.mubr.f32.gmra.mrb[106].mxu1 %v2996_v25 }
 0x292   :  { %v3537_v42 = vadd.f32 %v8954_v28, %v3536_v52  ;;  %v3538_v3 = vpop.f32.mrb[41].mxu1  ;;  %3704 = vmatprep.mubr.f32.mxu1 %v3189_v53  ;;  %v6541_v52 = vunpack.i.h.bf16 %v8992_v6  ;;  %v2869_v53 = vsel %vm563_vm0, %v756_v56, %v6201_v22  ;;  %v6545_v22 = vunpack.i.l.bf16 %v10111_v19 }
 0x293   :  { %v1013_v3 = vld [vmem:[#allocation2 + $0x231] sm:$0xff]  ;;  %v6601_v19 = vunpack.i.h.bf16 %v9078_v48 }
 0x294   :  { %v3922_v27 = vadd.f32 %v10108_v49, %v3537_v42  ;;  %v9214_v16 = vpop.permute.xlu1 %6663  ;;  %v2934_v42 = vsel %vm2893_vm3, %v2869_v53, %v6236_v35  ;;  %v3064_v13 = vsel %vm563_vm0, %v1013_v3, %v6540_v51  ;;  %v757_v49 = vld [vmem:[#allocation2 + $0x218] sm:$0xff]  ;;  %v6576_v35 = vunpack.i.h.bf16 %v9042_v45  ;;  %v1014_v51 = vld [vmem:[#allocation2 + $0x241] sm:$0xff]  ;;  %v1015_v3 = vld [vmem:[#allocation2 + $0x249] sm:$0xff] }
 0x295   :  { %v9220_v59 = vpop.permute.xlu0 %6668  ;;  %v3541_v63 = vpop.f32.mrb[42].mxu1  ;;  %3705 = vmatmul.mubr.f32.gmra.mrb[108].mxu1 %v2997_v7  ;;  %v2870_v7 = vsel %vm563_vm0, %v757_v49, %v6541_v52  ;;  %v2999_v54 = vsel %vm2958_vm4, %v2934_v42, %v6241_v15  ;;  %v3128_v14 = vsel %vm2893_vm3, %v3064_v13, %v6545_v22  ;;  %v3065_v55 = vsel %vm563_vm0, %v1014_v51, %v6575_v33  ;;  %v759_v49 = vld [vmem:[#allocation2 + $0x230] sm:$0xff] }
 0x296   :  { %v4224_v25 = vmax.f32 %v3922_v27, 0.0  ;;  %v3542_v1 = vadd.f32 %v8954_v28, %v3541_v63  ;;  %v3543_v31 = vpop.f32.mrb[43].mxu1  ;;  %3709 = vmatprep.mubr.f32.mxu1 %v3190_v4  ;;  %v6551_v27 = vunpack.i.h.bf16 %v9012_v58  ;;  %v6585_v63 = vunpack.i.l.bf16 %v9059_v23 }
 0x297   :  { %v6595_v4 = vunpack.i.l.bf16 %v9072_v12  ;;  %v3192_v45 = vsel %vm2958_vm4, %v3128_v14, %v6550_v39  ;;  %v9260_v31 = vpop.f32.mrb[86].mxu0  ;;  %v6581_v15 = vunpack.i.h.bf16 %v9034_v10  ;;  %v3129_v42 = vsel %vm2893_vm3, %v3065_v55, %v6580_v38  ;;  %v1016_v14 = vld [vmem:[#allocation2 + $0x259] sm:$0xff] }
 0x298   :  { %v3927_v34 = vadd.f32 %v10110_v47, %v3542_v1  ;;  %v9231_v30 = vpop.permute.xlu1 %6673  ;;  %5737 = vmatprep.mubr.msk.f32.mxu0 %vm563_vm0, %v4224_v25  ;;  %v2935_v25 = vsel %vm2893_vm3, %v2870_v7, %v6546_v50  ;;  %v758_v1 = vld [vmem:[#allocation2 + $0x228] sm:$0xff]  ;;  %v9265_v53 = vpop.f32.mrb[87].mxu0  ;;  %v6596_v47 = vunpack.i.h.bf16 %v9072_v12  ;;  %v6605_v39 = vunpack.i.l.bf16 %v9099_v37 }
 0x299   :  { %v9238_v6 = vpop.permute.xlu0 %6678  ;;  %3710 = vmatmul.mubr.f32.gmra.mrb[110].mxu1 %v2998_v0  ;;  %v3000_v56 = vsel %vm2958_vm4, %v2935_v25, %v6551_v27  ;;  %v2871_v52 = vsel %vm563_vm0, %v758_v1, %v6576_v35  ;;  %v6610_v23 = vunpack.i.l.bf16 %v9104_v9  ;;  %v3066_v10 = vsel %vm563_vm0, %v1015_v3, %v6595_v4  ;;  %v760_v4 = vld [vmem:[#allocation2 + $0x240] sm:$0xff] }
 0x29a   :  { %v4225_v41 = vmax.f32 %v3927_v34, 0.0  ;;  %3714 = vmatprep.mubr.f32.mxu1 %v3191_v11  ;;  %v6600_v34 = vunpack.i.l.bf16 %v9078_v48  ;;  %v3193_v11 = vsel %vm2958_vm4, %v3129_v42, %v6585_v63  ;;  %v6615_v12 = vunpack.i.l.bf16 %v9117_v44 }
 0x29b   :  { %v2936_v13 = vsel %vm2893_vm3, %v2871_v52, %v6581_v15  ;;  %v6611_v22 = vunpack.i.h.bf16 %v9104_v9  ;;  %v6606_v27 = vunpack.i.h.bf16 %v9099_v37  ;;  %v6616_v35 = vunpack.i.h.bf16 %v9117_v44  ;;  %v1017_v15 = vld [vmem:[#allocation2 + $0x261] sm:$0xff] }
 0x29c   :  { %v9247_v2 = vpop.permute.xlu1 %6683  ;;  %5738 = vmatmul.mubr.msk.f32.gmra.mrb[100].mxu0 %vm563_vm0, %v4225_v41  ;;  %v3001_v41 = vsel %vm2958_vm4, %v2936_v13, %v6586_v5  ;;  %v3130_v50 = vsel %vm2893_vm3, %v3066_v10, %v6600_v34  ;;  %v6620_v51 = vunpack.i.l.bf16 %v9124_v21  ;;  %v6625_v48 = vunpack.i.l.bf16 %v9136_v17  ;;  %v761_v13 = vld [vmem:[#allocation2 + $0x248] sm:$0xff] }
 0x29d   :  { %v9254_v58 = vpop.permute.xlu0 %6688  ;;  %3715 = vmatmul.mubr.f32.gmra.mrb[112].mxu1 %v2999_v54  ;;  %v2872_v54 = vsel %vm563_vm0, %v759_v49, %v6596_v47  ;;  %v3194_v9 = vsel %vm2958_vm4, %v3130_v50, %v6605_v39  ;;  %v3067_v37 = vsel %vm563_vm0, %v1016_v14, %v6610_v23  ;;  %v2873_v38 = vsel %vm563_vm0, %v760_v4, %v6611_v22  ;;  %v9314_v23 = vpop.f32.mrb[88].mxu0  ;;  %v1018_v50 = vld [vmem:[#allocation2 + $0x271] sm:$0xff] }
 0x29e   :  { %3719 = vmatprep.mubr.f32.mxu1 %v3192_v45  ;;  %v3131_v44 = vsel %vm2893_vm3, %v3067_v37, %v6615_v12  ;;  %v6621_v45 = vunpack.i.h.bf16 %v9124_v21  ;;  %v2937_v55 = vsel %vm2893_vm3, %v2872_v54, %v6601_v19  ;;  %v6626_v25 = vunpack.i.h.bf16 %v9136_v17  ;;  %v9319_v19 = vpop.f32.mrb[89].mxu0 }
 0x29f   :  { %v6630_v1 = vunpack.i.l.bf16 %v9143_v29  ;;  %v2938_v52 = vsel %vm2893_vm3, %v2873_v38, %v6616_v35  ;;  %v6635_v47 = vunpack.i.l.bf16 %v9158_v32  ;;  %v6640_v34 = vunpack.i.l.bf16 %v9164_v62 }
 0x2a0   :  { %v9270_v0 = vpop.permute.xlu1 %6693  ;;  %v3195_v42 = vsel %vm2958_vm4, %v3131_v44, %v6620_v51  ;;  %v3068_v17 = vsel %vm563_vm0, %v1017_v15, %v6625_v48  ;;  %v6641_v3 = vunpack.i.h.bf16 %v9164_v62  ;;  %v6645_v39 = vunpack.i.l.bf16 %v9175_v20  ;;  %v762_v48 = vld [vmem:[#allocation2 + $0x258] sm:$0xff] }
 0x2a1   :  { %v9275_v33 = vpop.permute.xlu0 %6698  ;;  %3720 = vmatmul.mubr.f32.gmra.mrb[114].mxu1 %v3000_v56  ;;  %v3002_v56 = vsel %vm2958_vm4, %v2937_v55, %v6606_v27  ;;  %v6646_v10 = vunpack.i.h.bf16 %v9175_v20  ;;  %v3003_v12 = vsel %vm2958_vm4, %v2938_v52, %v6621_v45  ;;  %v6636_v22 = vunpack.i.h.bf16 %v9158_v32  ;;  %v10112_v45 = vld [vmem:[#allocation15_spill] sm:$0xff] }
 0x2a2   :  { %3724 = vmatprep.mubr.f32.mxu1 %v3193_v11  ;;  %v6631_v11 = vunpack.i.h.bf16 %v9143_v29  ;;  %v3132_v27 = vsel %vm2893_vm3, %v3068_v17, %v6630_v1  ;;  %v2874_v35 = vsel %vm563_vm0, %v761_v13, %v6626_v25  ;;  %v6650_v29 = vunpack.i.l.bf16 %v9180_v46  ;;  %v1019_v1 = vld [vmem:[#allocation2 + $0x279] sm:$0xff] }
 0x2a3   :  { %v3196_v32 = vsel %vm2958_vm4, %v3132_v27, %v6635_v47  ;;  %v3069_v51 = vsel %vm563_vm0, %v1018_v50, %v6640_v34  ;;  %v2875_v44 = vsel %vm563_vm0, %v762_v48, %v6641_v3  ;;  %v6660_v4 = vunpack.i.l.bf16 %v9196_v60  ;;  %v763_v27 = vld [vmem:[#allocation2 + $0x260] sm:$0xff] }
 0x2a4   :  { %v9286_v7 = vpop.permute.xlu1 %6703  ;;  %v3133_v37 = vsel %vm2893_vm3, %v3069_v51, %v6645_v39  ;;  %v2939_v38 = vsel %vm2893_vm3, %v2874_v35, %v6631_v11  ;;  %v2940_v25 = vsel %vm2893_vm3, %v2875_v44, %v6646_v10  ;;  %v6665_v52 = vunpack.i.l.bf16 %v9214_v16 }
 0x2a5   :  { %v9292_v63 = vpop.permute.xlu0 %6708  ;;  %3725 = vmatmul.mubr.f32.gmra.mrb[116].mxu1 %v3001_v41  ;;  %v6655_v41 = vunpack.i.l.bf16 %v9191_v8  ;;  %v3004_v47 = vsel %vm2958_vm4, %v2939_v38, %v6636_v22  ;;  %v6675_v10 = vunpack.i.l.bf16 %v9231_v30  ;;  %v6661_v13 = vunpack.i.h.bf16 %v9196_v60  ;;  %v1020_v60 = vld [vmem:[#allocation2 + $0x289] sm:$0xff] }
 0x2a6   :  { %3729 = vmatprep.mubr.f32.mxu1 %v3194_v9  ;;  %v6651_v9 = vunpack.i.h.bf16 %v9180_v46  ;;  %v6671_v22 = vunpack.i.h.bf16 %v9220_v59  ;;  %v6666_v35 = vunpack.i.h.bf16 %v9214_v16  ;;  %v6676_v50 = vunpack.i.h.bf16 %v9231_v30  ;;  %v764_v30 = vld [vmem:[#allocation2 + $0x270] sm:$0xff] }
 0x2a7   :  { %v3070_v34 = vsel %vm563_vm0, %v1019_v1, %v6655_v41  ;;  %v10113_v41 = vld [vmem:[#allocation14_spill] sm:$0xff]  ;;  %v6681_v44 = vunpack.i.h.bf16 %v9238_v6  ;;  %v6686_v38 = vunpack.i.h.bf16 %v9247_v2 }
 0x2a8   :  { %v9302_v5 = vpop.permute.xlu1 %6713 }
 0x2a9   :  { %v9308_v21 = vpop.permute.xlu0 %6718  ;;  %3730 = vmatmul.mubr.f32.gmra.mrb[118].mxu1 %v3002_v56  ;;  %v6656_v56 = vunpack.i.h.bf16 %v9191_v8  ;;  %v3197_v8 = vsel %vm2958_vm4, %v3133_v37, %v6650_v29  ;;  %v9370_v37 = vpop.f32.mrb[90].mxu0 }
 0x2aa   :  { %3734 = vmatprep.mubr.f32.mxu1 %v3195_v42  ;;  %v6670_v42 = vunpack.i.l.bf16 %v9220_v59  ;;  %v6680_v59 = vunpack.i.l.bf16 %v9238_v6  ;;  %v6695_v6 = vunpack.i.l.bf16 %v9270_v0 }
 0x2ac   :  { %v9323_v49 = vpop.permute.xlu1 %6723  ;;  %v3546_v62 = vpop.f32.mrb[44].mxu1 }
 0x2ad   :  { %v3547_v20 = vadd.f32 %v8954_v28, %v3546_v62  ;;  %v9329_v54 = vpop.permute.xlu0 %6728  ;;  %v3548_v14 = vpop.f32.mrb[45].mxu1  ;;  %3735 = vmatmul.mubr.f32.gmra.mrb[120].mxu1 %v3003_v12  ;;  %v3005_v12 = vsel %vm2958_vm4, %v2940_v25, %v6651_v9  ;;  %v3071_v9 = vsel %vm563_vm0, %v1020_v60, %v6670_v42  ;;  %v6690_v25 = vunpack.i.l.bf16 %v9254_v58 }
 0x2ae   :  { %3739 = vmatprep.mubr.f32.mxu1 %v3196_v32  ;;  %v2876_v14 = vsel %vm563_vm0, %v763_v27, %v6656_v56  ;;  %v6685_v32 = vunpack.i.l.bf16 %v9247_v2  ;;  %v3135_v16 = vsel %vm2893_vm3, %v3071_v9, %v6675_v10  ;;  %v765_v10 = vld [vmem:[#allocation2 + $0x278] sm:$0xff]  ;;  %v1022_v27 = vld [vmem:[#allocation2 + $0x2a1] sm:$0xff]  ;;  %v6711_v9 = vunpack.i.h.bf16 %v9292_v63 }
 0x2af   :  { %v3932_v55 = vadd.f32 %v10112_v45, %v3547_v20  ;;  %v2877_v45 = vsel %vm563_vm0, %v764_v30, %v6671_v22  ;;  %v3199_v42 = vsel %vm2958_vm4, %v3135_v16, %v6680_v59  ;;  %v6706_v22 = vunpack.i.h.bf16 %v9286_v7 }
 0x2b0   :  { %v9342_v15 = vpop.permute.xlu1 %6733  ;;  %v3551_v46 = vpop.f32.mrb[46].mxu1  ;;  %v6716_v16 = vunpack.i.h.bf16 %v9302_v5 }
 0x2b1   :  { %v4226_v17 = vmax.f32 %v3932_v55, 0.0  ;;  %v3552_v3 = vadd.f32 %v8954_v28, %v3551_v46  ;;  %v9348_v39 = vpop.permute.xlu0 %6738  ;;  %v3553_v11 = vpop.f32.mrb[47].mxu1  ;;  %3740 = vmatmul.mubr.f32.gmra.mrb[122].mxu1 %v3004_v47  ;;  %v3134_v28 = vsel %vm2893_vm3, %v3070_v34, %v6660_v4  ;;  %v2941_v4 = vsel %vm2893_vm3, %v2876_v14, %v6661_v13  ;;  %v1021_v46 = vld [vmem:[#allocation2 + $0x291] sm:$0xff]  ;;  %v9413_v14 = vld [vmem:[%s10043_s4] ss:$0 sm:$0xff] }
 0x2b2   :  { %3744 = vmatprep.mubr.f32.mxu1 %v3197_v8  ;;  %v3198_v20 = vsel %vm2958_vm4, %v3134_v28, %v6665_v52  ;;  %v9376_v55 = vpop.f32.mrb[91].mxu0  ;;  %v3006_v56 = vsel %vm2958_vm4, %v2941_v4, %v6666_v35  ;;  %v2942_v52 = vsel %vm2893_vm3, %v2877_v45, %v6676_v50  ;;  %v6700_v47 = vunpack.i.l.bf16 %v9275_v33  ;;  %v10114_v45 = vld [vmem:[#allocation17_spill] sm:$0xff] }
 0x2b3   :  { %v3937_v62 = vadd.f32 %v10113_v41, %v3552_v3  ;;  %5740 = vmatprep.mubr.msk.f32.mxu0 %vm563_vm0, %v4226_v17  ;;  %v3072_v2 = vsel %vm563_vm0, %v1021_v46, %v6685_v32  ;;  %v6705_v17 = vunpack.i.l.bf16 %v9286_v7  ;;  %v6691_v3 = vunpack.i.h.bf16 %v9254_v58  ;;  %v1023_v46 = vld [vmem:[#allocation2 + $0x2a9] sm:$0xff] }
 0x2b4   :  { %v9360_v29 = vpop.permute.xlu1 %6743  ;;  %v6701_v11 = vunpack.i.h.bf16 %v9275_v33  ;;  %v3007_v8 = vsel %vm2958_vm4, %v2942_v52, %v6681_v44  ;;  %v6696_v13 = vunpack.i.h.bf16 %v9270_v0  ;;  %v2878_v28 = vsel %vm563_vm0, %v765_v10, %v6686_v38  ;;  %v767_v10 = vld [vmem:[#allocation2 + $0x290] sm:$0xff] }
 0x2b5   :  { %v4227_v51 = vmax.f32 %v3937_v62, 0.0  ;;  %v9366_v48 = vpop.permute.xlu0 %6748  ;;  %3745 = vmatmul.mubr.f32.gmra.mrb[124].mxu1 %v3005_v12  ;;  %v9394_v12 = vpop.f32.mrb[92].mxu0  ;;  %v3136_v62 = vsel %vm2893_vm3, %v3072_v2, %v6690_v25  ;;  %v6710_v58 = vunpack.i.l.bf16 %v9292_v63  ;;  %v6715_v33 = vunpack.i.l.bf16 %v9302_v5 }
 0x2b6   :  { %3749 = vmatprep.mubr.f32.mxu1 %v3198_v20  ;;  %v9402_v35 = vpop.f32.mrb[93].mxu0  ;;  %v3200_v0 = vsel %vm2958_vm4, %v3136_v62, %v6695_v6  ;;  %v3073_v7 = vsel %vm563_vm0, %v1022_v27, %v6700_v47  ;;  %v2943_v30 = vsel %vm2893_vm3, %v2878_v28, %v6691_v3  ;;  %v6720_v4 = vunpack.i.l.bf16 %v9308_v21 }
 0x2b7   :  { %5741 = vmatmul.mubr.msk.f32.gmra.mrb[102].mxu0 %vm563_vm0, %v4227_v51  ;;  %v3137_v32 = vsel %vm2893_vm3, %v3073_v7, %v6705_v17  ;;  %v766_v51 = vld [vmem:[#allocation2 + $0x288] sm:$0xff]  ;;  %v6725_v6 = vunpack.i.l.bf16 %v9323_v49  ;;  %v6730_v63 = vunpack.i.l.bf16 %v9329_v54  ;;  %v3074_v2 = vsel %vm563_vm0, %v1023_v46, %v6715_v33 }
 0x2b8   :  { %v9380_v1 = vpop.permute.xlu1 %6753  ;;  %v2879_v44 = vsel %vm563_vm0, %v766_v51, %v6701_v11  ;;  %v6735_v17 = vunpack.i.l.bf16 %v9342_v15  ;;  %v6731_v62 = vunpack.i.h.bf16 %v9329_v54  ;;  %v2880_v27 = vsel %vm563_vm0, %v767_v10, %v6716_v16  ;;  %v769_v10 = vld [vmem:[#allocation2 + $0x2a8] sm:$0xff] }
 0x2b9   :  { %v9386_v34 = vpop.permute.xlu0 %6758  ;;  %3750 = vmatmul.mubr.f32.gmra.mrb[126].mxu1 %v3006_v56  ;;  %v3008_v56 = vsel %vm2958_vm4, %v2943_v30, %v6696_v13  ;;  %v2944_v52 = vsel %vm2893_vm3, %v2879_v44, %v6706_v22  ;;  %v6721_v22 = vunpack.i.h.bf16 %v9308_v21  ;;  %v6726_v33 = vunpack.i.h.bf16 %v9323_v49  ;;  %v768_v30 = vld [vmem:[#allocation2 + $0x2a0] sm:$0xff] }
 0x2ba   :  { %3754 = vmatprep.mubr.f32.mxu1 %v3199_v42  ;;  %v3201_v42 = vsel %vm2958_vm4, %v3137_v32, %v6710_v58  ;;  %v3009_v28 = vsel %vm2958_vm4, %v2944_v52, %v6711_v9  ;;  %v3138_v21 = vsel %vm2893_vm3, %v3074_v2, %v6720_v4  ;;  %v6740_v54 = vunpack.i.l.bf16 %v9348_v39 }
 0x2bb   :  { %v6745_v32 = vunpack.i.l.bf16 %v9360_v29  ;;  %v3202_v49 = vsel %vm2958_vm4, %v3138_v21, %v6725_v6  ;;  %v6741_v44 = vunpack.i.h.bf16 %v9348_v39  ;;  %v2945_v4 = vsel %vm2893_vm3, %v2880_v27, %v6721_v22 }
 0x2bc   :  { %v9398_v41 = vpop.permute.xlu1 %6763  ;;  %v3010_v46 = vsel %vm2958_vm4, %v2945_v4, %v6726_v33  ;;  %v6760_v39 = vunpack.i.l.bf16 %v9386_v34  ;;  %v6756_v22 = vunpack.i.h.bf16 %v9380_v1 }
 0x2bd   :  { %v9406_v50 = vpop.permute.xlu0 %6768  ;;  %v3556_v20 = vpop.f32.mrb[48].mxu1  ;;  %3755 = vmatmul.mubr.f32.gmra.mrb[128].mxu1 %v3007_v8 }
 0x2be   :  { %v3557_v60 = vadd.f32 %v9413_v14, %v3556_v20  ;;  %v3558_v59 = vpop.f32.mrb[49].mxu1  ;;  %3759 = vmatprep.mubr.f32.mxu1 %v3200_v0  ;;  %v6736_v20 = vunpack.i.h.bf16 %v9342_v15  ;;  %v10115_v0 = vld [vmem:[#allocation16_spill] sm:$0xff] }
 0x2bf   :  { %v1024_v59 = vld [vmem:[#allocation2 + $0x2b9] sm:$0xff] }
 0x2c0   :  { %v3942_v38 = vadd.f32 %v10114_v45, %v3557_v60  ;;  %v9423_v25 = vpop.permute.xlu1 %6773  ;;  %v9435_v13 = vpop.f32.mrb[94].mxu0  ;;  %v3075_v15 = vsel %vm563_vm0, %v1024_v59, %v6730_v63  ;;  %v2881_v45 = vsel %vm563_vm0, %v768_v30, %v6731_v62  ;;  %v1025_v63 = vld [vmem:[#allocation2 + $0x2c1] sm:$0xff]  ;;  %v6766_v62 = vunpack.i.h.bf16 %v9398_v41 }
 0x2c1   :  { %v9429_v5 = vpop.permute.xlu0 %6778  ;;  %v3561_v47 = vpop.f32.mrb[50].mxu1  ;;  %3760 = vmatmul.mubr.f32.gmra.mrb[130].mxu1 %v3008_v56  ;;  %v3139_v16 = vsel %vm2893_vm3, %v3075_v15, %v6735_v17  ;;  %v6750_v56 = vunpack.i.l.bf16 %v9366_v48  ;;  %v2946_v6 = vsel %vm2893_vm3, %v2881_v45, %v6736_v20  ;;  %v3076_v2 = vsel %vm563_vm0, %v1025_v63, %v6745_v32  ;;  %v1026_v20 = vld [vmem:[#allocation2 + $0x2d1] sm:$0xff] }
 0x2c2   :  { %v4228_v3 = vmax.f32 %v3942_v38, 0.0  ;;  %v3562_v11 = vadd.f32 %v9413_v14, %v3561_v47  ;;  %v3563_v8 = vpop.f32.mrb[51].mxu1  ;;  %3764 = vmatprep.mubr.f32.mxu1 %v3201_v42  ;;  %v9441_v58 = vpop.f32.mrb[95].mxu0  ;;  %v6746_v38 = vunpack.i.h.bf16 %v9360_v29  ;;  %v6755_v47 = vunpack.i.l.bf16 %v9380_v1  ;;  %v770_v32 = vld [vmem:[#allocation2 + $0x2b8] sm:$0xff] }
 0x2c3   :  { %v3203_v29 = vsel %vm2958_vm4, %v3139_v16, %v6740_v54  ;;  %v6765_v17 = vunpack.i.l.bf16 %v9398_v41  ;;  %v3011_v8 = vsel %vm2958_vm4, %v2946_v6, %v6741_v44  ;;  %v3140_v27 = vsel %vm2893_vm3, %v3076_v2, %v6750_v56  ;;  %v10116_v44 = vld [vmem:[#allocation19_spill] sm:$0xff] }
 0x2c4   :  { %v3947_v7 = vadd.f32 %v10115_v0, %v3562_v11  ;;  %v9446_v60 = vpop.permute.xlu1 %6783  ;;  %5743 = vmatprep.mubr.msk.f32.mxu0 %vm563_vm0, %v4228_v3  ;;  %v6751_v3 = vunpack.i.h.bf16 %v9366_v48  ;;  %v6761_v11 = vunpack.i.h.bf16 %v9386_v34  ;;  %v2882_v33 = vsel %vm563_vm0, %v769_v10, %v6746_v38 }
 0x2c5   :  { %v9452_v51 = vpop.permute.xlu0 %6788  ;;  %3765 = vmatmul.mubr.f32.gmra.mrb[132].mxu1 %v3009_v28  ;;  %v6770_v0 = vunpack.i.l.bf16 %v9406_v50  ;;  %v6775_v48 = vunpack.i.l.bf16 %v9423_v25  ;;  %v3204_v21 = vsel %vm2958_vm4, %v3140_v27, %v6755_v47  ;;  %v3077_v1 = vsel %vm563_vm0, %v1026_v20, %v6760_v39  ;;  %v10117_v20 = vld [vmem:[#allocation18_spill] sm:$0xff] }
 0x2c6   :  { %v4229_v9 = vmax.f32 %v3947_v7, 0.0  ;;  %3769 = vmatprep.mubr.f32.mxu1 %v3202_v49  ;;  %v3141_v54 = vsel %vm2893_vm3, %v3077_v1, %v6765_v17  ;;  %v6771_v49 = vunpack.i.h.bf16 %v9406_v50  ;;  %v6776_v15 = vunpack.i.h.bf16 %v9423_v25 }
 0x2c7   :  { %v2883_v16 = vsel %vm563_vm0, %v770_v32, %v6761_v11  ;;  %v6780_v30 = vunpack.i.l.bf16 %v9429_v5  ;;  %v6785_v6 = vunpack.i.l.bf16 %v9446_v60  ;;  %v6790_v50 = vunpack.i.l.bf16 %v9452_v51  ;;  %v771_v11 = vld [vmem:[#allocation2 + $0x2c0] sm:$0xff] }
 0x2c8   :  { %v9462_v52 = vpop.permute.xlu1 %6793  ;;  %5744 = vmatmul.mubr.msk.f32.gmra.mrb[104].mxu0 %vm563_vm0, %v4229_v9  ;;  %v2947_v9 = vsel %vm2893_vm3, %v2882_v33, %v6751_v3  ;;  %v2948_v56 = vsel %vm2893_vm3, %v2883_v16, %v6766_v62  ;;  %v3205_v47 = vsel %vm2958_vm4, %v3141_v54, %v6770_v0  ;;  %v6791_v10 = vunpack.i.h.bf16 %v9452_v51  ;;  %v772_v54 = vld [vmem:[#allocation2 + $0x2d0] sm:$0xff] }
 0x2c9   :  { %v9469_v42 = vpop.permute.xlu0 %6798  ;;  %3770 = vmatmul.mubr.f32.gmra.mrb[134].mxu1 %v3010_v46  ;;  %v3012_v38 = vsel %vm2958_vm4, %v2947_v9, %v6756_v22  ;;  %v1027_v46 = vld [vmem:[#allocation2 + $0x2d9] sm:$0xff]  ;;  %v3013_v22 = vsel %vm2958_vm4, %v2948_v56, %v6771_v49  ;;  %v2884_v62 = vsel %vm563_vm0, %v771_v11, %v6776_v15  ;;  %v6786_v27 = vunpack.i.h.bf16 %v9446_v60 }
 0x2ca   :  { %3774 = vmatprep.mubr.f32.mxu1 %v3203_v29  ;;  %v3078_v39 = vsel %vm563_vm0, %v1027_v46, %v6775_v48  ;;  %v6795_v29 = vunpack.i.l.bf16 %v9462_v52  ;;  %v6796_v33 = vunpack.i.h.bf16 %v9462_v52  ;;  %v2885_v15 = vsel %vm563_vm0, %v772_v54, %v6791_v10  ;;  %v10118_v10 = vld [vmem:[#allocation21_spill] sm:$0xff] }
 0x2cb   :  { %v6801_v9 = vunpack.i.h.bf16 %v9469_v42 }
 0x2cc   :  { %v9479_v28 = vpop.permute.xlu1 %6803 }
 0x2cd   :  { %v9485_v7 = vpop.permute.xlu0 %6808  ;;  %v3566_v34 = vpop.f32.mrb[52].mxu1  ;;  %3775 = vmatmul.mubr.f32.gmra.mrb[136].mxu1 %v3011_v8  ;;  %v6781_v8 = vunpack.i.h.bf16 %v9429_v5  ;;  %v6800_v5 = vunpack.i.l.bf16 %v9469_v42  ;;  %v6805_v51 = vunpack.i.l.bf16 %v9479_v28  ;;  %v6806_v32 = vunpack.i.h.bf16 %v9479_v28 }
 0x2ce   :  { %v3567_v41 = vadd.f32 %v9413_v14, %v3566_v34  ;;  %v3568_v59 = vpop.f32.mrb[53].mxu1  ;;  %3779 = vmatprep.mubr.f32.mxu1 %v3204_v21  ;;  %v3142_v34 = vsel %vm2893_vm3, %v3078_v39, %v6780_v30  ;;  %v1028_v21 = vld [vmem:[#allocation2 + $0x2e9] sm:$0xff]  ;;  %v6810_v16 = vunpack.i.l.bf16 %v9485_v7 }
 0x2cf   :  { %v3206_v60 = vsel %vm2958_vm4, %v3142_v34, %v6785_v6  ;;  %v3079_v52 = vsel %vm563_vm0, %v1028_v21, %v6790_v50  ;;  %v2949_v49 = vsel %vm2893_vm3, %v2884_v62, %v6781_v8 }
 0x2d0   :  { %v3952_v4 = vadd.f32 %v10116_v44, %v3567_v41  ;;  %v9497_v45 = vpop.permute.xlu1 %6813  ;;  %v3143_v59 = vsel %vm2893_vm3, %v3079_v52, %v6795_v29  ;;  %v3014_v44 = vsel %vm2958_vm4, %v2949_v49, %v6786_v27 }
 0x2d1   :  { %v9503_v25 = vpop.permute.xlu0 %6818  ;;  %v3571_v63 = vpop.f32.mrb[54].mxu1  ;;  %3780 = vmatmul.mubr.f32.gmra.mrb[138].mxu1 %v3012_v38  ;;  %v1029_v38 = vld [vmem:[#allocation2 + $0x2f1] sm:$0xff]  ;;  %v6815_v56 = vunpack.i.l.bf16 %v9497_v45  ;;  %v3207_v42 = vsel %vm2958_vm4, %v3143_v59, %v6800_v5 }
 0x2d2   :  { %v4230_v2 = vmax.f32 %v3952_v4, 0.0  ;;  %v3572_v17 = vadd.f32 %v9413_v14, %v3571_v63  ;;  %v3573_v3 = vpop.f32.mrb[55].mxu1  ;;  %3784 = vmatprep.mubr.f32.mxu1 %v3205_v47  ;;  %v2950_v4 = vsel %vm2893_vm3, %v2885_v15, %v6796_v33  ;;  %v6820_v28 = vunpack.i.l.bf16 %v9503_v25  ;;  %v1030_v33 = vld [vmem:[#allocation2 + $0x301] sm:$0xff] }
 0x2d3   :  { %v3080_v50 = vsel %vm563_vm0, %v1029_v38, %v6805_v51  ;;  %v6811_v63 = vunpack.i.h.bf16 %v9485_v7  ;;  %v6821_v3 = vunpack.i.h.bf16 %v9503_v25  ;;  %v3015_v7 = vsel %vm2958_vm4, %v2950_v4, %v6801_v9  ;;  %v10119_v9 = vld [vmem:[#allocation20_spill] sm:$0xff] }
 0x2d4   :  { %v3957_v0 = vadd.f32 %v10117_v20, %v3572_v17  ;;  %v9516_v48 = vpop.permute.xlu1 %6823  ;;  %5746 = vmatprep.mubr.msk.f32.mxu0 %vm563_vm0, %v4230_v2  ;;  %v773_v2 = vld [vmem:[#allocation2 + $0x2d8] sm:$0xff]  ;;  %v6816_v17 = vunpack.i.h.bf16 %v9497_v45  ;;  %v3144_v27 = vsel %vm2893_vm3, %v3080_v50, %v6810_v16  ;;  %v1031_v38 = vld [vmem:[#allocation2 + $0x309] sm:$0xff] }
 0x2d5   :  { %v9522_v1 = vpop.permute.xlu0 %6828  ;;  %3785 = vmatmul.mubr.f32.gmra.mrb[140].mxu1 %v3013_v22  ;;  %v6825_v47 = vunpack.i.l.bf16 %v9516_v48  ;;  %v2886_v11 = vsel %vm563_vm0, %v773_v2, %v6806_v32  ;;  %v6826_v8 = vunpack.i.h.bf16 %v9516_v48  ;;  %v3208_v25 = vsel %vm2958_vm4, %v3144_v27, %v6815_v56 }
 0x2d6   :  { %v4231_v41 = vmax.f32 %v3957_v0, 0.0  ;;  %3789 = vmatprep.mubr.f32.mxu1 %v3206_v60  ;;  %v6830_v20 = vunpack.i.l.bf16 %v9522_v1  ;;  %v3081_v48 = vsel %vm563_vm0, %v1030_v33, %v6820_v28  ;;  %v2951_v60 = vsel %vm2893_vm3, %v2886_v11, %v6811_v63 }
 0x2d7   :  { %v3145_v52 = vsel %vm2893_vm3, %v3081_v48, %v6825_v47  ;;  %v6831_v59 = vunpack.i.h.bf16 %v9522_v1  ;;  %v3016_v54 = vsel %vm2958_vm4, %v2951_v60, %v6816_v17  ;;  %v10120_v60 = vld [vmem:[#allocation23_spill] sm:$0xff] }
 0x2d8   :  { %v9532_v30 = vpop.permute.xlu1 %6833  ;;  %5747 = vmatmul.mubr.msk.f32.gmra.mrb[106].mxu0 %vm563_vm0, %v4231_v41  ;;  %v774_v41 = vld [vmem:[#allocation2 + $0x2e8] sm:$0xff] }
 0x2d9   :  { %v9539_v46 = vpop.permute.xlu0 %6838  ;;  %v3576_v6 = vpop.f32.mrb[56].mxu1  ;;  %3790 = vmatmul.mubr.f32.gmra.mrb[142].mxu1 %v3014_v44  ;;  %v6835_v0 = vunpack.i.l.bf16 %v9532_v30  ;;  %v2887_v32 = vsel %vm563_vm0, %v774_v41, %v6821_v3  ;;  %v6836_v49 = vunpack.i.h.bf16 %v9532_v30 }
 0x2da   :  { %v3577_v39 = vadd.f32 %v9413_v14, %v3576_v6  ;;  %v3578_v29 = vpop.f32.mrb[57].mxu1  ;;  %3794 = vmatprep.mubr.f32.mxu1 %v3207_v42  ;;  %v6840_v15 = vunpack.i.l.bf16 %v9539_v46  ;;  %v2952_v4 = vsel %vm2893_vm3, %v2887_v32, %v6826_v8  ;;  %v3209_v6 = vsel %vm2958_vm4, %v3145_v52, %v6830_v20  ;;  %v1033_v32 = vld [vmem:[#allocation2 + $0x321] sm:$0xff] }
 0x2db   :  { %v3082_v42 = vsel %vm563_vm0, %v1031_v38, %v6835_v0  ;;  %v6841_v63 = vunpack.i.h.bf16 %v9539_v46  ;;  %v775_v29 = vld [vmem:[#allocation2 + $0x2f0] sm:$0xff] }
 0x2dc   :  { %v3962_v22 = vadd.f32 %v10118_v10, %v3577_v39  ;;  %v9551_v62 = vpop.permute.xlu1 %6843  ;;  %v3017_v39 = vsel %vm2958_vm4, %v2952_v4, %v6831_v59  ;;  %v3146_v11 = vsel %vm2893_vm3, %v3082_v42, %v6840_v15  ;;  %v2888_v8 = vsel %vm563_vm0, %v775_v29, %v6836_v49  ;;  %v1032_v10 = vld [vmem:[#allocation2 + $0x319] sm:$0xff] }
 0x2dd   :  { %v6849_v45 = vpop.permute.xlu0 %6848  ;;  %v3581_v34 = vpop.f32.mrb[58].mxu1  ;;  %3795 = vmatmul.mubr.f32.gmra.mrb[144].mxu1 %v3015_v7  ;;  %v6845_v56 = vunpack.i.l.bf16 %v9551_v62  ;;  %v6846_v2 = vunpack.i.h.bf16 %v9551_v62 }
 0x2de   :  { %v4232_v21 = vmax.f32 %v3962_v22, 0.0  ;;  %v3582_v5 = vadd.f32 %v9413_v14, %v3581_v34  ;;  %v3583_v51 = vpop.f32.mrb[59].mxu1  ;;  %3799 = vmatprep.mubr.f32.mxu1 %v3208_v25  ;;  %v6850_v28 = vunpack.i.l.bf16 %v6849_v45  ;;  %v6851_v47 = vunpack.i.h.bf16 %v6849_v45  ;;  %v776_v34 = vld [vmem:[#allocation2 + $0x300] sm:$0xff] }
 0x2df   :  { %v3210_v46 = vsel %vm2958_vm4, %v3146_v11, %v6845_v56 }
 0x2e0   :  { %v3967_v16 = vadd.f32 %v10119_v9, %v3582_v5  ;;  %v6854_v44 = vpop.permute.xlu1 %6853  ;;  %5749 = vmatprep.mubr.msk.f32.mxu0 %vm563_vm0, %v4232_v21  ;;  %v3083_v20 = vsel %vm563_vm0, %v1032_v10, %v6850_v28  ;;  %v2953_v21 = vsel %vm2893_vm3, %v2888_v8, %v6841_v63  ;;  %v2889_v5 = vsel %vm563_vm0, %v776_v34, %v6851_v47  ;;  %v10121_v47 = vld [vmem:[#allocation22_spill] sm:$0xff]  ;;  %v1034_v10 = vld [vmem:[#allocation2 + $0x331] sm:$0xff] }
 0x2e1   :  { %v6859_v1 = vpop.permute.xlu0 %6858  ;;  %3800 = vmatmul.mubr.f32.gmra.mrb[146].mxu1 %v3016_v54  ;;  %v6855_v50 = vunpack.i.l.bf16 %v6854_v44  ;;  %v6856_v17 = vunpack.i.h.bf16 %v6854_v44  ;;  %v3018_v59 = vsel %vm2958_vm4, %v2953_v21, %v6846_v2 }
 0x2e2   :  { %v4233_v30 = vmax.f32 %v3967_v16, 0.0  ;;  %3804 = vmatprep.mubr.f32.mxu1 %v3209_v6  ;;  %v6860_v22 = vunpack.i.l.bf16 %v6859_v1  ;;  %v6861_v25 = vunpack.i.h.bf16 %v6859_v1  ;;  %v777_v1 = vld [vmem:[#allocation2 + $0x308] sm:$0xff] }
 0x2e3   :  { %v3147_v45 = vsel %vm2893_vm3, %v3083_v20, %v6855_v50  ;;  %v2954_v54 = vsel %vm2893_vm3, %v2889_v5, %v6856_v17  ;;  %v778_v20 = vld [vmem:[#allocation2 + $0x318] sm:$0xff] }
 0x2e4   :  { %v6864_v3 = vpop.permute.xlu1 %6863  ;;  %5750 = vmatmul.mubr.msk.f32.gmra.mrb[108].mxu0 %vm563_vm0, %v4233_v30  ;;  %v3211_v16 = vsel %vm2958_vm4, %v3147_v45, %v6860_v22  ;;  %v3019_v42 = vsel %vm2958_vm4, %v2954_v54, %v6861_v25 }
 0x2e5   :  { %v6865_v7 = vunpack.i.l.bf16 %v6864_v3  ;;  %v6869_v27 = vpop.permute.xlu0 %6868  ;;  %v3586_v33 = vpop.f32.mrb[60].mxu1  ;;  %3805 = vmatmul.mubr.f32.gmra.mrb[148].mxu1 %v3017_v39  ;;  %v6866_v48 = vunpack.i.h.bf16 %v6864_v3 }
 0x2e6   :  { %v3587_v62 = vadd.f32 %v9413_v14, %v3586_v33  ;;  %v3588_v0 = vpop.f32.mrb[61].mxu1  ;;  %3809 = vmatprep.mubr.f32.mxu1 %v3210_v46  ;;  %v6870_v51 = vunpack.i.l.bf16 %v6869_v27  ;;  %v6871_v6 = vunpack.i.h.bf16 %v6869_v27 }
 0x2e7   :  { %v3084_v44 = vsel %vm563_vm0, %v1033_v32, %v6865_v7  ;;  %v2890_v30 = vsel %vm563_vm0, %v777_v1, %v6866_v48  ;;  %v1035_v32 = vld [vmem:[#allocation2 + $0x339] sm:$0xff] }
 0x2e8   :  { %v3972_v52 = vadd.f32 %v10120_v60, %v3587_v62  ;;  %v6874_v41 = vpop.permute.xlu1 %6873  ;;  %v3148_v2 = vsel %vm2893_vm3, %v3084_v44, %v6870_v51  ;;  %v2955_v33 = vsel %vm2893_vm3, %v2890_v30, %v6871_v6 }
 0x2e9   :  { %v6875_v49 = vunpack.i.l.bf16 %v6874_v41  ;;  %v6879_v15 = vpop.permute.xlu0 %6878  ;;  %v3591_v9 = vpop.f32.mrb[62].mxu1  ;;  %3810 = vmatmul.mubr.f32.gmra.mrb[150].mxu1 %v3018_v59  ;;  %v6876_v50 = vunpack.i.h.bf16 %v6874_v41 }
 0x2ea   :  { %v4234_v4 = vmax.f32 %v3972_v52, 0.0  ;;  %v6880_v38 = vunpack.i.l.bf16 %v6879_v15  ;;  %v3592_v56 = vadd.f32 %v9413_v14, %v3591_v9  ;;  %v3593_v28 = vpop.f32.mrb[63].mxu1  ;;  %3814 = vmatprep.mubr.f32.mxu1 %v3211_v16  ;;  %v6881_v63 = vunpack.i.h.bf16 %v6879_v15  ;;  %v10122_v16 = vld [vmem:[#allocation25_spill] sm:$0xff] }
 0x2eb   :  { %v3212_v8 = vsel %vm2958_vm4, %v3148_v2, %v6875_v49  ;;  %v3020_v45 = vsel %vm2958_vm4, %v2955_v33, %v6876_v50  ;;  %v779_v49 = vld [vmem:[#allocation2 + $0x320] sm:$0xff] }
 0x2ec   :  { %v3977_v39 = vadd.f32 %v10121_v47, %v3592_v56  ;;  %v6884_v29 = vpop.permute.xlu1 %6883  ;;  %5752 = vmatprep.mubr.msk.f32.mxu0 %vm563_vm0, %v4234_v4  ;;  %v3085_v27 = vsel %vm563_vm0, %v1034_v10, %v6880_v38  ;;  %v2891_v25 = vsel %vm563_vm0, %v778_v20, %v6881_v63  ;;  %v10124_v10 = vld [vmem:[#allocation27_spill] sm:$0xff]  ;;  %v10125_v20 = vld [vmem:[#allocation26_spill] sm:$0xff] }
 0x2ed   :  { %v6886_v17 = vunpack.i.h.bf16 %v6884_v29  ;;  %v6885_v3 = vunpack.i.l.bf16 %v6884_v29  ;;  %v6889_v11 = vpop.permute.xlu0 %6888  ;;  %3815 = vmatmul.mubr.f32.gmra.mrb[152].mxu1 %v3019_v42  ;;  %v10123_v29 = vld [vmem:[#allocation24_spill] sm:$0xff] }
 0x2ee   :  { %v4235_v22 = vmax.f32 %v3977_v39, 0.0  ;;  %v6890_v7 = vunpack.i.l.bf16 %v6889_v11  ;;  %3819 = vmatprep.mubr.f32.mxu1 %v3212_v8  ;;  %v6891_v62 = vunpack.i.h.bf16 %v6889_v11 }
 0x2ef   :  { %v3149_v46 = vsel %vm2893_vm3, %v3085_v27, %v6885_v3  ;;  %v2956_v60 = vsel %vm2893_vm3, %v2891_v25, %v6886_v17 }
 0x2f0   :  { %v6894_v0 = vpop.permute.xlu1 %6893  ;;  %5753 = vmatmul.mubr.msk.f32.gmra.mrb[110].mxu0 %vm563_vm0, %v4235_v22  ;;  %v3213_v34 = vsel %vm2958_vm4, %v3149_v46, %v6890_v7  ;;  %v3021_v38 = vsel %vm2958_vm4, %v2956_v60, %v6891_v62 }
 0x2f1   :  { %v6896_v48 = vunpack.i.h.bf16 %v6894_v0  ;;  %v6895_v21 = vunpack.i.l.bf16 %v6894_v0  ;;  %v6899_v5 = vpop.permute.xlu0 %6898  ;;  %v3596_v51 = vpop.f32.mrb[64].mxu1  ;;  %3820 = vmatmul.mubr.f32.gmra.mrb[154].mxu1 %v3020_v45 }
 0x2f2   :  { %v6901_v52 = vunpack.i.h.bf16 %v6899_v5  ;;  %v6900_v41 = vunpack.i.l.bf16 %v6899_v5  ;;  %v3597_v59 = vadd.f32 %v9413_v14, %v3596_v51  ;;  %v3598_v54 = vpop.f32.mrb[65].mxu1  ;;  %3824 = vmatprep.mubr.f32.mxu1 %v3213_v34 }
 0x2f3   :  { %v3086_v15 = vsel %vm563_vm0, %v1035_v32, %v6895_v21  ;;  %v2892_v9 = vsel %vm563_vm0, %v779_v49, %v6896_v48  ;;  %v10126_v48 = vld [vmem:[#allocation29_spill] sm:$0xff] }
 0x2f4   :  { %v3982_v44 = vadd.f32 %v10122_v16, %v3597_v59  ;;  %v6904_v4 = vpop.permute.xlu1 %6903  ;;  %v3150_v50 = vsel %vm2893_vm3, %v3086_v15, %v6900_v41  ;;  %v2957_v63 = vsel %vm2893_vm3, %v2892_v9, %v6901_v52  ;;  %v10127_v41 = vld [vmem:[#allocation28_spill] sm:$0xff]  ;;  %v10128_v9 = vld [vmem:[#allocation31_spill] sm:$0xff] }
 0x2f5   :  { %v6906_v56 = vunpack.i.h.bf16 %v6904_v4  ;;  %v6905_v28 = vunpack.i.l.bf16 %v6904_v4  ;;  %v3601_v1 = vpop.f32.mrb[66].mxu1  ;;  %3825 = vmatmul.mubr.f32.gmra.mrb[156].mxu1 %v3021_v38 }
 0x2f6   :  { %v4236_v6 = vmax.f32 %v3982_v44, 0.0  ;;  %v3602_v42 = vadd.f32 %v9413_v14, %v3601_v1  ;;  %v3603_v30 = vpop.f32.mrb[67].mxu1 }
 0x2f7   :  { %v3214_v47 = vsel %vm2958_vm4, %v3150_v50, %v6905_v28  ;;  %v3022_v39 = vsel %vm2958_vm4, %v2957_v63, %v6906_v56  ;;  %v10129_v28 = vld [vmem:[#allocation30_spill] sm:$0xff]  ;;  %v10130_v63 = vld [vmem:[#allocation33_spill] sm:$0xff] }
 0x2f8   :  { %v3987_v2 = vadd.f32 %v10123_v29, %v3602_v42  ;;  %3829 = vmatprep.mubr.f32.mxu1 %v3214_v47  ;;  %5755 = vmatprep.mubr.msk.f32.mxu0 %vm563_vm0, %v4236_v6 }
 0x2f9   :  { %3830 = vmatmul.mubr.f32.gmra.mrb[158].mxu1 %v3022_v39 }
 0x2fa   :  { %v4237_v17 = vmax.f32 %v3987_v2, 0.0 }
 0x2fc   :  { %5756 = vmatmul.mubr.msk.f32.gmra.mrb[112].mxu0 %vm563_vm0, %v4237_v17 }
 0x2fd   :  { %v3606_v3 = vpop.f32.mrb[68].mxu1 }
 0x2fe   :  { %v3607_v11 = vadd.f32 %v9413_v14, %v3606_v3  ;;  %v3608_v8 = vpop.f32.mrb[69].mxu1  ;;  %v10131_v3 = vld [vmem:[#allocation32_spill] sm:$0xff] }
 0x300   :  { %v3992_v22 = vadd.f32 %v10124_v10, %v3607_v11 }
 0x301   :  { %v3611_v7 = vpop.f32.mrb[70].mxu1 }
 0x302   :  { %v4238_v27 = vmax.f32 %v3992_v22, 0.0  ;;  %v3612_v33 = vadd.f32 %v9413_v14, %v3611_v7  ;;  %v3613_v46 = vpop.f32.mrb[71].mxu1 }
 0x304   :  { %v3997_v62 = vadd.f32 %v10125_v20, %v3612_v33  ;;  %5758 = vmatprep.mubr.msk.f32.mxu0 %vm563_vm0, %v4238_v27  ;;  %v10132_v27 = vld [vmem:[#allocation35_spill] sm:$0xff] }
 0x306   :  { %v4239_v0 = vmax.f32 %v3997_v62, 0.0 }
 0x308   :  { %5759 = vmatmul.mubr.msk.f32.gmra.mrb[114].mxu0 %vm563_vm0, %v4239_v0 }
 0x309   :  { %v3616_v45 = vpop.f32.mrb[72].mxu1 }
 0x30a   :  { %v3617_v34 = vadd.f32 %v9413_v14, %v3616_v45  ;;  %v3618_v25 = vpop.f32.mrb[73].mxu1  ;;  %v10133_v45 = vld [vmem:[#allocation34_spill] sm:$0xff] }
 0x30c   :  { %v4002_v21 = vadd.f32 %v10126_v48, %v3617_v34 }
 0x30d   :  { %v3621_v5 = vpop.f32.mrb[74].mxu1 }
 0x30e   :  { %v4240_v51 = vmax.f32 %v4002_v21, 0.0  ;;  %v3622_v60 = vadd.f32 %v9413_v14, %v3621_v5  ;;  %v3623_v52 = vpop.f32.mrb[75].mxu1  ;;  %v9651_v21 = vld [vmem:[%s10045_s6] ss:$0 sm:$0xff] }
 0x30f   :  { %v4873_v52 = vld [vmem:[%s10039_s0 + $0x8] sm:$0xff] }
 0x310   :  { %v4007_v59 = vadd.f32 %v10127_v41, %v3622_v60  ;;  %5761 = vmatprep.mubr.msk.f32.mxu0 %vm563_vm0, %v4240_v51  ;;  %v10134_v41 = vld [vmem:[#allocation37_spill] sm:$0xff] }
 0x312   :  { %v4241_v54 = vmax.f32 %v4007_v59, 0.0 }
 0x314   :  { %5762 = vmatmul.mubr.msk.f32.gmra.mrb[116].mxu0 %vm563_vm0, %v4241_v54 }
 0x315   :  { %v3626_v32 = vpop.f32.mrb[76].mxu1 }
 0x316   :  { %v3627_v49 = vadd.f32 %v9413_v14, %v3626_v32  ;;  %v3628_v15 = vpop.f32.mrb[77].mxu1 }
 0x318   :  { %v4012_v16 = vadd.f32 %v10128_v9, %v3627_v49  ;;  %v4872_v49 = vld [vmem:[%s10039_s0] sm:$0xff] }
 0x319   :  { %v3631_v44 = vpop.f32.mrb[78].mxu1 }
 0x31a   :  { %v4242_v4 = vmax.f32 %v4012_v16, 0.0  ;;  %v3632_v38 = vadd.f32 %v9413_v14, %v3631_v44  ;;  %v3633_v56 = vpop.f32.mrb[79].mxu1 }
 0x31c   :  { %v4017_v1 = vadd.f32 %v10129_v28, %v3632_v38  ;;  %5764 = vmatprep.mubr.msk.f32.mxu0 %vm563_vm0, %v4242_v4 }
 0x31e   :  { %v4243_v6 = vmax.f32 %v4017_v1, 0.0  ;;  %v10135_v1 = vld [vmem:[#allocation36_spill] sm:$0xff] }
 0x320   :  { %5765 = vmatmul.mubr.msk.f32.gmra.mrb[118].mxu0 %vm563_vm0, %v4243_v6 }
 0x321   :  { %v3636_v42 = vpop.f32.mrb[80].mxu1 }
 0x322   :  { %v3637_v30 = vadd.f32 %v9413_v14, %v3636_v42  ;;  %v3638_v50 = vpop.f32.mrb[81].mxu1 }
 0x324   :  { %v4022_v47 = vadd.f32 %v10130_v63, %v3637_v30 }
 0x325   :  { %v3641_v39 = vpop.f32.mrb[82].mxu1 }
 0x326   :  { %v4244_v29 = vmax.f32 %v4022_v47, 0.0  ;;  %v3642_v2 = vadd.f32 %v9413_v14, %v3641_v39  ;;  %v3643_v17 = vpop.f32.mrb[83].mxu1  ;;  %v10136_v39 = vld [vmem:[#allocation39_spill] sm:$0xff] }
 0x328   :  { %v4027_v11 = vadd.f32 %v10131_v3, %v3642_v2  ;;  %5767 = vmatprep.mubr.msk.f32.mxu0 %vm563_vm0, %v4244_v29 }
 0x32a   :  { %v4245_v8 = vmax.f32 %v4027_v11, 0.0 }
 0x32c   :  { %5768 = vmatmul.mubr.msk.f32.gmra.mrb[120].mxu0 %vm563_vm0, %v4245_v8  ;;  %v10137_v8 = vld [vmem:[#allocation38_spill] sm:$0xff] }
 0x32d   :  { %v3646_v10 = vpop.f32.mrb[84].mxu1 }
 0x32e   :  { %v3647_v22 = vadd.f32 %v9413_v14, %v3646_v10  ;;  %v3648_v7 = vpop.f32.mrb[85].mxu1 }
 0x330   :  { %v4032_v33 = vadd.f32 %v10132_v27, %v3647_v22 }
 0x331   :  { %v3651_v46 = vpop.f32.mrb[86].mxu1 }
 0x332   :  { %v4246_v20 = vmax.f32 %v4032_v33, 0.0  ;;  %v3652_v62 = vadd.f32 %v9413_v14, %v3651_v46  ;;  %v3653_v0 = vpop.f32.mrb[87].mxu1  ;;  %v10138_v46 = vld [vmem:[#allocation41_spill] sm:$0xff] }
 0x334   :  { %v4037_v34 = vadd.f32 %v10133_v45, %v3652_v62  ;;  %5770 = vmatprep.mubr.msk.f32.mxu0 %vm563_vm0, %v4246_v20 }
 0x336   :  { %v4247_v25 = vmax.f32 %v4037_v34, 0.0 }
 0x338   :  { %5771 = vmatmul.mubr.msk.f32.gmra.mrb[122].mxu0 %vm563_vm0, %v4247_v25  ;;  %v10139_v25 = vld [vmem:[#allocation40_spill] sm:$0xff] }
 0x33d   :  { %v3656_v48 = vpop.f32.mrb[88].mxu1 }
 0x33e   :  { %v3657_v5 = vadd.f32 %v9413_v14, %v3656_v48  ;;  %v3658_v51 = vpop.f32.mrb[89].mxu1 }
 0x33f   :  { %v5733_v60 = vpop.f32.mrb[96].mxu0 }
 0x340   :  { %v4042_v59 = vadd.f32 %v10134_v41, %v3657_v5  ;;  %v4559_v54 = vadd.f32 %v5733_v60, %v9651_v21  ;;  %v4553_v32 = vpop.f32.mrb[97].mxu0  ;;  %v10140_v41 = vld [vmem:[#allocation43_spill] sm:$0xff] }
 0x341   :  { %v4554_v15 = vadd.f32 %v9651_v21, %v4553_v32  ;;  %v3661_v9 = vpop.f32.mrb[90].mxu1 }
 0x342   :  { %v4248_v16 = vmax.f32 %v4042_v59, 0.0  ;;  %v4937_v44 = vadd.f32 %v4873_v52, %v4559_v54  ;;  %v3662_v4 = vadd.f32 %v9413_v14, %v3661_v9  ;;  %v3663_v38 = vpop.f32.mrb[91].mxu1 }
 0x343   :  { %v4936_v56 = vadd.f32 %v4872_v49, %v4554_v15 }
 0x344   :  { %v5001_v28 = vmax.f32 %v4937_v44, 0.0  ;;  %v4047_v6 = vadd.f32 %v10135_v1, %v3662_v4  ;;  %5773 = vmatprep.mubr.msk.f32.mxu0 %vm563_vm0, %v4248_v16  ;;  %v4875_v16 = vld [vmem:[%s10039_s0 + $0x18] sm:$0xff]  ;;  %v10141_v44 = vld [vmem:[#allocation42_spill] sm:$0xff] }
 0x345   :  { %v5000_v42 = vmax.f32 %v4936_v56, 0.0  ;;  %v3666_v30 = vpop.f32.mrb[92].mxu1 }
 0x346   :  { %5065 = vst [vmem:[#allocation3 + $0x8] sm:$0xff] %v5001_v28  ;;  %v4249_v50 = vmax.f32 %v4047_v6, 0.0  ;;  %v3667_v63 = vadd.f32 %v9413_v14, %v3666_v30  ;;  %v3668_v47 = vpop.f32.mrb[93].mxu1  ;;  %v4874_v28 = vld [vmem:[%s10039_s0 + $0x10] sm:$0xff] }
 0x347   :  { %5064 = vst [vmem:[#allocation3] sm:$0xff] %v5000_v42 }
 0x348   :  { %v4052_v29 = vadd.f32 %v10136_v39, %v3667_v63  ;;  %5774 = vmatmul.mubr.msk.f32.gmra.mrb[124].mxu0 %vm563_vm0, %v4249_v50 }
 0x34a   :  { %v4250_v2 = vmax.f32 %v4052_v29, 0.0  ;;  %v10142_v29 = vld [vmem:[#allocation45_spill] sm:$0xff] }
 0x34c   :  { %v3671_v17 = vpop.f32.mrb[94].mxu1  ;;  %5776 = vmatprep.mubr.msk.f32.mxu0 %vm563_vm0, %v4250_v2 }
 0x34d   :  { %v3672_v3 = vadd.f32 %v9413_v14, %v3671_v17  ;;  %v3673_v11 = vpop.f32.mrb[95].mxu1 }
 0x34f   :  { %v4057_v10 = vadd.f32 %v10137_v8, %v3672_v3 }
 0x350   :  { %v3676_v22 = vpop.f32.mrb[96].mxu1 }
 0x351   :  { %v4251_v7 = vmax.f32 %v4057_v10, 0.0  ;;  %v3677_v27 = vadd.f32 %v9413_v14, %v3676_v22  ;;  %v3678_v33 = vpop.f32.mrb[97].mxu1  ;;  %v10143_v22 = vld [vmem:[#allocation44_spill] sm:$0xff] }
 0x353   :  { %v4062_v20 = vadd.f32 %v10138_v46, %v3677_v27  ;;  %5777 = vmatmul.mubr.msk.f32.gmra.mrb[126].mxu0 %vm563_vm0, %v4251_v7 }
 0x354   :  { %v3681_v62 = vpop.f32.mrb[98].mxu1 }
 0x355   :  { %v4252_v0 = vmax.f32 %v4062_v20, 0.0  ;;  %v3682_v45 = vadd.f32 %v9413_v14, %v3681_v62  ;;  %v3683_v34 = vpop.f32.mrb[99].mxu1  ;;  %v10144_v62 = vld [vmem:[#allocation47_spill] sm:$0xff] }
 0x357   :  { %v4067_v48 = vadd.f32 %v10139_v25, %v3682_v45  ;;  %5779 = vmatprep.mubr.msk.f32.mxu0 %vm563_vm0, %v4252_v0 }
 0x358   :  { %v3686_v5 = vpop.f32.mrb[100].mxu1 }
 0x359   :  { %v4253_v51 = vmax.f32 %v4067_v48, 0.0  ;;  %v3687_v60 = vadd.f32 %v9413_v14, %v3686_v5  ;;  %v3688_v52 = vpop.f32.mrb[101].mxu1  ;;  %v10145_v5 = vld [vmem:[#allocation46_spill] sm:$0xff] }
 0x35a   :  { %v4877_v52 = vld [vmem:[%s10039_s0 + $0x28] sm:$0xff] }
 0x35b   :  { %v4072_v59 = vadd.f32 %v10140_v41, %v3687_v60  ;;  %5780 = vmatmul.mubr.msk.f32.gmra.mrb[128].mxu0 %vm563_vm0, %v4253_v51 }
 0x35c   :  { %v3691_v54 = vpop.f32.mrb[102].mxu1 }
 0x35d   :  { %v4254_v32 = vmax.f32 %v4072_v59, 0.0  ;;  %v3692_v49 = vadd.f32 %v9413_v14, %v3691_v54  ;;  %v3693_v15 = vpop.f32.mrb[103].mxu1 }
 0x35e   :  { %v5736_v9 = vpop.f32.mrb[98].mxu0 }
 0x35f   :  { %v4077_v4 = vadd.f32 %v10141_v44, %v3692_v49  ;;  %v4569_v38 = vadd.f32 %v5736_v9, %v9651_v21  ;;  %v4563_v56 = vpop.f32.mrb[99].mxu0  ;;  %5782 = vmatprep.mubr.msk.f32.mxu0 %vm563_vm0, %v4254_v32  ;;  %v4876_v32 = vld [vmem:[%s10039_s0 + $0x20] sm:$0xff] }
 0x360   :  { %v4564_v1 = vadd.f32 %v9651_v21, %v4563_v56  ;;  %v3696_v6 = vpop.f32.mrb[104].mxu1 }
 0x361   :  { %v4255_v42 = vmax.f32 %v4077_v4, 0.0  ;;  %v4939_v30 = vadd.f32 %v4875_v16, %v4569_v38  ;;  %v3697_v50 = vadd.f32 %v9413_v14, %v3696_v6  ;;  %v3698_v63 = vpop.f32.mrb[105].mxu1  ;;  %v10146_v4 = vld [vmem:[#allocation49_spill] sm:$0xff] }
 0x362   :  { %v4938_v47 = vadd.f32 %v4874_v28, %v4564_v1  ;;  %v10147_v63 = vld [vmem:[#allocation48_spill] sm:$0xff] }
 0x363   :  { %v5003_v39 = vmax.f32 %v4939_v30, 0.0  ;;  %v4082_v2 = vadd.f32 %v10142_v29, %v3697_v50  ;;  %5783 = vmatmul.mubr.msk.f32.gmra.mrb[130].mxu0 %vm563_vm0, %v4255_v42 }
 0x364   :  { %v5002_v17 = vmax.f32 %v4938_v47, 0.0  ;;  %v3701_v3 = vpop.f32.mrb[106].mxu1 }
 0x365   :  { %5067 = vst [vmem:[#allocation3 + $0x18] sm:$0xff] %v5003_v39  ;;  %v4256_v11 = vmax.f32 %v4082_v2, 0.0  ;;  %v3702_v8 = vadd.f32 %v9413_v14, %v3701_v3  ;;  %v3703_v10 = vpop.f32.mrb[107].mxu1  ;;  %v10148_v3 = vld [vmem:[#allocation51_spill] sm:$0xff] }
 0x366   :  { %5066 = vst [vmem:[#allocation3 + $0x10] sm:$0xff] %v5002_v17 }
 0x367   :  { %v4087_v7 = vadd.f32 %v10143_v22, %v3702_v8  ;;  %5785 = vmatprep.mubr.msk.f32.mxu0 %vm563_vm0, %v4256_v11 }
 0x368   :  { %v3706_v27 = vpop.f32.mrb[108].mxu1 }
 0x369   :  { %v4257_v33 = vmax.f32 %v4087_v7, 0.0  ;;  %v3707_v46 = vadd.f32 %v9413_v14, %v3706_v27  ;;  %v3708_v20 = vpop.f32.mrb[109].mxu1  ;;  %v10149_v27 = vld [vmem:[#allocation50_spill] sm:$0xff] }
 0x36b   :  { %v4092_v0 = vadd.f32 %v10144_v62, %v3707_v46  ;;  %5786 = vmatmul.mubr.msk.f32.gmra.mrb[132].mxu0 %vm563_vm0, %v4257_v33 }
 0x36c   :  { %v3711_v45 = vpop.f32.mrb[110].mxu1 }
 0x36d   :  { %v4258_v34 = vmax.f32 %v4092_v0, 0.0  ;;  %v3712_v25 = vadd.f32 %v9413_v14, %v3711_v45  ;;  %v3713_v48 = vpop.f32.mrb[111].mxu1  ;;  %v10150_v45 = vld [vmem:[#allocation54_spill] sm:$0xff] }
 0x36f   :  { %v4097_v51 = vadd.f32 %v10145_v5, %v3712_v25  ;;  %v5739_v60 = vpop.f32.mrb[100].mxu0  ;;  %5788 = vmatprep.mubr.msk.f32.mxu0 %vm563_vm0, %v4258_v34 }
 0x370   :  { %v4579_v41 = vadd.f32 %v5739_v60, %v9651_v21  ;;  %v3716_v59 = vpop.f32.mrb[112].mxu1  ;;  %v4573_v54 = vpop.f32.mrb[101].mxu0  ;;  %v10151_v60 = vld [vmem:[#allocation53_spill] sm:$0xff] }
 0x371   :  { %v4259_v49 = vmax.f32 %v4097_v51, 0.0  ;;  %v3717_v15 = vadd.f32 %v9413_v14, %v3716_v59  ;;  %v4574_v9 = vadd.f32 %v9651_v21, %v4573_v54  ;;  %v3718_v16 = vpop.f32.mrb[113].mxu1  ;;  %v9733_v54 = vld [vmem:[%s10043_s4] ss:$0 sm:$0xff] }
 0x372   :  { %v4941_v44 = vadd.f32 %v4877_v52, %v4579_v41 }
 0x373   :  { %v4102_v38 = vadd.f32 %v10146_v4, %v3717_v15  ;;  %v4940_v56 = vadd.f32 %v4876_v32, %v4574_v9  ;;  %5789 = vmatmul.mubr.msk.f32.gmra.mrb[134].mxu0 %vm563_vm0, %v4259_v49  ;;  %v4878_v4 = vld [vmem:[%s10039_s0 + $0x30] sm:$0xff] }
 0x374   :  { %v5005_v28 = vmax.f32 %v4941_v44, 0.0  ;;  %v3721_v1 = vpop.f32.mrb[114].mxu1 }
 0x375   :  { %v4260_v6 = vmax.f32 %v4102_v38, 0.0  ;;  %v5004_v42 = vmax.f32 %v4940_v56, 0.0  ;;  %v3722_v30 = vadd.f32 %v9413_v14, %v3721_v1  ;;  %v3723_v50 = vpop.f32.mrb[115].mxu1 }
 0x376   :  { %5069 = vst [vmem:[#allocation3 + $0x28] sm:$0xff] %v5005_v28 }
 0x377   :  { %5068 = vst [vmem:[#allocation3 + $0x20] sm:$0xff] %v5004_v42  ;;  %v4107_v47 = vadd.f32 %v10147_v63, %v3722_v30  ;;  %5791 = vmatprep.mubr.msk.f32.mxu0 %vm563_vm0, %v4260_v6 }
 0x378   :  { %v3726_v39 = vpop.f32.mrb[116].mxu1 }
 0x379   :  { %v4261_v29 = vmax.f32 %v4107_v47, 0.0  ;;  %v3727_v2 = vadd.f32 %v9413_v14, %v3726_v39  ;;  %v3728_v17 = vpop.f32.mrb[117].mxu1 }
 0x37b   :  { %v4112_v11 = vadd.f32 %v10148_v3, %v3727_v2  ;;  %5792 = vmatmul.mubr.msk.f32.gmra.mrb[136].mxu0 %vm563_vm0, %v4261_v29 }
 0x37c   :  { %v3731_v8 = vpop.f32.mrb[118].mxu1 }
 0x37d   :  { %v4262_v10 = vmax.f32 %v4112_v11, 0.0  ;;  %v3732_v22 = vadd.f32 %v9413_v14, %v3731_v8  ;;  %v3733_v7 = vpop.f32.mrb[119].mxu1 }
 0x37f   :  { %v4117_v33 = vadd.f32 %v10149_v27, %v3732_v22  ;;  %5794 = vmatprep.mubr.msk.f32.mxu0 %vm563_vm0, %v4262_v10 }
 0x380   :  { %v3736_v46 = vpop.f32.mrb[120].mxu1 }
 0x381   :  { %v4263_v20 = vmax.f32 %v4117_v33, 0.0  ;;  %v3737_v62 = vadd.f32 %v9413_v14, %v3736_v46  ;;  %v3738_v0 = vpop.f32.mrb[121].mxu1 }
 0x383   :  { %v4122_v34 = vadd.f32 %v10150_v45, %v3737_v62  ;;  %5795 = vmatmul.mubr.msk.f32.gmra.mrb[138].mxu0 %vm563_vm0, %v4263_v20  ;;  %v4880_v45 = vld [vmem:[%s10039_s0 + $0x40] sm:$0xff] }
 0x384   :  { %v3741_v25 = vpop.f32.mrb[122].mxu1 }
 0x385   :  { %v4264_v48 = vmax.f32 %v4122_v34, 0.0  ;;  %v3742_v5 = vadd.f32 %v9413_v14, %v3741_v25  ;;  %v3743_v51 = vpop.f32.mrb[123].mxu1  ;;  %v4879_v14 = vld [vmem:[%s10039_s0 + $0x38] sm:$0xff] }
 0x387   :  { %v4127_v52 = vadd.f32 %v10151_v60, %v3742_v5  ;;  %5797 = vmatprep.mubr.msk.f32.mxu0 %vm563_vm0, %v4264_v48 }
 0x388   :  { %v3746_v41 = vpop.f32.mrb[124].mxu1 }
 0x389   :  { %v4265_v59 = vmax.f32 %v4127_v52, 0.0  ;;  %v3747_v32 = vadd.f32 %v9733_v54, %v3746_v41  ;;  %v3748_v49 = vpop.f32.mrb[125].mxu1 }
 0x38a   :  { %v5742_v15 = vpop.f32.mrb[102].mxu0 }
 0x38b   :  { %v4132_v9 = vadd.f32 %v9026_v24, %v3747_v32  ;;  %v4589_v16 = vadd.f32 %v5742_v15, %v9651_v21  ;;  %v4583_v44 = vpop.f32.mrb[103].mxu0  ;;  %5798 = vmatmul.mubr.msk.f32.gmra.mrb[140].mxu0 %vm563_vm0, %v4265_v59 }
 0x38c   :  { %v4584_v38 = vadd.f32 %v9651_v21, %v4583_v44  ;;  %v3751_v56 = vpop.f32.mrb[126].mxu1 }
 0x38d   :  { %v4266_v28 = vmax.f32 %v4132_v9, 0.0  ;;  %v4943_v1 = vadd.f32 %v4879_v14, %v4589_v16  ;;  %v3752_v6 = vadd.f32 %v9733_v54, %v3751_v56  ;;  %v3753_v42 = vpop.f32.mrb[127].mxu1 }
 0x38e   :  { %v4942_v30 = vadd.f32 %v4878_v4, %v4584_v38 }
 0x38f   :  { %v5007_v50 = vmax.f32 %v4943_v1, 0.0  ;;  %v4137_v24 = vadd.f32 %v9008_v40, %v3752_v6  ;;  %5800 = vmatprep.mubr.msk.f32.mxu0 %vm563_vm0, %v4266_v28 }
 0x390   :  { %v5006_v63 = vmax.f32 %v4942_v30, 0.0  ;;  %v3756_v47 = vpop.f32.mrb[128].mxu1 }
 0x391   :  { %5071 = vst [vmem:[#allocation3 + $0x38] sm:$0xff] %v5007_v50  ;;  %v4267_v39 = vmax.f32 %v4137_v24, 0.0  ;;  %v3757_v29 = vadd.f32 %v9733_v54, %v3756_v47  ;;  %v3758_v2 = vpop.f32.mrb[129].mxu1  ;;  %v4882_v24 = vld [vmem:[%s10039_s0 + $0x50] sm:$0xff] }
 0x392   :  { %5070 = vst [vmem:[#allocation3 + $0x30] sm:$0xff] %v5006_v63 }
 0x393   :  { %v4142_v17 = vadd.f32 %v9095_v26, %v3757_v29  ;;  %5801 = vmatmul.mubr.msk.f32.gmra.mrb[142].mxu0 %vm563_vm0, %v4267_v39  ;;  %v4881_v26 = vld [vmem:[%s10039_s0 + $0x48] sm:$0xff] }
 0x394   :  { %v3761_v3 = vpop.f32.mrb[130].mxu1 }
 0x395   :  { %v4268_v11 = vmax.f32 %v4142_v17, 0.0  ;;  %v3762_v8 = vadd.f32 %v9733_v54, %v3761_v3  ;;  %v3763_v10 = vpop.f32.mrb[131].mxu1 }
 0x397   :  { %v4147_v40 = vadd.f32 %v9088_v18, %v3762_v8  ;;  %5803 = vmatprep.mubr.msk.f32.mxu0 %vm563_vm0, %v4268_v11 }
 0x398   :  { %v3766_v22 = vpop.f32.mrb[132].mxu1 }
 0x399   :  { %v4269_v7 = vmax.f32 %v4147_v40, 0.0  ;;  %v3767_v27 = vadd.f32 %v9733_v54, %v3766_v22  ;;  %v3768_v33 = vpop.f32.mrb[133].mxu1 }
 0x39b   :  { %v4152_v46 = vadd.f32 %v9155_v57, %v3767_v27  ;;  %v5745_v20 = vpop.f32.mrb[104].mxu0  ;;  %5804 = vmatmul.mubr.msk.f32.gmra.mrb[144].mxu0 %vm563_vm0, %v4269_v7 }
 0x39c   :  { %v4599_v62 = vadd.f32 %v5745_v20, %v9651_v21  ;;  %v3771_v0 = vpop.f32.mrb[134].mxu1  ;;  %v4593_v18 = vpop.f32.mrb[105].mxu0 }
 0x39d   :  { %v4270_v34 = vmax.f32 %v4152_v46, 0.0  ;;  %v3772_v25 = vadd.f32 %v9733_v54, %v3771_v0  ;;  %v4594_v57 = vadd.f32 %v9651_v21, %v4593_v18  ;;  %v3773_v48 = vpop.f32.mrb[135].mxu1 }
 0x39e   :  { %v4945_v5 = vadd.f32 %v4881_v26, %v4599_v62  ;;  %v4885_v62 = vld [vmem:[%s10039_s0 + $0x68] sm:$0xff] }
 0x39f   :  { %v4157_v51 = vadd.f32 %v9149_v36, %v3772_v25  ;;  %v4944_v60 = vadd.f32 %v4880_v45, %v4594_v57  ;;  %5806 = vmatprep.mubr.msk.f32.mxu0 %vm563_vm0, %v4270_v34  ;;  %v4884_v45 = vld [vmem:[%s10039_s0 + $0x60] sm:$0xff] }
 0x3a0   :  { %v5009_v52 = vmax.f32 %v4945_v5, 0.0  ;;  %v3776_v41 = vpop.f32.mrb[136].mxu1 }
 0x3a1   :  { %v4271_v59 = vmax.f32 %v4157_v51, 0.0  ;;  %v5008_v32 = vmax.f32 %v4944_v60, 0.0  ;;  %v3777_v49 = vadd.f32 %v9733_v54, %v3776_v41  ;;  %v3778_v15 = vpop.f32.mrb[137].mxu1 }
 0x3a2   :  { %5073 = vst [vmem:[#allocation3 + $0x48] sm:$0xff] %v5009_v52 }
 0x3a3   :  { %5072 = vst [vmem:[#allocation3 + $0x40] sm:$0xff] %v5008_v32  ;;  %v4162_v14 = vadd.f32 %v9210_v43, %v3777_v49  ;;  %5807 = vmatmul.mubr.msk.f32.gmra.mrb[146].mxu0 %vm563_vm0, %v4271_v59  ;;  %v4883_v43 = vld [vmem:[%s10039_s0 + $0x58] sm:$0xff] }
 0x3a4   :  { %v3781_v9 = vpop.f32.mrb[138].mxu1 }
 0x3a5   :  { %v4272_v16 = vmax.f32 %v4162_v14, 0.0  ;;  %v3782_v36 = vadd.f32 %v9733_v54, %v3781_v9  ;;  %v3783_v44 = vpop.f32.mrb[139].mxu1 }
 0x3a7   :  { %v4167_v4 = vadd.f32 %v9205_v61, %v3782_v36  ;;  %5809 = vmatprep.mubr.msk.f32.mxu0 %vm563_vm0, %v4272_v16 }
 0x3a8   :  { %v3786_v38 = vpop.f32.mrb[140].mxu1 }
 0x3a9   :  { %v4273_v56 = vmax.f32 %v4167_v4, 0.0  ;;  %v3787_v28 = vadd.f32 %v9733_v54, %v3786_v38  ;;  %v3788_v1 = vpop.f32.mrb[141].mxu1  ;;  %v4887_v4 = vld [vmem:[%s10039_s0 + $0x78] sm:$0xff] }
 0x3ab   :  { %v4172_v6 = vadd.f32 %v9265_v53, %v3787_v28  ;;  %v5748_v42 = vpop.f32.mrb[106].mxu0  ;;  %5810 = vmatmul.mubr.msk.f32.gmra.mrb[148].mxu0 %vm563_vm0, %v4273_v56  ;;  %v4886_v28 = vld [vmem:[%s10039_s0 + $0x70] sm:$0xff] }
 0x3ac   :  { %v4609_v30 = vadd.f32 %v5748_v42, %v9651_v21  ;;  %v3791_v50 = vpop.f32.mrb[142].mxu1  ;;  %v4603_v61 = vpop.f32.mrb[107].mxu0 }
 0x3ad   :  { %v4274_v63 = vmax.f32 %v4172_v6, 0.0  ;;  %v3792_v47 = vadd.f32 %v9733_v54, %v3791_v50  ;;  %v4604_v53 = vadd.f32 %v9651_v21, %v4603_v61  ;;  %v3793_v39 = vpop.f32.mrb[143].mxu1 }
 0x3ae   :  { %v4947_v29 = vadd.f32 %v4883_v43, %v4609_v30 }
 0x3af   :  { %v4177_v2 = vadd.f32 %v9260_v31, %v3792_v47  ;;  %v4946_v17 = vadd.f32 %v4882_v24, %v4604_v53  ;;  %5812 = vmatprep.mubr.msk.f32.mxu0 %vm563_vm0, %v4274_v63 }
 0x3b0   :  { %v5011_v3 = vmax.f32 %v4947_v29, 0.0  ;;  %v3796_v11 = vpop.f32.mrb[144].mxu1 }
 0x3b1   :  { %v4275_v8 = vmax.f32 %v4177_v2, 0.0  ;;  %v5010_v10 = vmax.f32 %v4946_v17, 0.0  ;;  %v3797_v40 = vadd.f32 %v9733_v54, %v3796_v11  ;;  %v3798_v22 = vpop.f32.mrb[145].mxu1 }
 0x3b2   :  { %5075 = vst [vmem:[#allocation3 + $0x58] sm:$0xff] %v5011_v3 }
 0x3b3   :  { %5074 = vst [vmem:[#allocation3 + $0x50] sm:$0xff] %v5010_v10  ;;  %v4182_v7 = vadd.f32 %v9319_v19, %v3797_v40  ;;  %5813 = vmatmul.mubr.msk.f32.gmra.mrb[150].mxu0 %vm563_vm0, %v4275_v8  ;;  %v4889_v10 = vld [vmem:[%s10039_s0 + $0x88] sm:$0xff] }
 0x3b4   :  { %v3801_v27 = vpop.f32.mrb[146].mxu1 }
 0x3b5   :  { %v4276_v33 = vmax.f32 %v4182_v7, 0.0  ;;  %v3802_v31 = vadd.f32 %v9733_v54, %v3801_v27  ;;  %v3803_v46 = vpop.f32.mrb[147].mxu1 }
 0x3b7   :  { %v4187_v20 = vadd.f32 %v9314_v23, %v3802_v31  ;;  %v5751_v26 = vpop.f32.mrb[108].mxu0  ;;  %5815 = vmatprep.mubr.msk.f32.mxu0 %vm563_vm0, %v4276_v33 }
 0x3b8   :  { %v4619_v0 = vadd.f32 %v5751_v26, %v9651_v21  ;;  %v3806_v18 = vpop.f32.mrb[148].mxu1  ;;  %v4613_v19 = vpop.f32.mrb[109].mxu0 }
 0x3b9   :  { %v4277_v34 = vmax.f32 %v4187_v20, 0.0  ;;  %v3807_v25 = vadd.f32 %v9733_v54, %v3806_v18  ;;  %v4614_v23 = vadd.f32 %v9651_v21, %v4613_v19  ;;  %v3808_v57 = vpop.f32.mrb[149].mxu1  ;;  %v4891_v20 = vld [vmem:[%s10039_s0 + $0x98] sm:$0xff] }
 0x3ba   :  { %v4949_v48 = vadd.f32 %v4885_v62, %v4619_v0  ;;  %v4890_v0 = vld [vmem:[%s10039_s0 + $0x90] sm:$0xff]  ;;  %v4893_v57 = vld [vmem:[%s10039_s0 + $0xa8] sm:$0xff] }
 0x3bb   :  { %v4192_v5 = vadd.f32 %v9376_v55, %v3807_v25  ;;  %v4948_v51 = vadd.f32 %v4884_v45, %v4614_v23  ;;  %5816 = vmatmul.mubr.msk.f32.gmra.mrb[152].mxu0 %vm563_vm0, %v4277_v34 }
 0x3bc   :  { %v5013_v60 = vmax.f32 %v4949_v48, 0.0  ;;  %v3811_v52 = vpop.f32.mrb[150].mxu1 }
 0x3bd   :  { %v4278_v41 = vmax.f32 %v4192_v5, 0.0  ;;  %v5012_v59 = vmax.f32 %v4948_v51, 0.0  ;;  %v3812_v32 = vadd.f32 %v9733_v54, %v3811_v52  ;;  %v3813_v49 = vpop.f32.mrb[151].mxu1  ;;  %v4892_v51 = vld [vmem:[%s10039_s0 + $0xa0] sm:$0xff] }
 0x3be   :  { %5077 = vst [vmem:[#allocation3 + $0x68] sm:$0xff] %v5013_v60 }
 0x3bf   :  { %5076 = vst [vmem:[#allocation3 + $0x60] sm:$0xff] %v5012_v59  ;;  %v4197_v15 = vadd.f32 %v9370_v37, %v3812_v32  ;;  %5818 = vmatprep.mubr.msk.f32.mxu0 %vm563_vm0, %v4278_v41 }
 0x3c0   :  { %v3816_v14 = vpop.f32.mrb[152].mxu1 }
 0x3c1   :  { %v4279_v9 = vmax.f32 %v4197_v15, 0.0  ;;  %v3817_v55 = vadd.f32 %v9733_v54, %v3816_v14  ;;  %v3818_v16 = vpop.f32.mrb[153].mxu1  ;;  %v4895_v15 = vld [vmem:[%s10039_s0 + $0xb8] sm:$0xff] }
 0x3c3   :  { %v4202_v36 = vadd.f32 %v9402_v35, %v3817_v55  ;;  %v5754_v44 = vpop.f32.mrb[110].mxu0  ;;  %5819 = vmatmul.mubr.msk.f32.gmra.mrb[154].mxu0 %vm563_vm0, %v4279_v9  ;;  %v4894_v55 = vld [vmem:[%s10039_s0 + $0xb0] sm:$0xff] }
 0x3c4   :  { %v4629_v38 = vadd.f32 %v5754_v44, %v9651_v21  ;;  %v3821_v56 = vpop.f32.mrb[154].mxu1  ;;  %v4623_v37 = vpop.f32.mrb[111].mxu0 }
 0x3c5   :  { %v4280_v1 = vmax.f32 %v4202_v36, 0.0  ;;  %v3822_v6 = vadd.f32 %v9733_v54, %v3821_v56  ;;  %v4624_v35 = vadd.f32 %v9651_v21, %v4623_v37  ;;  %v3823_v42 = vpop.f32.mrb[155].mxu1  ;;  %v4897_v37 = vld [vmem:[%s10039_s0 + $0xc8] sm:$0xff] }
 0x3c6   :  { %v4951_v43 = vadd.f32 %v4887_v4, %v4629_v38 }
 0x3c7   :  { %v4207_v30 = vadd.f32 %v9394_v12, %v3822_v6  ;;  %v4950_v50 = vadd.f32 %v4886_v28, %v4624_v35  ;;  %5821 = vmatprep.mubr.msk.f32.mxu0 %vm563_vm0, %v4280_v1  ;;  %v4896_v6 = vld [vmem:[%s10039_s0 + $0xc0] sm:$0xff] }
 0x3c8   :  { %v5015_v61 = vmax.f32 %v4951_v43, 0.0  ;;  %v3826_v24 = vpop.f32.mrb[156].mxu1 }
 0x3c9   :  { %v4281_v63 = vmax.f32 %v4207_v30, 0.0  ;;  %v5014_v47 = vmax.f32 %v4950_v50, 0.0  ;;  %v3827_v53 = vadd.f32 %v9733_v54, %v3826_v24  ;;  %v3828_v39 = vpop.f32.mrb[157].mxu1  ;;  %v4899_v24 = vld [vmem:[%s10039_s0 + $0xd8] sm:$0xff] }
 0x3ca   :  { %5079 = vst [vmem:[#allocation3 + $0x78] sm:$0xff] %v5015_v61 }
 0x3cb   :  { %5078 = vst [vmem:[#allocation3 + $0x70] sm:$0xff] %v5014_v47  ;;  %v4212_v29 = vadd.f32 %v9441_v58, %v3827_v53  ;;  %5822 = vmatmul.mubr.msk.f32.gmra.mrb[156].mxu0 %vm563_vm0, %v4281_v63  ;;  %v4888_v58 = vld [vmem:[%s10039_s0 + $0x80] sm:$0xff]  ;;  %v4898_v53 = vld [vmem:[%s10039_s0 + $0xd0] sm:$0xff] }
 0x3cc   :  { %v3831_v2 = vpop.f32.mrb[158].mxu1 }
 0x3cd   :  { %v4282_v17 = vmax.f32 %v4212_v29, 0.0  ;;  %v3832_v12 = vadd.f32 %v9733_v54, %v3831_v2  ;;  %v3833_v3 = vpop.f32.mrb[159].mxu1 }
 0x3cf   :  { %v4217_v11 = vadd.f32 %v9435_v13, %v3832_v12  ;;  %v5757_v8 = vpop.f32.mrb[112].mxu0  ;;  %5824 = vmatprep.mubr.msk.f32.mxu0 %vm563_vm0, %v4282_v17 }
 0x3d0   :  { %v4639_v40 = vadd.f32 %v5757_v8, %v9651_v21  ;;  %v4633_v22 = vpop.f32.mrb[113].mxu0 }
 0x3d1   :  { %v4283_v7 = vmax.f32 %v4217_v11, 0.0  ;;  %v4634_v54 = vadd.f32 %v9651_v21, %v4633_v22  ;;  %v4901_v11 = vld [vmem:[%s10039_s0 + $0xe8] sm:$0xff] }
 0x3d2   :  { %v4953_v27 = vadd.f32 %v4889_v10, %v4639_v40  ;;  %v4900_v40 = vld [vmem:[%s10039_s0 + $0xe0] sm:$0xff] }
 0x3d3   :  { %v4952_v33 = vadd.f32 %v4888_v58, %v4634_v54  ;;  %5825 = vmatmul.mubr.msk.f32.gmra.mrb[158].mxu0 %vm563_vm0, %v4283_v7 }
 0x3d4   :  { %v5017_v13 = vmax.f32 %v4953_v27, 0.0 }
 0x3d5   :  { %v5016_v31 = vmax.f32 %v4952_v33, 0.0 }
 0x3d6   :  { %5081 = vst [vmem:[#allocation3 + $0x88] sm:$0xff] %v5017_v13  ;;  %v4903_v13 = vld [vmem:[%s10039_s0 + $0xf8] sm:$0xff] }
 0x3d7   :  { %5080 = vst [vmem:[#allocation3 + $0x80] sm:$0xff] %v5016_v31 }
 0x3db   :  { %v5760_v46 = vpop.f32.mrb[114].mxu0 }
 0x3dc   :  { %v4649_v26 = vadd.f32 %v5760_v46, %v9651_v21  ;;  %v4643_v62 = vpop.f32.mrb[115].mxu0 }
 0x3dd   :  { %v4644_v18 = vadd.f32 %v9651_v21, %v4643_v62 }
 0x3de   :  { %v4955_v19 = vadd.f32 %v4891_v20, %v4649_v26  ;;  %v4902_v20 = vld [vmem:[%s10039_s0 + $0xf0] sm:$0xff] }
 0x3df   :  { %v4954_v45 = vadd.f32 %v4890_v0, %v4644_v18 }
 0x3e0   :  { %v5019_v34 = vmax.f32 %v4955_v19, 0.0 }
 0x3e1   :  { %v5018_v25 = vmax.f32 %v4954_v45, 0.0 }
 0x3e2   :  { %5083 = vst [vmem:[#allocation3 + $0x98] sm:$0xff] %v5019_v34  ;;  %v4905_v34 = vld [vmem:[%s10039_s0 + $0x108] sm:$0xff] }
 0x3e3   :  { %5082 = vst [vmem:[#allocation3 + $0x90] sm:$0xff] %v5018_v25 }
 0x3e7   :  { %v5763_v23 = vpop.f32.mrb[116].mxu0 }
 0x3e8   :  { %v4659_v48 = vadd.f32 %v5763_v23, %v9651_v21  ;;  %v4653_v5 = vpop.f32.mrb[117].mxu0 }
 0x3e9   :  { %v4654_v60 = vadd.f32 %v9651_v21, %v4653_v5 }
 0x3ea   :  { %v4957_v52 = vadd.f32 %v4893_v57, %v4659_v48  ;;  %v4904_v57 = vld [vmem:[%s10039_s0 + $0x100] sm:$0xff] }
 0x3eb   :  { %v4956_v41 = vadd.f32 %v4892_v51, %v4654_v60 }
 0x3ec   :  { %v5021_v59 = vmax.f32 %v4957_v52, 0.0 }
 0x3ed   :  { %v5020_v32 = vmax.f32 %v4956_v41, 0.0 }
 0x3ee   :  { %5085 = vst [vmem:[#allocation3 + $0xa8] sm:$0xff] %v5021_v59  ;;  %v4907_v59 = vld [vmem:[%s10039_s0 + $0x118] sm:$0xff] }
 0x3ef   :  { %5084 = vst [vmem:[#allocation3 + $0xa0] sm:$0xff] %v5020_v32 }
 0x3f3   :  { %v5766_v49 = vpop.f32.mrb[118].mxu0 }
 0x3f4   :  { %v4669_v14 = vadd.f32 %v5766_v49, %v9651_v21  ;;  %v4663_v9 = vpop.f32.mrb[119].mxu0 }
 0x3f5   :  { %v4664_v16 = vadd.f32 %v9651_v21, %v4663_v9 }
 0x3f6   :  { %v4959_v36 = vadd.f32 %v4895_v15, %v4669_v14  ;;  %v4906_v15 = vld [vmem:[%s10039_s0 + $0x110] sm:$0xff] }
 0x3f7   :  { %v4958_v44 = vadd.f32 %v4894_v55, %v4664_v16 }
 0x3f8   :  { %v5023_v4 = vmax.f32 %v4959_v36, 0.0 }
 0x3f9   :  { %v5022_v38 = vmax.f32 %v4958_v44, 0.0 }
 0x3fa   :  { %5087 = vst [vmem:[#allocation3 + $0xb8] sm:$0xff] %v5023_v4  ;;  %v4909_v4 = vld [vmem:[%s10039_s0 + $0x128] sm:$0xff] }
 0x3fb   :  { %5086 = vst [vmem:[#allocation3 + $0xb0] sm:$0xff] %v5022_v38 }
 0x3ff   :  { %v5769_v56 = vpop.f32.mrb[120].mxu0 }
 0x400   :  { %v4679_v28 = vadd.f32 %v5769_v56, %v9651_v21  ;;  %v4673_v1 = vpop.f32.mrb[121].mxu0 }
 0x401   :  { %v4674_v35 = vadd.f32 %v9651_v21, %v4673_v1 }
 0x402   :  { %v4961_v42 = vadd.f32 %v4897_v37, %v4679_v28  ;;  %v4908_v37 = vld [vmem:[%s10039_s0 + $0x120] sm:$0xff] }
 0x403   :  { %v4960_v43 = vadd.f32 %v4896_v6, %v4674_v35 }
 0x404   :  { %v5025_v30 = vmax.f32 %v4961_v42, 0.0 }
 0x405   :  { %v5024_v50 = vmax.f32 %v4960_v43, 0.0 }
 0x406   :  { %5089 = vst [vmem:[#allocation3 + $0xc8] sm:$0xff] %v5025_v30  ;;  %v4911_v30 = vld [vmem:[%s10039_s0 + $0x138] sm:$0xff] }
 0x407   :  { %5088 = vst [vmem:[#allocation3 + $0xc0] sm:$0xff] %v5024_v50 }
 0x40b   :  { %v5772_v61 = vpop.f32.mrb[122].mxu0 }
 0x40c   :  { %v4689_v63 = vadd.f32 %v5772_v61, %v9651_v21  ;;  %v4683_v47 = vpop.f32.mrb[123].mxu0 }
 0x40d   :  { %v4684_v39 = vadd.f32 %v9651_v21, %v4683_v47 }
 0x40e   :  { %v4963_v29 = vadd.f32 %v4899_v24, %v4689_v63  ;;  %v4910_v24 = vld [vmem:[%s10039_s0 + $0x130] sm:$0xff] }
 0x40f   :  { %v4962_v2 = vadd.f32 %v4898_v53, %v4684_v39 }
 0x410   :  { %v5027_v17 = vmax.f32 %v4963_v29, 0.0 }
 0x411   :  { %v5026_v12 = vmax.f32 %v4962_v2, 0.0 }
 0x412   :  { %5091 = vst [vmem:[#allocation3 + $0xd8] sm:$0xff] %v5027_v17  ;;  %v4913_v17 = vld [vmem:[%s10039_s0 + $0x148] sm:$0xff] }
 0x413   :  { %5090 = vst [vmem:[#allocation3 + $0xd0] sm:$0xff] %v5026_v12 }
 0x41b   :  { %v5775_v3 = vpop.f32.mrb[124].mxu0 }
 0x41c   :  { %v4699_v8 = vadd.f32 %v5775_v3, %v9651_v21  ;;  %v4693_v10 = vpop.f32.mrb[125].mxu0 }
 0x41d   :  { %v4694_v22 = vadd.f32 %v9651_v21, %v4693_v10 }
 0x41e   :  { %v4965_v58 = vadd.f32 %v4901_v11, %v4699_v8  ;;  %v4912_v11 = vld [vmem:[%s10039_s0 + $0x140] sm:$0xff] }
 0x41f   :  { %v4964_v7 = vadd.f32 %v4900_v40, %v4694_v22 }
 0x420   :  { %v5029_v54 = vmax.f32 %v4965_v58, 0.0 }
 0x421   :  { %v5028_v27 = vmax.f32 %v4964_v7, 0.0 }
 0x422   :  { %5093 = vst [vmem:[#allocation3 + $0xe8] sm:$0xff] %v5029_v54  ;;  %v4915_v54 = vld [vmem:[%s10039_s0 + $0x158] sm:$0xff] }
 0x423   :  { %5092 = vst [vmem:[#allocation3 + $0xe0] sm:$0xff] %v5028_v27 }
 0x426   :  { %v5778_v33 = vpop.f32.mrb[126].mxu0 }
 0x427   :  { %v4709_v31 = vadd.f32 %v5778_v33, %v9651_v21  ;;  %v4703_v46 = vpop.f32.mrb[127].mxu0 }
 0x428   :  { %v4704_v26 = vadd.f32 %v9651_v21, %v4703_v46 }
 0x429   :  { %v4967_v62 = vadd.f32 %v4903_v13, %v4709_v31  ;;  %v4914_v13 = vld [vmem:[%s10039_s0 + $0x150] sm:$0xff] }
 0x42a   :  { %v4966_v0 = vadd.f32 %v4902_v20, %v4704_v26 }
 0x42b   :  { %v5031_v18 = vmax.f32 %v4967_v62, 0.0 }
 0x42c   :  { %v5030_v19 = vmax.f32 %v4966_v0, 0.0 }
 0x42d   :  { %5095 = vst [vmem:[#allocation3 + $0xf8] sm:$0xff] %v5031_v18  ;;  %v4917_v18 = vld [vmem:[%s10039_s0 + $0x168] sm:$0xff] }
 0x42e   :  { %5094 = vst [vmem:[#allocation3 + $0xf0] sm:$0xff] %v5030_v19  ;;  %v5781_v45 = vpop.f32.mrb[128].mxu0 }
 0x42f   :  { %v4719_v25 = vadd.f32 %v5781_v45, %v9651_v21  ;;  %v4713_v23 = vpop.f32.mrb[129].mxu0 }
 0x430   :  { %v4714_v48 = vadd.f32 %v9651_v21, %v4713_v23 }
 0x431   :  { %v4969_v5 = vadd.f32 %v4905_v34, %v4719_v25  ;;  %v4916_v34 = vld [vmem:[%s10039_s0 + $0x160] sm:$0xff] }
 0x432   :  { %v4968_v51 = vadd.f32 %v4904_v57, %v4714_v48 }
 0x433   :  { %v5033_v60 = vmax.f32 %v4969_v5, 0.0 }
 0x434   :  { %v5032_v52 = vmax.f32 %v4968_v51, 0.0 }
 0x435   :  { %5097 = vst [vmem:[#allocation3 + $0x108] sm:$0xff] %v5033_v60  ;;  %v4919_v60 = vld [vmem:[%s10039_s0 + $0x178] sm:$0xff] }
 0x436   :  { %5096 = vst [vmem:[#allocation3 + $0x100] sm:$0xff] %v5032_v52  ;;  %v5784_v41 = vpop.f32.mrb[130].mxu0 }
 0x437   :  { %v4729_v32 = vadd.f32 %v5784_v41, %v9651_v21  ;;  %v4723_v49 = vpop.f32.mrb[131].mxu0 }
 0x438   :  { %v4724_v14 = vadd.f32 %v9651_v21, %v4723_v49 }
 0x439   :  { %v4971_v9 = vadd.f32 %v4907_v59, %v4729_v32  ;;  %v4918_v59 = vld [vmem:[%s10039_s0 + $0x170] sm:$0xff] }
 0x43a   :  { %v4970_v55 = vadd.f32 %v4906_v15, %v4724_v14 }
 0x43b   :  { %v5035_v16 = vmax.f32 %v4971_v9, 0.0 }
 0x43c   :  { %v5034_v36 = vmax.f32 %v4970_v55, 0.0 }
 0x43d   :  { %5099 = vst [vmem:[#allocation3 + $0x118] sm:$0xff] %v5035_v16  ;;  %v4921_v16 = vld [vmem:[%s10039_s0 + $0x188] sm:$0xff] }
 0x43e   :  { %5098 = vst [vmem:[#allocation3 + $0x110] sm:$0xff] %v5034_v36  ;;  %v5787_v44 = vpop.f32.mrb[132].mxu0 }
 0x43f   :  { %v4739_v38 = vadd.f32 %v5787_v44, %v9651_v21  ;;  %v4733_v56 = vpop.f32.mrb[133].mxu0 }
 0x440   :  { %v4734_v28 = vadd.f32 %v9651_v21, %v4733_v56 }
 0x441   :  { %v4973_v1 = vadd.f32 %v4909_v4, %v4739_v38  ;;  %v4920_v4 = vld [vmem:[%s10039_s0 + $0x180] sm:$0xff] }
 0x442   :  { %v4972_v6 = vadd.f32 %v4908_v37, %v4734_v28 }
 0x443   :  { %v5037_v35 = vmax.f32 %v4973_v1, 0.0 }
 0x444   :  { %v5036_v42 = vmax.f32 %v4972_v6, 0.0 }
 0x445   :  { %5101 = vst [vmem:[#allocation3 + $0x128] sm:$0xff] %v5037_v35  ;;  %v4923_v35 = vld [vmem:[%s10039_s0 + $0x198] sm:$0xff] }
 0x446   :  { %5100 = vst [vmem:[#allocation3 + $0x120] sm:$0xff] %v5036_v42  ;;  %v5790_v43 = vpop.f32.mrb[134].mxu0  ;;  %v9972_v42 = vld [vmem:[%s10045_s6] ss:$0 sm:$0xff] }
 0x447   :  { %v4749_v50 = vadd.f32 %v5790_v43, %v9651_v21  ;;  %v4743_v61 = vpop.f32.mrb[135].mxu0 }
 0x448   :  { %v4744_v63 = vadd.f32 %v9651_v21, %v4743_v61 }
 0x449   :  { %v4975_v47 = vadd.f32 %v4911_v30, %v4749_v50 }
 0x44a   :  { %v4974_v53 = vadd.f32 %v4910_v24, %v4744_v63 }
 0x44b   :  { %v5039_v39 = vmax.f32 %v4975_v47, 0.0 }
 0x44c   :  { %v5038_v29 = vmax.f32 %v4974_v53, 0.0 }
 0x44d   :  { %5103 = vst [vmem:[#allocation3 + $0x138] sm:$0xff] %v5039_v39  ;;  %v4925_v39 = vld [vmem:[%s10039_s0 + $0x1a8] sm:$0xff] }
 0x44e   :  { %5102 = vst [vmem:[#allocation3 + $0x130] sm:$0xff] %v5038_v29  ;;  %v5793_v2 = vpop.f32.mrb[136].mxu0 }
 0x44f   :  { %v4759_v12 = vadd.f32 %v5793_v2, %v9651_v21  ;;  %v4753_v3 = vpop.f32.mrb[137].mxu0 }
 0x450   :  { %v4754_v8 = vadd.f32 %v9651_v21, %v4753_v3 }
 0x451   :  { %v4977_v10 = vadd.f32 %v4913_v17, %v4759_v12  ;;  %v4924_v17 = vld [vmem:[%s10039_s0 + $0x1a0] sm:$0xff] }
 0x452   :  { %v4976_v40 = vadd.f32 %v4912_v11, %v4754_v8 }
 0x453   :  { %v5041_v22 = vmax.f32 %v4977_v10, 0.0 }
 0x454   :  { %v5040_v58 = vmax.f32 %v4976_v40, 0.0 }
 0x455   :  { %5105 = vst [vmem:[#allocation3 + $0x148] sm:$0xff] %v5041_v22  ;;  %v4927_v22 = vld [vmem:[%s10039_s0 + $0x1b8] sm:$0xff] }
 0x456   :  { %5104 = vst [vmem:[#allocation3 + $0x140] sm:$0xff] %v5040_v58  ;;  %v5796_v7 = vpop.f32.mrb[138].mxu0 }
 0x457   :  { %v4769_v27 = vadd.f32 %v5796_v7, %v9651_v21  ;;  %v4763_v33 = vpop.f32.mrb[139].mxu0 }
 0x458   :  { %v4764_v31 = vadd.f32 %v9651_v21, %v4763_v33 }
 0x459   :  { %v4979_v46 = vadd.f32 %v4915_v54, %v4769_v27  ;;  %v4926_v54 = vld [vmem:[%s10039_s0 + $0x1b0] sm:$0xff] }
 0x45a   :  { %v4978_v20 = vadd.f32 %v4914_v13, %v4764_v31 }
 0x45b   :  { %v5043_v26 = vmax.f32 %v4979_v46, 0.0 }
 0x45c   :  { %v5042_v62 = vmax.f32 %v4978_v20, 0.0 }
 0x45d   :  { %5107 = vst [vmem:[#allocation3 + $0x158] sm:$0xff] %v5043_v26  ;;  %v4929_v26 = vld [vmem:[%s10039_s0 + $0x1c8] sm:$0xff] }
 0x45e   :  { %5106 = vst [vmem:[#allocation3 + $0x150] sm:$0xff] %v5042_v62  ;;  %v5799_v0 = vpop.f32.mrb[140].mxu0 }
 0x45f   :  { %v4779_v19 = vadd.f32 %v5799_v0, %v9651_v21  ;;  %v4773_v45 = vpop.f32.mrb[141].mxu0 }
 0x460   :  { %v4774_v25 = vadd.f32 %v9651_v21, %v4773_v45 }
 0x461   :  { %v4981_v23 = vadd.f32 %v4917_v18, %v4779_v19  ;;  %v4928_v18 = vld [vmem:[%s10039_s0 + $0x1c0] sm:$0xff] }
 0x462   :  { %v4980_v57 = vadd.f32 %v4916_v34, %v4774_v25 }
 0x463   :  { %v5045_v48 = vmax.f32 %v4981_v23, 0.0 }
 0x464   :  { %v5044_v5 = vmax.f32 %v4980_v57, 0.0 }
 0x465   :  { %5109 = vst [vmem:[#allocation3 + $0x168] sm:$0xff] %v5045_v48  ;;  %v4931_v48 = vld [vmem:[%s10039_s0 + $0x1d8] sm:$0xff] }
 0x466   :  { %5108 = vst [vmem:[#allocation3 + $0x160] sm:$0xff] %v5044_v5  ;;  %v5802_v51 = vpop.f32.mrb[142].mxu0 }
 0x467   :  { %v4789_v52 = vadd.f32 %v5802_v51, %v9651_v21  ;;  %v4783_v41 = vpop.f32.mrb[143].mxu0 }
 0x468   :  { %v4784_v32 = vadd.f32 %v9651_v21, %v4783_v41 }
 0x469   :  { %v4983_v49 = vadd.f32 %v4919_v60, %v4789_v52  ;;  %v4930_v60 = vld [vmem:[%s10039_s0 + $0x1d0] sm:$0xff] }
 0x46a   :  { %v4982_v15 = vadd.f32 %v4918_v59, %v4784_v32 }
 0x46b   :  { %v5047_v14 = vmax.f32 %v4983_v49, 0.0 }
 0x46c   :  { %v5046_v9 = vmax.f32 %v4982_v15, 0.0 }
 0x46d   :  { %5111 = vst [vmem:[#allocation3 + $0x178] sm:$0xff] %v5047_v14  ;;  %v4933_v14 = vld [vmem:[%s10039_s0 + $0x1e8] sm:$0xff] }
 0x46e   :  { %5110 = vst [vmem:[#allocation3 + $0x170] sm:$0xff] %v5046_v9  ;;  %v5805_v55 = vpop.f32.mrb[144].mxu0 }
 0x46f   :  { %v4799_v36 = vadd.f32 %v5805_v55, %v9651_v21  ;;  %v4793_v44 = vpop.f32.mrb[145].mxu0 }
 0x470   :  { %v4794_v38 = vadd.f32 %v9651_v21, %v4793_v44  ;;  %v4922_v21 = vld [vmem:[%s10039_s0 + $0x190] sm:$0xff] }
 0x471   :  { %v4985_v56 = vadd.f32 %v4921_v16, %v4799_v36  ;;  %v4932_v16 = vld [vmem:[%s10039_s0 + $0x1e0] sm:$0xff] }
 0x472   :  { %v4984_v37 = vadd.f32 %v4920_v4, %v4794_v38 }
 0x473   :  { %v5049_v28 = vmax.f32 %v4985_v56, 0.0 }
 0x474   :  { %v5048_v1 = vmax.f32 %v4984_v37, 0.0 }
 0x475   :  { %5113 = vst [vmem:[#allocation3 + $0x188] sm:$0xff] %v5049_v28  ;;  %v4935_v28 = vld [vmem:[%s10039_s0 + $0x1f8] sm:$0xff] }
 0x476   :  { %5112 = vst [vmem:[#allocation3 + $0x180] sm:$0xff] %v5048_v1  ;;  %v5808_v6 = vpop.f32.mrb[146].mxu0 }
 0x477   :  { %v4809_v43 = vadd.f32 %v9972_v42, %v5808_v6  ;;  %v4803_v30 = vpop.f32.mrb[147].mxu0 }
 0x478   :  { %v4804_v50 = vadd.f32 %v9972_v42, %v4803_v30 }
 0x479   :  { %v4987_v61 = vadd.f32 %v4923_v35, %v4809_v43  ;;  %v4934_v35 = vld [vmem:[%s10039_s0 + $0x1f0] sm:$0xff] }
 0x47a   :  { %v4986_v24 = vadd.f32 %v4922_v21, %v4804_v50 }
 0x47b   :  { %v5051_v63 = vmax.f32 %v4987_v61, 0.0 }
 0x47c   :  { %v5050_v47 = vmax.f32 %v4986_v24, 0.0 }
 0x47d   :  { %5115 = vst [vmem:[#allocation3 + $0x198] sm:$0xff] %v5051_v63 }
 0x47e   :  { %5114 = vst [vmem:[#allocation3 + $0x190] sm:$0xff] %v5050_v47  ;;  %v5811_v53 = vpop.f32.mrb[148].mxu0 }
 0x47f   :  { %v4819_v29 = vadd.f32 %v9972_v42, %v5811_v53  ;;  %v4813_v2 = vpop.f32.mrb[149].mxu0 }
 0x480   :  { %v4814_v12 = vadd.f32 %v9972_v42, %v4813_v2 }
 0x481   :  { %v4989_v3 = vadd.f32 %v4925_v39, %v4819_v29 }
 0x482   :  { %v4988_v11 = vadd.f32 %v4924_v17, %v4814_v12 }
 0x483   :  { %v5053_v8 = vmax.f32 %v4989_v3, 0.0 }
 0x484   :  { %v5052_v10 = vmax.f32 %v4988_v11, 0.0 }
 0x485   :  { %5117 = vst [vmem:[#allocation3 + $0x1a8] sm:$0xff] %v5053_v8 }
 0x486   :  { %5116 = vst [vmem:[#allocation3 + $0x1a0] sm:$0xff] %v5052_v10  ;;  %v5814_v40 = vpop.f32.mrb[150].mxu0 }
 0x487   :  { %v4829_v58 = vadd.f32 %v9972_v42, %v5814_v40  ;;  %v4823_v7 = vpop.f32.mrb[151].mxu0 }
 0x488   :  { %v4824_v27 = vadd.f32 %v9972_v42, %v4823_v7 }
 0x489   :  { %v4991_v33 = vadd.f32 %v4927_v22, %v4829_v58 }
 0x48a   :  { %v4990_v13 = vadd.f32 %v4926_v54, %v4824_v27 }
 0x48b   :  { %v5055_v31 = vmax.f32 %v4991_v33, 0.0 }
 0x48c   :  { %v5054_v46 = vmax.f32 %v4990_v13, 0.0 }
 0x48d   :  { %5119 = vst [vmem:[#allocation3 + $0x1b8] sm:$0xff] %v5055_v31 }
 0x48e   :  { %5118 = vst [vmem:[#allocation3 + $0x1b0] sm:$0xff] %v5054_v46  ;;  %v5817_v20 = vpop.f32.mrb[152].mxu0 }
 0x48f   :  { %v4839_v62 = vadd.f32 %v9972_v42, %v5817_v20  ;;  %v4833_v0 = vpop.f32.mrb[153].mxu0 }
 0x490   :  { %v4834_v19 = vadd.f32 %v9972_v42, %v4833_v0 }
 0x491   :  { %v4993_v45 = vadd.f32 %v4929_v26, %v4839_v62 }
 0x492   :  { %v4992_v34 = vadd.f32 %v4928_v18, %v4834_v19 }
 0x493   :  { %v5057_v25 = vmax.f32 %v4993_v45, 0.0 }
 0x494   :  { %v5056_v23 = vmax.f32 %v4992_v34, 0.0 }
 0x495   :  { %5121 = vst [vmem:[#allocation3 + $0x1c8] sm:$0xff] %v5057_v25 }
 0x496   :  { %5120 = vst [vmem:[#allocation3 + $0x1c0] sm:$0xff] %v5056_v23  ;;  %v5820_v57 = vpop.f32.mrb[154].mxu0 }
 0x497   :  { %v4849_v5 = vadd.f32 %v9972_v42, %v5820_v57  ;;  %v4843_v51 = vpop.f32.mrb[155].mxu0 }
 0x498   :  { %v4844_v52 = vadd.f32 %v9972_v42, %v4843_v51 }
 0x499   :  { %v4995_v41 = vadd.f32 %v4931_v48, %v4849_v5 }
 0x49a   :  { %v4994_v59 = vadd.f32 %v4930_v60, %v4844_v52 }
 0x49b   :  { %v5059_v32 = vmax.f32 %v4995_v41, 0.0 }
 0x49c   :  { %v5058_v49 = vmax.f32 %v4994_v59, 0.0 }
 0x49d   :  { %5123 = vst [vmem:[#allocation3 + $0x1d8] sm:$0xff] %v5059_v32 }
 0x49e   :  { %5122 = vst [vmem:[#allocation3 + $0x1d0] sm:$0xff] %v5058_v49  ;;  %v5823_v15 = vpop.f32.mrb[156].mxu0 }
 0x49f   :  { %v4859_v9 = vadd.f32 %v9972_v42, %v5823_v15  ;;  %v4853_v55 = vpop.f32.mrb[157].mxu0 }
 0x4a0   :  { %v4854_v36 = vadd.f32 %v9972_v42, %v4853_v55 }
 0x4a1   :  { %v4997_v44 = vadd.f32 %v4933_v14, %v4859_v9 }
 0x4a2   :  { %v4996_v4 = vadd.f32 %v4932_v16, %v4854_v36 }
 0x4a3   :  { %v5061_v38 = vmax.f32 %v4997_v44, 0.0 }
 0x4a4   :  { %v5060_v56 = vmax.f32 %v4996_v4, 0.0 }
 0x4a5   :  { %5125 = vst [vmem:[#allocation3 + $0x1e8] sm:$0xff] %v5061_v38 }
 0x4a6   :  { %5124 = vst [vmem:[#allocation3 + $0x1e0] sm:$0xff] %v5060_v56  ;;  %v5826_v37 = vpop.f32.mrb[158].mxu0 }
 0x4a7   :  { %v4869_v1 = vadd.f32 %v9972_v42, %v5826_v37  ;;  %v4863_v6 = vpop.f32.mrb[159].mxu0 }
 0x4a8   :  { %v4864_v43 = vadd.f32 %v9972_v42, %v4863_v6 }
 0x4a9   :  { %v4999_v30 = vadd.f32 %v4935_v28, %v4869_v1 }
 0x4aa   :  { %v4998_v21 = vadd.f32 %v4934_v35, %v4864_v43 }
 0x4ab   :  { %v5063_v50 = vmax.f32 %v4999_v30, 0.0 }
 0x4ac   :  { %v5062_v61 = vmax.f32 %v4998_v21, 0.0 }
 0x4ad   :  { %5127 = vst [vmem:[#allocation3 + $0x1f8] sm:$0xff] %v5063_v50 }
 0x4ae   :  { %5126 = vst [vmem:[#allocation3 + $0x1f0] sm:$0xff] %v5062_v61 }
 0x4af   :  { %6942 = shalt.err (!%p6939_p4)
}
 0x4b0   :  { %s6943_s11 = scalar_lea.hbm %s10046_s7, 8192 }
 0x4b1   :  { %p6944_p5 = scmp.ne.s32.totalorder %s10046_s7, %s6943_s11  ;;  %p6947_p6 = scmp.lt.u32.totalorder %s6943_s11, %s10046_s7 }
 0x4b3   :  { %p6949_p7 = pnand %p6947_p6, %p6944_p5 }
 0x4b5   :  { %6952 = shalt.err (!%p6949_p7)
}
 0x4b6   :  { %s6961_s15 = smov 128   ;;  %s6962_s16 = smov 8  }
 0x4b7   :  { %5139 = dma.vmem_to_hbm [thread:$0]  %s5134_s9, 8192, %s10046_s7, [#allocation4], %s6961_s15, %s6961_s15, %s6962_s16  }
 0x4b8   :  { %6953 = dma.done.wait [#allocation4], 8192  }
 0x4b9   :  { %6954 = vsyncadd [#allocation4], 4294959104 }
 0x4ba   :  { %5143 = vsyncpa [#allocation4], 1 }

</bundles_post_ra>
